<compile_context>
chip_gen: v6e
topology: v6e:2x2x1
jax: 0.10.0
libtpu: 0.0.40
codegen_flags: <defaults>
</compile_context>

<pallas_src>
import functools

import jax
import jax.numpy as jnp
from jax import lax
from jax.experimental import pallas as pl
from jax.experimental.pallas import tpu as pltpu


def _fused_gru_encoder_kernel(*refs, num_layers, hidden_dim, t_chunk, compute_dtype):
    """One grid step == one chunk of `t_chunk` time steps, all layers fused.

    Ref order:
      gi0_ref                         (T, B, 3H)  precomputed layer-0 input gates
      w_hh_0 (H,3H), b_n_0 (1,H)
      for l in 1..L-1: w_ih_l (H,3H), b_gi_l (1,3H), w_hh_l (H,3H), b_n_l (1,H)
      out_ref                         (L, B, H)   final hidden state per layer
      h_carry   VMEM (L, B, H) f32    hidden states carried across chunks
      [act      VMEM (T, B, H) f32    per-chunk activations, only if L > 1]
      [gi_scr   VMEM (T, B, 3H) f32   per-chunk input gates for layers >= 1]
    """
    H = hidden_dim
    T = t_chunk
    L = num_layers

    idx = 0
    gi0_ref = refs[idx]; idx += 1
    layer_refs = [(None, None, refs[idx], refs[idx + 1])]  # layer 0: (.., .., w_hh, b_n)
    idx += 2
    for _ in range(1, L):
        layer_refs.append(tuple(refs[idx:idx + 4]))        # (w_ih, b_gi, w_hh, b_n)
        idx += 4
    out_ref = refs[idx]; idx += 1
    h_carry = refs[idx]; idx += 1
    if L > 1:
        act, gi_scr = refs[idx], refs[idx + 1]
        idx += 2
    else:
        act = gi_scr = None

    c = pl.program_id(0)

    @pl.when(c == 0)
    def _():
        h_carry[...] = jnp.zeros_like(h_carry)

    def run_layer(l, gi_ref, w_hh_ref, b_n_ref, write_act):
        # Hoist the weight load / cast out of the time loop.
        w_hh = w_hh_ref[...].astype(compute_dtype)          # (H, 3H)
        b_n = b_n_ref[...]                                  # (1, H) f32

        def step(t, h):
            gi = gi_ref[t]                                  # (B, 3H) f32 (bias folded in)
            gh = jnp.dot(h.astype(compute_dtype), w_hh,
                         preferred_element_type=jnp.float32)  # (B, 3H) f32
            # PyTorch GRU gate order: r, z, n
            r = jax.nn.sigmoid(gi[:, 0 * H:1 * H] + gh[:, 0 * H:1 * H])
            z = jax.nn.sigmoid(gi[:, 1 * H:2 * H] + gh[:, 1 * H:2 * H])
            n = jnp.tanh(gi[:, 2 * H:3 * H] + r * (gh[:, 2 * H:3 * H] + b_n))
            h_new = (1.0 - z) * n + z * h
            if write_act:
                act[t] = h_new                              # feeds the next layer (VMEM)
            return h_new

        h_final = lax.fori_loop(0, T, step, h_carry[l], unroll=True)
        h_carry[l] = h_final

    # ---- Layer 0: input gates were precomputed in the wrapper (one big matmul). ----
    run_layer(0, gi0_ref, layer_refs[0][2], layer_refs[0][3], write_act=(L > 1))

    # ---- Layers 1..L-1: chunk-batched input projection on the MXU, then recurrence. ----
    for l in range(1, L):
        w_ih_ref, b_gi_ref, w_hh_ref, b_n_ref = layer_refs[l]
        x2 = act[...].astype(compute_dtype).reshape(T * act.shape[1], H)   # (T*B, H)
        gi2 = jnp.dot(x2, w_ih_ref[...].astype(compute_dtype),
                      preferred_element_type=jnp.float32)                  # (T*B, 3H)
        gi_scr[...] = (gi2 + b_gi_ref[...]).reshape(T, act.shape[1], 3 * H)
        run_layer(l, gi_scr, w_hh_ref, b_n_ref, write_act=(l < L - 1))

    # ---- Write the (L, B, H) final-hidden slab once, at the last chunk. ----
    @pl.when(c == pl.num_programs(0) - 1)
    def _():
        out_ref[...] = h_carry[...].astype(out_ref.dtype)


def _prep_layer_biases(lp):
    """Fold b_hh[:, :2H] into the input-gate bias; keep b_hh_n separate."""
    H = lp["w_hh"].shape[0]
    b_gi = lp["b_ih"] + jnp.concatenate(
        [lp["b_hh"][:, :2 * H], jnp.zeros((1, H), lp["b_hh"].dtype)], axis=1)
    b_n = lp["b_hh"][:, 2 * H:]
    return b_gi, b_n


def encoder_forward(params, src, *, t_chunk=8, compute_dtype=jnp.float32):
    """src: (batch, seq) int32 token ids -> hidden: (num_layers, batch, hidden)."""
    layers = params["layers"]
    L = len(layers)
    H = layers[0]["w_hh"].shape[0]

    # Embedding gather (glue) + batch_first -> time-major.
    emb = jnp.take(params["embedding"], src, axis=0)        # (B, S, E)
    x = jnp.transpose(emb, (1, 0, 2))                       # (S, B, E)
    S, B, E = x.shape

    # Pad batch to a multiple of 8 sublanes (rows are independent; sliced off at the end).
    Bp = ((B + 7) // 8) * 8
    if Bp != B:
        x = jnp.pad(x, ((0, 0), (0, Bp - B), (0, 0)))

    # Pick a chunk length that divides S (amortizes the ~600-cycle per-grid-step overhead).
    tc = max(1, min(t_chunk, S))
    while S % tc:
        tc -= 1
    num_chunks = S // tc

    # Hoisted layer-0 input projection: one (S*B, E) x (E, 3H) matmul, biases folded in.
    b_gi0, b_n0 = _prep_layer_biases(layers[0])
    gi0 = (x.reshape(S * Bp, E) @ layers[0]["w_ih"] + b_gi0)
    gi0 = gi0.reshape(S, Bp, 3 * H).astype(jnp.float32)

    inputs = [gi0, layers[0]["w_hh"], b_n0]
    in_specs = [
        pl.BlockSpec((tc, Bp, 3 * H), lambda c: (c, 0, 0)),
        pl.BlockSpec((H, 3 * H), lambda c: (0, 0)),
        pl.BlockSpec((1, H), lambda c: (0, 0)),
    ]
    for lp in layers[1:]:
        b_gi, b_n = _prep_layer_biases(lp)
        inputs += [lp["w_ih"], b_gi, lp["w_hh"], b_n]
        in_specs += [
            pl.BlockSpec((H, 3 * H), lambda c: (0, 0)),
            pl.BlockSpec((1, 3 * H), lambda c: (0, 0)),
            pl.BlockSpec((H, 3 * H), lambda c: (0, 0)),
            pl.BlockSpec((1, H), lambda c: (0, 0)),
        ]

    scratch = [pltpu.VMEM((L, Bp, H), jnp.float32)]          # carried hidden states
    if L > 1:
        scratch += [pltpu.VMEM((tc, Bp, H), jnp.float32),    # chunk activations
                    pltpu.VMEM((tc, Bp, 3 * H), jnp.float32)]  # chunk input gates

    kernel = functools.partial(
        _fused_gru_encoder_kernel,
        num_layers=L, hidden_dim=H, t_chunk=tc, compute_dtype=compute_dtype)

    hidden = pl.pallas_call(
        kernel,
        out_shape=jax.ShapeDtypeStruct((L, Bp, H), jnp.float32),
        grid_spec=pltpu.PrefetchScalarGridSpec(
            num_scalar_prefetch=0,
            grid=(num_chunks,),
            in_specs=in_specs,
            out_specs=pl.BlockSpec((L, Bp, H), lambda c: (0, 0, 0)),
            scratch_shapes=scratch,
        ),
        compiler_params=pltpu.CompilerParams(
            # Time chunks form a sequential recurrence.
            dimension_semantics=("arbitrary",),
            vmem_limit_bytes=32 * 1024 * 1024,
        ),
    )(*inputs)

    return hidden[:, :B, :]


def init_encoder_params(key, input_size, embedding_dim, hidden_dim, num_layers):
    """Deterministic parameter init (shapes mirror the PyTorch module, weights transposed)."""
    params = {}
    key, k_emb = jax.random.split(key)
    params["embedding"] = jax.random.normal(
        k_emb, (input_size, embedding_dim), jnp.float32) * 0.1

    scale = 1.0 / jnp.sqrt(hidden_dim)
    layers = []
    for layer in range(num_layers):
        in_dim = embedding_dim if layer == 0 else hidden_dim
        key, k1, k2, k3, k4 = jax.random.split(key, 5)
        layers.append({
            # stored transposed relative to PyTorch weight_ih_l{k}: (3H, in_dim)
            "w_ih": jax.random.uniform(k1, (in_dim, 3 * hidden_dim),
                                       jnp.float32, -scale, scale),
            "w_hh": jax.random.uniform(k2, (hidden_dim, 3 * hidden_dim),
                                       jnp.float32, -scale, scale),
            "b_ih": jax.random.uniform(k3, (1, 3 * hidden_dim),
                                       jnp.float32, -scale, scale),
            "b_hh": jax.random.uniform(k4, (1, 3 * hidden_dim),
                                       jnp.float32, -scale, scale),
        })
    params["layers"] = layers
    return params


def _gru_reference(params, src):
    """Pure-JAX reference (lax.scan, canonical PyTorch GRU formulation)."""
    emb = jnp.take(params["embedding"], src, axis=0)
    x = jnp.transpose(emb, (1, 0, 2))
    finals = []
    for lp in params["layers"]:
        H = lp["w_hh"].shape[0]

        def step(h, xt, lp=lp, H=H):
            gi = xt @ lp["w_ih"] + lp["b_ih"]
            gh = h @ lp["w_hh"] + lp["b_hh"]
            r = jax.nn.sigmoid(gi[:, :H] + gh[:, :H])
            z = jax.nn.sigmoid(gi[:, H:2 * H] + gh[:, H:2 * H])
            n = jnp.tanh(gi[:, 2 * H:] + r * gh[:, 2 * H:])
            h_new = (1.0 - z) * n + z * h
            return h_new, h_new

        h0 = jnp.zeros((x.shape[1], H), jnp.float32)
        h_last, outs = jax.lax.scan(step, h0, x)
        finals.append(h_last)
        x = outs
    return jnp.stack(finals, axis=0)


if __name__ == "__main__":
    # Small, lane/sublane-aligned shapes consistent with the module.
    input_size = 32      # vocab
    embedding_dim = 128
    hidden_dim = 128
    num_layers = 2
    batch = 8
    seq = 16

    key = jax.random.PRNGKey(0)
    key, k_src = jax.random.split(key)
    src = jax.random.randint(k_src, (batch, seq), 0, input_size, dtype=jnp.int32)

    params = init_encoder_params(key, input_size, embedding_dim, hidden_dim, num_layers)

    hidden = encoder_forward(params, src, t_chunk=8)
    hidden = jax.block_until_ready(hidden)

    ref = _gru_reference(params, src)
    assert hidden.shape == (num_layers, batch, hidden_dim)
    assert jnp.allclose(hidden, ref, atol=1e-5, rtol=1e-5)

    print("KERNEL_OK")
</pallas_src>

<mosaic_0001>
module attributes {stable_mosaic.version = 11 : i64} {
  func.func @_fused_gru_encoder_kernel(%arg0: i32, %arg1: memref<8x8x384xf32, #tpu.memory_space<vmem>>, %arg2: memref<128x384xf32, #tpu.memory_space<vmem>>, %arg3: memref<1x128xf32, #tpu.memory_space<vmem>>, %arg4: memref<128x384xf32, #tpu.memory_space<vmem>>, %arg5: memref<1x384xf32, #tpu.memory_space<vmem>>, %arg6: memref<128x384xf32, #tpu.memory_space<vmem>>, %arg7: memref<1x128xf32, #tpu.memory_space<vmem>>, %arg8: memref<2x8x128xf32, #tpu.memory_space<vmem>>, %arg9: memref<2x8x128xf32, #tpu.memory_space<vmem>>, %arg10: memref<8x8x128xf32, #tpu.memory_space<vmem>>, %arg11: memref<8x8x384xf32, #tpu.memory_space<vmem>>) attributes {dimension_semantics = [#tpu.dimension_semantics<arbitrary>], iteration_bounds = array<i64: 2>, scalar_prefetch = 0 : i64, scratch_operands = 3 : i64, tpu.core_type = #tpu.core_type<tc>, window_params = [{transform_indices = @transform_0, window_bounds = array<i64: 8, 8, 384>}, {pipeline_mode = #tpu.pipeline_mode<synchronous>, transform_indices = @transform_1, window_bounds = array<i64: 128, 384>}, {pipeline_mode = #tpu.pipeline_mode<synchronous>, transform_indices = @transform_2, window_bounds = array<i64: 1, 128>}, {pipeline_mode = #tpu.pipeline_mode<synchronous>, transform_indices = @transform_3, window_bounds = array<i64: 128, 384>}, {pipeline_mode = #tpu.pipeline_mode<synchronous>, transform_indices = @transform_4, window_bounds = array<i64: 1, 384>}, {pipeline_mode = #tpu.pipeline_mode<synchronous>, transform_indices = @transform_5, window_bounds = array<i64: 128, 384>}, {pipeline_mode = #tpu.pipeline_mode<synchronous>, transform_indices = @transform_6, window_bounds = array<i64: 1, 128>}, {pipeline_mode = #tpu.pipeline_mode<synchronous>, transform_indices = @transform_7, window_bounds = array<i64: 2, 8, 128>}]} {
    %c0_i32 = arith.constant 0 : i32
    %0 = arith.cmpi eq, %arg0, %c0_i32 : i32
    %1 = arith.extui %0 : i1 to i32
    %c0_i32_0 = arith.constant 0 : i32
    %2 = arith.cmpi ne, %1, %c0_i32_0 : i32
    scf.if %2 {
      %cst_153 = arith.constant 0.000000e+00 : f32
      %573 = vector.broadcast %cst_153 : f32 to vector<2x8x128xf32>
      %c0_154 = arith.constant 0 : index
      %c0_155 = arith.constant 0 : index
      %c0_156 = arith.constant 0 : index
      %574 = vector.load %arg9[%c0_154, %c0_155, %c0_156] : memref<2x8x128xf32, #tpu.memory_space<vmem>>, vector<2x8x128xf32>
      tpu.vector_store %arg9[%c0_154, %c0_155, %c0_156], %573 {strides = array<i32>} : memref<2x8x128xf32, #tpu.memory_space<vmem>>, vector<2x8x128xf32>,
    } else {
    }
    %c0 = arith.constant 0 : index
    %c0_1 = arith.constant 0 : index
    %3 = vector.load %arg2[%c0, %c0_1] : memref<128x384xf32, #tpu.memory_space<vmem>>, vector<128x384xf32>
    %c0_2 = arith.constant 0 : index
    %c0_3 = arith.constant 0 : index
    %4 = vector.load %arg3[%c0_2, %c0_3] : memref<1x128xf32, #tpu.memory_space<vmem>>, vector<1x128xf32>
    %c0_4 = arith.constant 0 : index
    %c0_5 = arith.constant 0 : index
    %c0_6 = arith.constant 0 : index
    %5 = vector.load %arg9[%c0_4, %c0_5, %c0_6] : memref<2x8x128xf32, #tpu.memory_space<vmem>>, vector<1x8x128xf32>
    %6 = vector.shape_cast %5 : vector<1x8x128xf32> to vector<8x128xf32>
    %c0_i32_7 = arith.constant 0 : i32
    %7 = arith.index_cast %c0_i32_7 : i32 to index
    %c0_8 = arith.constant 0 : index
    %c0_9 = arith.constant 0 : index
    %8 = vector.load %arg1[%7, %c0_8, %c0_9] : memref<8x8x384xf32, #tpu.memory_space<vmem>>, vector<1x8x384xf32>
    %9 = vector.shape_cast %8 : vector<1x8x384xf32> to vector<8x384xf32>
    %cst = arith.constant dense<0.000000e+00> : vector<8x384xf32>
    %10 = tpu.matmul %6, %3, %cst {dimension_numbers = #tpu.dot_dimension_numbers<[1], [0], [0], [1], [0, 0, 1, 1], [], []>} : vector<8x128xf32>, vector<128x384xf32>, vector<8x384xf32> -> vector<8x384xf32>
    %11 = vector.extract_strided_slice %9 {offsets = [0, 0], sizes = [8, 128], strides = [1, 1]} : vector<8x384xf32> to vector<8x128xf32>
    %12 = vector.extract_strided_slice %10 {offsets = [0, 0], sizes = [8, 128], strides = [1, 1]} : vector<8x384xf32> to vector<8x128xf32>
    %13 = arith.addf %11, %12 : vector<8x128xf32>
    %14 = arith.negf %13 : vector<8x128xf32>
    %15 = math.exp %14 : vector<8x128xf32>
    %cst_10 = arith.constant 1.000000e+00 : f32
    %16 = vector.broadcast %cst_10 : f32 to vector<8x128xf32>
    %17 = arith.addf %16, %15 : vector<8x128xf32>
    %18 = arith.divf %16, %17 : vector<8x128xf32>
    %19 = vector.extract_strided_slice %9 {offsets = [0, 128], sizes = [8, 128], strides = [1, 1]} : vector<8x384xf32> to vector<8x128xf32>
    %20 = vector.extract_strided_slice %10 {offsets = [0, 128], sizes = [8, 128], strides = [1, 1]} : vector<8x384xf32> to vector<8x128xf32>
    %21 = arith.addf %19, %20 : vector<8x128xf32>
    %22 = arith.negf %21 : vector<8x128xf32>
    %23 = math.exp %22 : vector<8x128xf32>
    %cst_11 = arith.constant 1.000000e+00 : f32
    %24 = vector.broadcast %cst_11 : f32 to vector<8x128xf32>
    %25 = arith.addf %24, %23 : vector<8x128xf32>
    %26 = arith.divf %24, %25 : vector<8x128xf32>
    %27 = vector.extract_strided_slice %9 {offsets = [0, 256], sizes = [8, 128], strides = [1, 1]} : vector<8x384xf32> to vector<8x128xf32>
    %28 = vector.extract_strided_slice %10 {offsets = [0, 256], sizes = [8, 128], strides = [1, 1]} : vector<8x384xf32> to vector<8x128xf32>
    %29 = vector.broadcast %4 : vector<1x128xf32> to vector<8x128xf32>
    %30 = arith.addf %28, %29 : vector<8x128xf32>
    %31 = arith.mulf %18, %30 : vector<8x128xf32>
    %32 = arith.addf %27, %31 : vector<8x128xf32>
    %33 = math.tanh %32 : vector<8x128xf32>
    %cst_12 = arith.constant 1.000000e+00 : f32
    %34 = vector.broadcast %cst_12 : f32 to vector<8x128xf32>
    %35 = arith.subf %34, %26 : vector<8x128xf32>
    %36 = arith.mulf %35, %33 : vector<8x128xf32>
    %37 = arith.mulf %26, %6 : vector<8x128xf32>
    %38 = arith.addf %36, %37 : vector<8x128xf32>
    %39 = arith.index_cast %c0_i32_7 : i32 to index
    %c0_13 = arith.constant 0 : index
    %c0_14 = arith.constant 0 : index
    %40 = vector.load %arg10[%39, %c0_13, %c0_14] : memref<8x8x128xf32, #tpu.memory_space<vmem>>, vector<1x8x128xf32>
    %41 = vector.shape_cast %40 : vector<1x8x128xf32> to vector<8x128xf32>
    %42 = vector.shape_cast %38 : vector<8x128xf32> to vector<1x8x128xf32>
    tpu.vector_store %arg10[%39, %c0_13, %c0_14], %42 {strides = array<i32>} : memref<8x8x128xf32, #tpu.memory_space<vmem>>, vector<1x8x128xf32>,
    %c1_i32 = arith.constant 1 : i32
    %43 = arith.index_cast %c1_i32 : i32 to index
    %c0_15 = arith.constant 0 : index
    %c0_16 = arith.constant 0 : index
    %44 = vector.load %arg1[%43, %c0_15, %c0_16] : memref<8x8x384xf32, #tpu.memory_space<vmem>>, vector<1x8x384xf32>
    %45 = vector.shape_cast %44 : vector<1x8x384xf32> to vector<8x384xf32>
    %cst_17 = arith.constant dense<0.000000e+00> : vector<8x384xf32>
    %46 = tpu.matmul %38, %3, %cst_17 {dimension_numbers = #tpu.dot_dimension_numbers<[1], [0], [0], [1], [0, 0, 1, 1], [], []>} : vector<8x128xf32>, vector<128x384xf32>, vector<8x384xf32> -> vector<8x384xf32>
    %47 = vector.extract_strided_slice %45 {offsets = [0, 0], sizes = [8, 128], strides = [1, 1]} : vector<8x384xf32> to vector<8x128xf32>
    %48 = vector.extract_strided_slice %46 {offsets = [0, 0], sizes = [8, 128], strides = [1, 1]} : vector<8x384xf32> to vector<8x128xf32>
    %49 = arith.addf %47, %48 : vector<8x128xf32>
    %50 = arith.negf %49 : vector<8x128xf32>
    %51 = math.exp %50 : vector<8x128xf32>
    %cst_18 = arith.constant 1.000000e+00 : f32
    %52 = vector.broadcast %cst_18 : f32 to vector<8x128xf32>
    %53 = arith.addf %52, %51 : vector<8x128xf32>
    %54 = arith.divf %52, %53 : vector<8x128xf32>
    %55 = vector.extract_strided_slice %45 {offsets = [0, 128], sizes = [8, 128], strides = [1, 1]} : vector<8x384xf32> to vector<8x128xf32>
    %56 = vector.extract_strided_slice %46 {offsets = [0, 128], sizes = [8, 128], strides = [1, 1]} : vector<8x384xf32> to vector<8x128xf32>
    %57 = arith.addf %55, %56 : vector<8x128xf32>
    %58 = arith.negf %57 : vector<8x128xf32>
    %59 = math.exp %58 : vector<8x128xf32>
    %cst_19 = arith.constant 1.000000e+00 : f32
    %60 = vector.broadcast %cst_19 : f32 to vector<8x128xf32>
    %61 = arith.addf %60, %59 : vector<8x128xf32>
    %62 = arith.divf %60, %61 : vector<8x128xf32>
    %63 = vector.extract_strided_slice %45 {offsets = [0, 256], sizes = [8, 128], strides = [1, 1]} : vector<8x384xf32> to vector<8x128xf32>
    %64 = vector.extract_strided_slice %46 {offsets = [0, 256], sizes = [8, 128], strides = [1, 1]} : vector<8x384xf32> to vector<8x128xf32>
    %65 = vector.broadcast %4 : vector<1x128xf32> to vector<8x128xf32>
    %66 = arith.addf %64, %65 : vector<8x128xf32>
    %67 = arith.mulf %54, %66 : vector<8x128xf32>
    %68 = arith.addf %63, %67 : vector<8x128xf32>
    %69 = math.tanh %68 : vector<8x128xf32>
    %cst_20 = arith.constant 1.000000e+00 : f32
    %70 = vector.broadcast %cst_20 : f32 to vector<8x128xf32>
    %71 = arith.subf %70, %62 : vector<8x128xf32>
    %72 = arith.mulf %71, %69 : vector<8x128xf32>
    %73 = arith.mulf %62, %38 : vector<8x128xf32>
    %74 = arith.addf %72, %73 : vector<8x128xf32>
    %75 = arith.index_cast %c1_i32 : i32 to index
    %c0_21 = arith.constant 0 : index
    %c0_22 = arith.constant 0 : index
    %76 = vector.load %arg10[%75, %c0_21, %c0_22] : memref<8x8x128xf32, #tpu.memory_space<vmem>>, vector<1x8x128xf32>
    %77 = vector.shape_cast %76 : vector<1x8x128xf32> to vector<8x128xf32>
    %78 = vector.shape_cast %74 : vector<8x128xf32> to vector<1x8x128xf32>
    tpu.vector_store %arg10[%75, %c0_21, %c0_22], %78 {strides = array<i32>} : memref<8x8x128xf32, #tpu.memory_space<vmem>>, vector<1x8x128xf32>,
    %c2_i32 = arith.constant 2 : i32
    %79 = arith.index_cast %c2_i32 : i32 to index
    %c0_23 = arith.constant 0 : index
    %c0_24 = arith.constant 0 : index
    %80 = vector.load %arg1[%79, %c0_23, %c0_24] : memref<8x8x384xf32, #tpu.memory_space<vmem>>, vector<1x8x384xf32>
    %81 = vector.shape_cast %80 : vector<1x8x384xf32> to vector<8x384xf32>
    %cst_25 = arith.constant dense<0.000000e+00> : vector<8x384xf32>
    %82 = tpu.matmul %74, %3, %cst_25 {dimension_numbers = #tpu.dot_dimension_numbers<[1], [0], [0], [1], [0, 0, 1, 1], [], []>} : vector<8x128xf32>, vector<128x384xf32>, vector<8x384xf32> -> vector<8x384xf32>
    %83 = vector.extract_strided_slice %81 {offsets = [0, 0], sizes = [8, 128], strides = [1, 1]} : vector<8x384xf32> to vector<8x128xf32>
    %84 = vector.extract_strided_slice %82 {offsets = [0, 0], sizes = [8, 128], strides = [1, 1]} : vector<8x384xf32> to vector<8x128xf32>
    %85 = arith.addf %83, %84 : vector<8x128xf32>
    %86 = arith.negf %85 : vector<8x128xf32>
    %87 = math.exp %86 : vector<8x128xf32>
    %cst_26 = arith.constant 1.000000e+00 : f32
    %88 = vector.broadcast %cst_26 : f32 to vector<8x128xf32>
    %89 = arith.addf %88, %87 : vector<8x128xf32>
    %90 = arith.divf %88, %89 : vector<8x128xf32>
    %91 = vector.extract_strided_slice %81 {offsets = [0, 128], sizes = [8, 128], strides = [1, 1]} : vector<8x384xf32> to vector<8x128xf32>
    %92 = vector.extract_strided_slice %82 {offsets = [0, 128], sizes = [8, 128], strides = [1, 1]} : vector<8x384xf32> to vector<8x128xf32>
    %93 = arith.addf %91, %92 : vector<8x128xf32>
    %94 = arith.negf %93 : vector<8x128xf32>
    %95 = math.exp %94 : vector<8x128xf32>
    %cst_27 = arith.constant 1.000000e+00 : f32
    %96 = vector.broadcast %cst_27 : f32 to vector<8x128xf32>
    %97 = arith.addf %96, %95 : vector<8x128xf32>
    %98 = arith.divf %96, %97 : vector<8x128xf32>
    %99 = vector.extract_strided_slice %81 {offsets = [0, 256], sizes = [8, 128], strides = [1, 1]} : vector<8x384xf32> to vector<8x128xf32>
    %100 = vector.extract_strided_slice %82 {offsets = [0, 256], sizes = [8, 128], strides = [1, 1]} : vector<8x384xf32> to vector<8x128xf32>
    %101 = vector.broadcast %4 : vector<1x128xf32> to vector<8x128xf32>
    %102 = arith.addf %100, %101 : vector<8x128xf32>
    %103 = arith.mulf %90, %102 : vector<8x128xf32>
    %104 = arith.addf %99, %103 : vector<8x128xf32>
    %105 = math.tanh %104 : vector<8x128xf32>
    %cst_28 = arith.constant 1.000000e+00 : f32
    %106 = vector.broadcast %cst_28 : f32 to vector<8x128xf32>
    %107 = arith.subf %106, %98 : vector<8x128xf32>
    %108 = arith.mulf %107, %105 : vector<8x128xf32>
    %109 = arith.mulf %98, %74 : vector<8x128xf32>
    %110 = arith.addf %108, %109 : vector<8x128xf32>
    %111 = arith.index_cast %c2_i32 : i32 to index
    %c0_29 = arith.constant 0 : index
    %c0_30 = arith.constant 0 : index
    %112 = vector.load %arg10[%111, %c0_29, %c0_30] : memref<8x8x128xf32, #tpu.memory_space<vmem>>, vector<1x8x128xf32>
    %113 = vector.shape_cast %112 : vector<1x8x128xf32> to vector<8x128xf32>
    %114 = vector.shape_cast %110 : vector<8x128xf32> to vector<1x8x128xf32>
    tpu.vector_store %arg10[%111, %c0_29, %c0_30], %114 {strides = array<i32>} : memref<8x8x128xf32, #tpu.memory_space<vmem>>, vector<1x8x128xf32>,
    %c3_i32 = arith.constant 3 : i32
    %115 = arith.index_cast %c3_i32 : i32 to index
    %c0_31 = arith.constant 0 : index
    %c0_32 = arith.constant 0 : index
    %116 = vector.load %arg1[%115, %c0_31, %c0_32] : memref<8x8x384xf32, #tpu.memory_space<vmem>>, vector<1x8x384xf32>
    %117 = vector.shape_cast %116 : vector<1x8x384xf32> to vector<8x384xf32>
    %cst_33 = arith.constant dense<0.000000e+00> : vector<8x384xf32>
    %118 = tpu.matmul %110, %3, %cst_33 {dimension_numbers = #tpu.dot_dimension_numbers<[1], [0], [0], [1], [0, 0, 1, 1], [], []>} : vector<8x128xf32>, vector<128x384xf32>, vector<8x384xf32> -> vector<8x384xf32>
    %119 = vector.extract_strided_slice %117 {offsets = [0, 0], sizes = [8, 128], strides = [1, 1]} : vector<8x384xf32> to vector<8x128xf32>
    %120 = vector.extract_strided_slice %118 {offsets = [0, 0], sizes = [8, 128], strides = [1, 1]} : vector<8x384xf32> to vector<8x128xf32>
    %121 = arith.addf %119, %120 : vector<8x128xf32>
    %122 = arith.negf %121 : vector<8x128xf32>
    %123 = math.exp %122 : vector<8x128xf32>
    %cst_34 = arith.constant 1.000000e+00 : f32
    %124 = vector.broadcast %cst_34 : f32 to vector<8x128xf32>
    %125 = arith.addf %124, %123 : vector<8x128xf32>
    %126 = arith.divf %124, %125 : vector<8x128xf32>
    %127 = vector.extract_strided_slice %117 {offsets = [0, 128], sizes = [8, 128], strides = [1, 1]} : vector<8x384xf32> to vector<8x128xf32>
    %128 = vector.extract_strided_slice %118 {offsets = [0, 128], sizes = [8, 128], strides = [1, 1]} : vector<8x384xf32> to vector<8x128xf32>
    %129 = arith.addf %127, %128 : vector<8x128xf32>
    %130 = arith.negf %129 : vector<8x128xf32>
    %131 = math.exp %130 : vector<8x128xf32>
    %cst_35 = arith.constant 1.000000e+00 : f32
    %132 = vector.broadcast %cst_35 : f32 to vector<8x128xf32>
    %133 = arith.addf %132, %131 : vector<8x128xf32>
    %134 = arith.divf %132, %133 : vector<8x128xf32>
    %135 = vector.extract_strided_slice %117 {offsets = [0, 256], sizes = [8, 128], strides = [1, 1]} : vector<8x384xf32> to vector<8x128xf32>
    %136 = vector.extract_strided_slice %118 {offsets = [0, 256], sizes = [8, 128], strides = [1, 1]} : vector<8x384xf32> to vector<8x128xf32>
    %137 = vector.broadcast %4 : vector<1x128xf32> to vector<8x128xf32>
    %138 = arith.addf %136, %137 : vector<8x128xf32>
    %139 = arith.mulf %126, %138 : vector<8x128xf32>
    %140 = arith.addf %135, %139 : vector<8x128xf32>
    %141 = math.tanh %140 : vector<8x128xf32>
    %cst_36 = arith.constant 1.000000e+00 : f32
    %142 = vector.broadcast %cst_36 : f32 to vector<8x128xf32>
    %143 = arith.subf %142, %134 : vector<8x128xf32>
    %144 = arith.mulf %143, %141 : vector<8x128xf32>
    %145 = arith.mulf %134, %110 : vector<8x128xf32>
    %146 = arith.addf %144, %145 : vector<8x128xf32>
    %147 = arith.index_cast %c3_i32 : i32 to index
    %c0_37 = arith.constant 0 : index
    %c0_38 = arith.constant 0 : index
    %148 = vector.load %arg10[%147, %c0_37, %c0_38] : memref<8x8x128xf32, #tpu.memory_space<vmem>>, vector<1x8x128xf32>
    %149 = vector.shape_cast %148 : vector<1x8x128xf32> to vector<8x128xf32>
    %150 = vector.shape_cast %146 : vector<8x128xf32> to vector<1x8x128xf32>
    tpu.vector_store %arg10[%147, %c0_37, %c0_38], %150 {strides = array<i32>} : memref<8x8x128xf32, #tpu.memory_space<vmem>>, vector<1x8x128xf32>,
    %c4_i32 = arith.constant 4 : i32
    %151 = arith.index_cast %c4_i32 : i32 to index
    %c0_39 = arith.constant 0 : index
    %c0_40 = arith.constant 0 : index
    %152 = vector.load %arg1[%151, %c0_39, %c0_40] : memref<8x8x384xf32, #tpu.memory_space<vmem>>, vector<1x8x384xf32>
    %153 = vector.shape_cast %152 : vector<1x8x384xf32> to vector<8x384xf32>
    %cst_41 = arith.constant dense<0.000000e+00> : vector<8x384xf32>
    %154 = tpu.matmul %146, %3, %cst_41 {dimension_numbers = #tpu.dot_dimension_numbers<[1], [0], [0], [1], [0, 0, 1, 1], [], []>} : vector<8x128xf32>, vector<128x384xf32>, vector<8x384xf32> -> vector<8x384xf32>
    %155 = vector.extract_strided_slice %153 {offsets = [0, 0], sizes = [8, 128], strides = [1, 1]} : vector<8x384xf32> to vector<8x128xf32>
    %156 = vector.extract_strided_slice %154 {offsets = [0, 0], sizes = [8, 128], strides = [1, 1]} : vector<8x384xf32> to vector<8x128xf32>
    %157 = arith.addf %155, %156 : vector<8x128xf32>
    %158 = arith.negf %157 : vector<8x128xf32>
    %159 = math.exp %158 : vector<8x128xf32>
    %cst_42 = arith.constant 1.000000e+00 : f32
    %160 = vector.broadcast %cst_42 : f32 to vector<8x128xf32>
    %161 = arith.addf %160, %159 : vector<8x128xf32>
    %162 = arith.divf %160, %161 : vector<8x128xf32>
    %163 = vector.extract_strided_slice %153 {offsets = [0, 128], sizes = [8, 128], strides = [1, 1]} : vector<8x384xf32> to vector<8x128xf32>
    %164 = vector.extract_strided_slice %154 {offsets = [0, 128], sizes = [8, 128], strides = [1, 1]} : vector<8x384xf32> to vector<8x128xf32>
    %165 = arith.addf %163, %164 : vector<8x128xf32>
    %166 = arith.negf %165 : vector<8x128xf32>
    %167 = math.exp %166 : vector<8x128xf32>
    %cst_43 = arith.constant 1.000000e+00 : f32
    %168 = vector.broadcast %cst_43 : f32 to vector<8x128xf32>
    %169 = arith.addf %168, %167 : vector<8x128xf32>
    %170 = arith.divf %168, %169 : vector<8x128xf32>
    %171 = vector.extract_strided_slice %153 {offsets = [0, 256], sizes = [8, 128], strides = [1, 1]} : vector<8x384xf32> to vector<8x128xf32>
    %172 = vector.extract_strided_slice %154 {offsets = [0, 256], sizes = [8, 128], strides = [1, 1]} : vector<8x384xf32> to vector<8x128xf32>
    %173 = vector.broadcast %4 : vector<1x128xf32> to vector<8x128xf32>
    %174 = arith.addf %172, %173 : vector<8x128xf32>
    %175 = arith.mulf %162, %174 : vector<8x128xf32>
    %176 = arith.addf %171, %175 : vector<8x128xf32>
    %177 = math.tanh %176 : vector<8x128xf32>
    %cst_44 = arith.constant 1.000000e+00 : f32
    %178 = vector.broadcast %cst_44 : f32 to vector<8x128xf32>
    %179 = arith.subf %178, %170 : vector<8x128xf32>
    %180 = arith.mulf %179, %177 : vector<8x128xf32>
    %181 = arith.mulf %170, %146 : vector<8x128xf32>
    %182 = arith.addf %180, %181 : vector<8x128xf32>
    %183 = arith.index_cast %c4_i32 : i32 to index
    %c0_45 = arith.constant 0 : index
    %c0_46 = arith.constant 0 : index
    %184 = vector.load %arg10[%183, %c0_45, %c0_46] : memref<8x8x128xf32, #tpu.memory_space<vmem>>, vector<1x8x128xf32>
    %185 = vector.shape_cast %184 : vector<1x8x128xf32> to vector<8x128xf32>
    %186 = vector.shape_cast %182 : vector<8x128xf32> to vector<1x8x128xf32>
    tpu.vector_store %arg10[%183, %c0_45, %c0_46], %186 {strides = array<i32>} : memref<8x8x128xf32, #tpu.memory_space<vmem>>, vector<1x8x128xf32>,
    %c5_i32 = arith.constant 5 : i32
    %187 = arith.index_cast %c5_i32 : i32 to index
    %c0_47 = arith.constant 0 : index
    %c0_48 = arith.constant 0 : index
    %188 = vector.load %arg1[%187, %c0_47, %c0_48] : memref<8x8x384xf32, #tpu.memory_space<vmem>>, vector<1x8x384xf32>
    %189 = vector.shape_cast %188 : vector<1x8x384xf32> to vector<8x384xf32>
    %cst_49 = arith.constant dense<0.000000e+00> : vector<8x384xf32>
    %190 = tpu.matmul %182, %3, %cst_49 {dimension_numbers = #tpu.dot_dimension_numbers<[1], [0], [0], [1], [0, 0, 1, 1], [], []>} : vector<8x128xf32>, vector<128x384xf32>, vector<8x384xf32> -> vector<8x384xf32>
    %191 = vector.extract_strided_slice %189 {offsets = [0, 0], sizes = [8, 128], strides = [1, 1]} : vector<8x384xf32> to vector<8x128xf32>
    %192 = vector.extract_strided_slice %190 {offsets = [0, 0], sizes = [8, 128], strides = [1, 1]} : vector<8x384xf32> to vector<8x128xf32>
    %193 = arith.addf %191, %192 : vector<8x128xf32>
    %194 = arith.negf %193 : vector<8x128xf32>
    %195 = math.exp %194 : vector<8x128xf32>
    %cst_50 = arith.constant 1.000000e+00 : f32
    %196 = vector.broadcast %cst_50 : f32 to vector<8x128xf32>
    %197 = arith.addf %196, %195 : vector<8x128xf32>
    %198 = arith.divf %196, %197 : vector<8x128xf32>
    %199 = vector.extract_strided_slice %189 {offsets = [0, 128], sizes = [8, 128], strides = [1, 1]} : vector<8x384xf32> to vector<8x128xf32>
    %200 = vector.extract_strided_slice %190 {offsets = [0, 128], sizes = [8, 128], strides = [1, 1]} : vector<8x384xf32> to vector<8x128xf32>
    %201 = arith.addf %199, %200 : vector<8x128xf32>
    %202 = arith.negf %201 : vector<8x128xf32>
    %203 = math.exp %202 : vector<8x128xf32>
    %cst_51 = arith.constant 1.000000e+00 : f32
    %204 = vector.broadcast %cst_51 : f32 to vector<8x128xf32>
    %205 = arith.addf %204, %203 : vector<8x128xf32>
    %206 = arith.divf %204, %205 : vector<8x128xf32>
    %207 = vector.extract_strided_slice %189 {offsets = [0, 256], sizes = [8, 128], strides = [1, 1]} : vector<8x384xf32> to vector<8x128xf32>
    %208 = vector.extract_strided_slice %190 {offsets = [0, 256], sizes = [8, 128], strides = [1, 1]} : vector<8x384xf32> to vector<8x128xf32>
    %209 = vector.broadcast %4 : vector<1x128xf32> to vector<8x128xf32>
    %210 = arith.addf %208, %209 : vector<8x128xf32>
    %211 = arith.mulf %198, %210 : vector<8x128xf32>
    %212 = arith.addf %207, %211 : vector<8x128xf32>
    %213 = math.tanh %212 : vector<8x128xf32>
    %cst_52 = arith.constant 1.000000e+00 : f32
    %214 = vector.broadcast %cst_52 : f32 to vector<8x128xf32>
    %215 = arith.subf %214, %206 : vector<8x128xf32>
    %216 = arith.mulf %215, %213 : vector<8x128xf32>
    %217 = arith.mulf %206, %182 : vector<8x128xf32>
    %218 = arith.addf %216, %217 : vector<8x128xf32>
    %219 = arith.index_cast %c5_i32 : i32 to index
    %c0_53 = arith.constant 0 : index
    %c0_54 = arith.constant 0 : index
    %220 = vector.load %arg10[%219, %c0_53, %c0_54] : memref<8x8x128xf32, #tpu.memory_space<vmem>>, vector<1x8x128xf32>
    %221 = vector.shape_cast %220 : vector<1x8x128xf32> to vector<8x128xf32>
    %222 = vector.shape_cast %218 : vector<8x128xf32> to vector<1x8x128xf32>
    tpu.vector_store %arg10[%219, %c0_53, %c0_54], %222 {strides = array<i32>} : memref<8x8x128xf32, #tpu.memory_space<vmem>>, vector<1x8x128xf32>,
    %c6_i32 = arith.constant 6 : i32
    %223 = arith.index_cast %c6_i32 : i32 to index
    %c0_55 = arith.constant 0 : index
    %c0_56 = arith.constant 0 : index
    %224 = vector.load %arg1[%223, %c0_55, %c0_56] : memref<8x8x384xf32, #tpu.memory_space<vmem>>, vector<1x8x384xf32>
    %225 = vector.shape_cast %224 : vector<1x8x384xf32> to vector<8x384xf32>
    %cst_57 = arith.constant dense<0.000000e+00> : vector<8x384xf32>
    %226 = tpu.matmul %218, %3, %cst_57 {dimension_numbers = #tpu.dot_dimension_numbers<[1], [0], [0], [1], [0, 0, 1, 1], [], []>} : vector<8x128xf32>, vector<128x384xf32>, vector<8x384xf32> -> vector<8x384xf32>
    %227 = vector.extract_strided_slice %225 {offsets = [0, 0], sizes = [8, 128], strides = [1, 1]} : vector<8x384xf32> to vector<8x128xf32>
    %228 = vector.extract_strided_slice %226 {offsets = [0, 0], sizes = [8, 128], strides = [1, 1]} : vector<8x384xf32> to vector<8x128xf32>
    %229 = arith.addf %227, %228 : vector<8x128xf32>
    %230 = arith.negf %229 : vector<8x128xf32>
    %231 = math.exp %230 : vector<8x128xf32>
    %cst_58 = arith.constant 1.000000e+00 : f32
    %232 = vector.broadcast %cst_58 : f32 to vector<8x128xf32>
    %233 = arith.addf %232, %231 : vector<8x128xf32>
    %234 = arith.divf %232, %233 : vector<8x128xf32>
    %235 = vector.extract_strided_slice %225 {offsets = [0, 128], sizes = [8, 128], strides = [1, 1]} : vector<8x384xf32> to vector<8x128xf32>
    %236 = vector.extract_strided_slice %226 {offsets = [0, 128], sizes = [8, 128], strides = [1, 1]} : vector<8x384xf32> to vector<8x128xf32>
    %237 = arith.addf %235, %236 : vector<8x128xf32>
    %238 = arith.negf %237 : vector<8x128xf32>
    %239 = math.exp %238 : vector<8x128xf32>
    %cst_59 = arith.constant 1.000000e+00 : f32
    %240 = vector.broadcast %cst_59 : f32 to vector<8x128xf32>
    %241 = arith.addf %240, %239 : vector<8x128xf32>
    %242 = arith.divf %240, %241 : vector<8x128xf32>
    %243 = vector.extract_strided_slice %225 {offsets = [0, 256], sizes = [8, 128], strides = [1, 1]} : vector<8x384xf32> to vector<8x128xf32>
    %244 = vector.extract_strided_slice %226 {offsets = [0, 256], sizes = [8, 128], strides = [1, 1]} : vector<8x384xf32> to vector<8x128xf32>
    %245 = vector.broadcast %4 : vector<1x128xf32> to vector<8x128xf32>
    %246 = arith.addf %244, %245 : vector<8x128xf32>
    %247 = arith.mulf %234, %246 : vector<8x128xf32>
    %248 = arith.addf %243, %247 : vector<8x128xf32>
    %249 = math.tanh %248 : vector<8x128xf32>
    %cst_60 = arith.constant 1.000000e+00 : f32
    %250 = vector.broadcast %cst_60 : f32 to vector<8x128xf32>
    %251 = arith.subf %250, %242 : vector<8x128xf32>
    %252 = arith.mulf %251, %249 : vector<8x128xf32>
    %253 = arith.mulf %242, %218 : vector<8x128xf32>
    %254 = arith.addf %252, %253 : vector<8x128xf32>
    %255 = arith.index_cast %c6_i32 : i32 to index
    %c0_61 = arith.constant 0 : index
    %c0_62 = arith.constant 0 : index
    %256 = vector.load %arg10[%255, %c0_61, %c0_62] : memref<8x8x128xf32, #tpu.memory_space<vmem>>, vector<1x8x128xf32>
    %257 = vector.shape_cast %256 : vector<1x8x128xf32> to vector<8x128xf32>
    %258 = vector.shape_cast %254 : vector<8x128xf32> to vector<1x8x128xf32>
    tpu.vector_store %arg10[%255, %c0_61, %c0_62], %258 {strides = array<i32>} : memref<8x8x128xf32, #tpu.memory_space<vmem>>, vector<1x8x128xf32>,
    %c7_i32 = arith.constant 7 : i32
    %259 = arith.index_cast %c7_i32 : i32 to index
    %c0_63 = arith.constant 0 : index
    %c0_64 = arith.constant 0 : index
    %260 = vector.load %arg1[%259, %c0_63, %c0_64] : memref<8x8x384xf32, #tpu.memory_space<vmem>>, vector<1x8x384xf32>
    %261 = vector.shape_cast %260 : vector<1x8x384xf32> to vector<8x384xf32>
    %cst_65 = arith.constant dense<0.000000e+00> : vector<8x384xf32>
    %262 = tpu.matmul %254, %3, %cst_65 {dimension_numbers = #tpu.dot_dimension_numbers<[1], [0], [0], [1], [0, 0, 1, 1], [], []>} : vector<8x128xf32>, vector<128x384xf32>, vector<8x384xf32> -> vector<8x384xf32>
    %263 = vector.extract_strided_slice %261 {offsets = [0, 0], sizes = [8, 128], strides = [1, 1]} : vector<8x384xf32> to vector<8x128xf32>
    %264 = vector.extract_strided_slice %262 {offsets = [0, 0], sizes = [8, 128], strides = [1, 1]} : vector<8x384xf32> to vector<8x128xf32>
    %265 = arith.addf %263, %264 : vector<8x128xf32>
    %266 = arith.negf %265 : vector<8x128xf32>
    %267 = math.exp %266 : vector<8x128xf32>
    %cst_66 = arith.constant 1.000000e+00 : f32
    %268 = vector.broadcast %cst_66 : f32 to vector<8x128xf32>
    %269 = arith.addf %268, %267 : vector<8x128xf32>
    %270 = arith.divf %268, %269 : vector<8x128xf32>
    %271 = vector.extract_strided_slice %261 {offsets = [0, 128], sizes = [8, 128], strides = [1, 1]} : vector<8x384xf32> to vector<8x128xf32>
    %272 = vector.extract_strided_slice %262 {offsets = [0, 128], sizes = [8, 128], strides = [1, 1]} : vector<8x384xf32> to vector<8x128xf32>
    %273 = arith.addf %271, %272 : vector<8x128xf32>
    %274 = arith.negf %273 : vector<8x128xf32>
    %275 = math.exp %274 : vector<8x128xf32>
    %cst_67 = arith.constant 1.000000e+00 : f32
    %276 = vector.broadcast %cst_67 : f32 to vector<8x128xf32>
    %277 = arith.addf %276, %275 : vector<8x128xf32>
    %278 = arith.divf %276, %277 : vector<8x128xf32>
    %279 = vector.extract_strided_slice %261 {offsets = [0, 256], sizes = [8, 128], strides = [1, 1]} : vector<8x384xf32> to vector<8x128xf32>
    %280 = vector.extract_strided_slice %262 {offsets = [0, 256], sizes = [8, 128], strides = [1, 1]} : vector<8x384xf32> to vector<8x128xf32>
    %281 = vector.broadcast %4 : vector<1x128xf32> to vector<8x128xf32>
    %282 = arith.addf %280, %281 : vector<8x128xf32>
    %283 = arith.mulf %270, %282 : vector<8x128xf32>
    %284 = arith.addf %279, %283 : vector<8x128xf32>
    %285 = math.tanh %284 : vector<8x128xf32>
    %cst_68 = arith.constant 1.000000e+00 : f32
    %286 = vector.broadcast %cst_68 : f32 to vector<8x128xf32>
    %287 = arith.subf %286, %278 : vector<8x128xf32>
    %288 = arith.mulf %287, %285 : vector<8x128xf32>
    %289 = arith.mulf %278, %254 : vector<8x128xf32>
    %290 = arith.addf %288, %289 : vector<8x128xf32>
    %291 = arith.index_cast %c7_i32 : i32 to index
    %c0_69 = arith.constant 0 : index
    %c0_70 = arith.constant 0 : index
    %292 = vector.load %arg10[%291, %c0_69, %c0_70] : memref<8x8x128xf32, #tpu.memory_space<vmem>>, vector<1x8x128xf32>
    %293 = vector.shape_cast %292 : vector<1x8x128xf32> to vector<8x128xf32>
    %294 = vector.shape_cast %290 : vector<8x128xf32> to vector<1x8x128xf32>
    tpu.vector_store %arg10[%291, %c0_69, %c0_70], %294 {strides = array<i32>} : memref<8x8x128xf32, #tpu.memory_space<vmem>>, vector<1x8x128xf32>,
    %c8_i32 = arith.constant 8 : i32
    %c0_71 = arith.constant 0 : index
    %c0_72 = arith.constant 0 : index
    %c0_73 = arith.constant 0 : index
    %295 = vector.load %arg9[%c0_71, %c0_72, %c0_73] : memref<2x8x128xf32, #tpu.memory_space<vmem>>, vector<1x8x128xf32>
    %296 = vector.shape_cast %295 : vector<1x8x128xf32> to vector<8x128xf32>
    %297 = vector.shape_cast %290 : vector<8x128xf32> to vector<1x8x128xf32>
    tpu.vector_store %arg9[%c0_71, %c0_72, %c0_73], %297 {strides = array<i32>} : memref<2x8x128xf32, #tpu.memory_space<vmem>>, vector<1x8x128xf32>,
    %c0_74 = arith.constant 0 : index
    %c0_75 = arith.constant 0 : index
    %c0_76 = arith.constant 0 : index
    %298 = vector.load %arg10[%c0_74, %c0_75, %c0_76] : memref<8x8x128xf32, #tpu.memory_space<vmem>>, vector<8x8x128xf32>
    %299 = vector.shape_cast %298 : vector<8x8x128xf32> to vector<64x128xf32>
    %c0_77 = arith.constant 0 : index
    %c0_78 = arith.constant 0 : index
    %300 = vector.load %arg4[%c0_77, %c0_78] : memref<128x384xf32, #tpu.memory_space<vmem>>, vector<128x384xf32>
    %cst_79 = arith.constant dense<0.000000e+00> : vector<64x384xf32>
    %301 = tpu.matmul %299, %300, %cst_79 {dimension_numbers = #tpu.dot_dimension_numbers<[1], [0], [0], [1], [0, 0, 1, 1], [], []>} : vector<64x128xf32>, vector<128x384xf32>, vector<64x384xf32> -> vector<64x384xf32>
    %c0_80 = arith.constant 0 : index
    %c0_81 = arith.constant 0 : index
    %302 = vector.load %arg5[%c0_80, %c0_81] : memref<1x384xf32, #tpu.memory_space<vmem>>, vector<1x384xf32>
    %303 = vector.broadcast %302 : vector<1x384xf32> to vector<64x384xf32>
    %304 = arith.addf %301, %303 : vector<64x384xf32>
    %305 = vector.shape_cast %304 : vector<64x384xf32> to vector<8x8x384xf32>
    %c0_82 = arith.constant 0 : index
    %c0_83 = arith.constant 0 : index
    %c0_84 = arith.constant 0 : index
    %306 = vector.load %arg11[%c0_82, %c0_83, %c0_84] : memref<8x8x384xf32, #tpu.memory_space<vmem>>, vector<8x8x384xf32>
    tpu.vector_store %arg11[%c0_82, %c0_83, %c0_84], %305 {strides = array<i32>} : memref<8x8x384xf32, #tpu.memory_space<vmem>>, vector<8x8x384xf32>,
    %c0_85 = arith.constant 0 : index
    %c0_86 = arith.constant 0 : index
    %307 = vector.load %arg6[%c0_85, %c0_86] : memref<128x384xf32, #tpu.memory_space<vmem>>, vector<128x384xf32>
    %c0_87 = arith.constant 0 : index
    %c0_88 = arith.constant 0 : index
    %308 = vector.load %arg7[%c0_87, %c0_88] : memref<1x128xf32, #tpu.memory_space<vmem>>, vector<1x128xf32>
    %c1 = arith.constant 1 : index
    %c0_89 = arith.constant 0 : index
    %c0_90 = arith.constant 0 : index
    %309 = vector.load %arg9[%c1, %c0_89, %c0_90] : memref<2x8x128xf32, #tpu.memory_space<vmem>>, vector<1x8x128xf32>
    %310 = vector.shape_cast %309 : vector<1x8x128xf32> to vector<8x128xf32>
    %c0_i32_91 = arith.constant 0 : i32
    %311 = arith.index_cast %c0_i32_91 : i32 to index
    %c0_92 = arith.constant 0 : index
    %c0_93 = arith.constant 0 : index
    %312 = vector.load %arg11[%311, %c0_92, %c0_93] : memref<8x8x384xf32, #tpu.memory_space<vmem>>, vector<1x8x384xf32>
    %313 = vector.shape_cast %312 : vector<1x8x384xf32> to vector<8x384xf32>
    %cst_94 = arith.constant dense<0.000000e+00> : vector<8x384xf32>
    %314 = tpu.matmul %310, %307, %cst_94 {dimension_numbers = #tpu.dot_dimension_numbers<[1], [0], [0], [1], [0, 0, 1, 1], [], []>} : vector<8x128xf32>, vector<128x384xf32>, vector<8x384xf32> -> vector<8x384xf32>
    %315 = vector.extract_strided_slice %313 {offsets = [0, 0], sizes = [8, 128], strides = [1, 1]} : vector<8x384xf32> to vector<8x128xf32>
    %316 = vector.extract_strided_slice %314 {offsets = [0, 0], sizes = [8, 128], strides = [1, 1]} : vector<8x384xf32> to vector<8x128xf32>
    %317 = arith.addf %315, %316 : vector<8x128xf32>
    %318 = arith.negf %317 : vector<8x128xf32>
    %319 = math.exp %318 : vector<8x128xf32>
    %cst_95 = arith.constant 1.000000e+00 : f32
    %320 = vector.broadcast %cst_95 : f32 to vector<8x128xf32>
    %321 = arith.addf %320, %319 : vector<8x128xf32>
    %322 = arith.divf %320, %321 : vector<8x128xf32>
    %323 = vector.extract_strided_slice %313 {offsets = [0, 128], sizes = [8, 128], strides = [1, 1]} : vector<8x384xf32> to vector<8x128xf32>
    %324 = vector.extract_strided_slice %314 {offsets = [0, 128], sizes = [8, 128], strides = [1, 1]} : vector<8x384xf32> to vector<8x128xf32>
    %325 = arith.addf %323, %324 : vector<8x128xf32>
    %326 = arith.negf %325 : vector<8x128xf32>
    %327 = math.exp %326 : vector<8x128xf32>
    %cst_96 = arith.constant 1.000000e+00 : f32
    %328 = vector.broadcast %cst_96 : f32 to vector<8x128xf32>
    %329 = arith.addf %328, %327 : vector<8x128xf32>
    %330 = arith.divf %328, %329 : vector<8x128xf32>
    %331 = vector.extract_strided_slice %313 {offsets = [0, 256], sizes = [8, 128], strides = [1, 1]} : vector<8x384xf32> to vector<8x128xf32>
    %332 = vector.extract_strided_slice %314 {offsets = [0, 256], sizes = [8, 128], strides = [1, 1]} : vector<8x384xf32> to vector<8x128xf32>
    %333 = vector.broadcast %308 : vector<1x128xf32> to vector<8x128xf32>
    %334 = arith.addf %332, %333 : vector<8x128xf32>
    %335 = arith.mulf %322, %334 : vector<8x128xf32>
    %336 = arith.addf %331, %335 : vector<8x128xf32>
    %337 = math.tanh %336 : vector<8x128xf32>
    %cst_97 = arith.constant 1.000000e+00 : f32
    %338 = vector.broadcast %cst_97 : f32 to vector<8x128xf32>
    %339 = arith.subf %338, %330 : vector<8x128xf32>
    %340 = arith.mulf %339, %337 : vector<8x128xf32>
    %341 = arith.mulf %330, %310 : vector<8x128xf32>
    %342 = arith.addf %340, %341 : vector<8x128xf32>
    %c1_i32_98 = arith.constant 1 : i32
    %343 = arith.index_cast %c1_i32_98 : i32 to index
    %c0_99 = arith.constant 0 : index
    %c0_100 = arith.constant 0 : index
    %344 = vector.load %arg11[%343, %c0_99, %c0_100] : memref<8x8x384xf32, #tpu.memory_space<vmem>>, vector<1x8x384xf32>
    %345 = vector.shape_cast %344 : vector<1x8x384xf32> to vector<8x384xf32>
    %cst_101 = arith.constant dense<0.000000e+00> : vector<8x384xf32>
    %346 = tpu.matmul %342, %307, %cst_101 {dimension_numbers = #tpu.dot_dimension_numbers<[1], [0], [0], [1], [0, 0, 1, 1], [], []>} : vector<8x128xf32>, vector<128x384xf32>, vector<8x384xf32> -> vector<8x384xf32>
    %347 = vector.extract_strided_slice %345 {offsets = [0, 0], sizes = [8, 128], strides = [1, 1]} : vector<8x384xf32> to vector<8x128xf32>
    %348 = vector.extract_strided_slice %346 {offsets = [0, 0], sizes = [8, 128], strides = [1, 1]} : vector<8x384xf32> to vector<8x128xf32>
    %349 = arith.addf %347, %348 : vector<8x128xf32>
    %350 = arith.negf %349 : vector<8x128xf32>
    %351 = math.exp %350 : vector<8x128xf32>
    %cst_102 = arith.constant 1.000000e+00 : f32
    %352 = vector.broadcast %cst_102 : f32 to vector<8x128xf32>
    %353 = arith.addf %352, %351 : vector<8x128xf32>
    %354 = arith.divf %352, %353 : vector<8x128xf32>
    %355 = vector.extract_strided_slice %345 {offsets = [0, 128], sizes = [8, 128], strides = [1, 1]} : vector<8x384xf32> to vector<8x128xf32>
    %356 = vector.extract_strided_slice %346 {offsets = [0, 128], sizes = [8, 128], strides = [1, 1]} : vector<8x384xf32> to vector<8x128xf32>
    %357 = arith.addf %355, %356 : vector<8x128xf32>
    %358 = arith.negf %357 : vector<8x128xf32>
    %359 = math.exp %358 : vector<8x128xf32>
    %cst_103 = arith.constant 1.000000e+00 : f32
    %360 = vector.broadcast %cst_103 : f32 to vector<8x128xf32>
    %361 = arith.addf %360, %359 : vector<8x128xf32>
    %362 = arith.divf %360, %361 : vector<8x128xf32>
    %363 = vector.extract_strided_slice %345 {offsets = [0, 256], sizes = [8, 128], strides = [1, 1]} : vector<8x384xf32> to vector<8x128xf32>
    %364 = vector.extract_strided_slice %346 {offsets = [0, 256], sizes = [8, 128], strides = [1, 1]} : vector<8x384xf32> to vector<8x128xf32>
    %365 = vector.broadcast %308 : vector<1x128xf32> to vector<8x128xf32>
    %366 = arith.addf %364, %365 : vector<8x128xf32>
    %367 = arith.mulf %354, %366 : vector<8x128xf32>
    %368 = arith.addf %363, %367 : vector<8x128xf32>
    %369 = math.tanh %368 : vector<8x128xf32>
    %cst_104 = arith.constant 1.000000e+00 : f32
    %370 = vector.broadcast %cst_104 : f32 to vector<8x128xf32>
    %371 = arith.subf %370, %362 : vector<8x128xf32>
    %372 = arith.mulf %371, %369 : vector<8x128xf32>
    %373 = arith.mulf %362, %342 : vector<8x128xf32>
    %374 = arith.addf %372, %373 : vector<8x128xf32>
    %c2_i32_105 = arith.constant 2 : i32
    %375 = arith.index_cast %c2_i32_105 : i32 to index
    %c0_106 = arith.constant 0 : index
    %c0_107 = arith.constant 0 : index
    %376 = vector.load %arg11[%375, %c0_106, %c0_107] : memref<8x8x384xf32, #tpu.memory_space<vmem>>, vector<1x8x384xf32>
    %377 = vector.shape_cast %376 : vector<1x8x384xf32> to vector<8x384xf32>
    %cst_108 = arith.constant dense<0.000000e+00> : vector<8x384xf32>
    %378 = tpu.matmul %374, %307, %cst_108 {dimension_numbers = #tpu.dot_dimension_numbers<[1], [0], [0], [1], [0, 0, 1, 1], [], []>} : vector<8x128xf32>, vector<128x384xf32>, vector<8x384xf32> -> vector<8x384xf32>
    %379 = vector.extract_strided_slice %377 {offsets = [0, 0], sizes = [8, 128], strides = [1, 1]} : vector<8x384xf32> to vector<8x128xf32>
    %380 = vector.extract_strided_slice %378 {offsets = [0, 0], sizes = [8, 128], strides = [1, 1]} : vector<8x384xf32> to vector<8x128xf32>
    %381 = arith.addf %379, %380 : vector<8x128xf32>
    %382 = arith.negf %381 : vector<8x128xf32>
    %383 = math.exp %382 : vector<8x128xf32>
    %cst_109 = arith.constant 1.000000e+00 : f32
    %384 = vector.broadcast %cst_109 : f32 to vector<8x128xf32>
    %385 = arith.addf %384, %383 : vector<8x128xf32>
    %386 = arith.divf %384, %385 : vector<8x128xf32>
    %387 = vector.extract_strided_slice %377 {offsets = [0, 128], sizes = [8, 128], strides = [1, 1]} : vector<8x384xf32> to vector<8x128xf32>
    %388 = vector.extract_strided_slice %378 {offsets = [0, 128], sizes = [8, 128], strides = [1, 1]} : vector<8x384xf32> to vector<8x128xf32>
    %389 = arith.addf %387, %388 : vector<8x128xf32>
    %390 = arith.negf %389 : vector<8x128xf32>
    %391 = math.exp %390 : vector<8x128xf32>
    %cst_110 = arith.constant 1.000000e+00 : f32
    %392 = vector.broadcast %cst_110 : f32 to vector<8x128xf32>
    %393 = arith.addf %392, %391 : vector<8x128xf32>
    %394 = arith.divf %392, %393 : vector<8x128xf32>
    %395 = vector.extract_strided_slice %377 {offsets = [0, 256], sizes = [8, 128], strides = [1, 1]} : vector<8x384xf32> to vector<8x128xf32>
    %396 = vector.extract_strided_slice %378 {offsets = [0, 256], sizes = [8, 128], strides = [1, 1]} : vector<8x384xf32> to vector<8x128xf32>
    %397 = vector.broadcast %308 : vector<1x128xf32> to vector<8x128xf32>
    %398 = arith.addf %396, %397 : vector<8x128xf32>
    %399 = arith.mulf %386, %398 : vector<8x128xf32>
    %400 = arith.addf %395, %399 : vector<8x128xf32>
    %401 = math.tanh %400 : vector<8x128xf32>
    %cst_111 = arith.constant 1.000000e+00 : f32
    %402 = vector.broadcast %cst_111 : f32 to vector<8x128xf32>
    %403 = arith.subf %402, %394 : vector<8x128xf32>
    %404 = arith.mulf %403, %401 : vector<8x128xf32>
    %405 = arith.mulf %394, %374 : vector<8x128xf32>
    %406 = arith.addf %404, %405 : vector<8x128xf32>
    %c3_i32_112 = arith.constant 3 : i32
    %407 = arith.index_cast %c3_i32_112 : i32 to index
    %c0_113 = arith.constant 0 : index
    %c0_114 = arith.constant 0 : index
    %408 = vector.load %arg11[%407, %c0_113, %c0_114] : memref<8x8x384xf32, #tpu.memory_space<vmem>>, vector<1x8x384xf32>
    %409 = vector.shape_cast %408 : vector<1x8x384xf32> to vector<8x384xf32>
    %cst_115 = arith.constant dense<0.000000e+00> : vector<8x384xf32>
    %410 = tpu.matmul %406, %307, %cst_115 {dimension_numbers = #tpu.dot_dimension_numbers<[1], [0], [0], [1], [0, 0, 1, 1], [], []>} : vector<8x128xf32>, vector<128x384xf32>, vector<8x384xf32> -> vector<8x384xf32>
    %411 = vector.extract_strided_slice %409 {offsets = [0, 0], sizes = [8, 128], strides = [1, 1]} : vector<8x384xf32> to vector<8x128xf32>
    %412 = vector.extract_strided_slice %410 {offsets = [0, 0], sizes = [8, 128], strides = [1, 1]} : vector<8x384xf32> to vector<8x128xf32>
    %413 = arith.addf %411, %412 : vector<8x128xf32>
    %414 = arith.negf %413 : vector<8x128xf32>
    %415 = math.exp %414 : vector<8x128xf32>
    %cst_116 = arith.constant 1.000000e+00 : f32
    %416 = vector.broadcast %cst_116 : f32 to vector<8x128xf32>
    %417 = arith.addf %416, %415 : vector<8x128xf32>
    %418 = arith.divf %416, %417 : vector<8x128xf32>
    %419 = vector.extract_strided_slice %409 {offsets = [0, 128], sizes = [8, 128], strides = [1, 1]} : vector<8x384xf32> to vector<8x128xf32>
    %420 = vector.extract_strided_slice %410 {offsets = [0, 128], sizes = [8, 128], strides = [1, 1]} : vector<8x384xf32> to vector<8x128xf32>
    %421 = arith.addf %419, %420 : vector<8x128xf32>
    %422 = arith.negf %421 : vector<8x128xf32>
    %423 = math.exp %422 : vector<8x128xf32>
    %cst_117 = arith.constant 1.000000e+00 : f32
    %424 = vector.broadcast %cst_117 : f32 to vector<8x128xf32>
    %425 = arith.addf %424, %423 : vector<8x128xf32>
    %426 = arith.divf %424, %425 : vector<8x128xf32>
    %427 = vector.extract_strided_slice %409 {offsets = [0, 256], sizes = [8, 128], strides = [1, 1]} : vector<8x384xf32> to vector<8x128xf32>
    %428 = vector.extract_strided_slice %410 {offsets = [0, 256], sizes = [8, 128], strides = [1, 1]} : vector<8x384xf32> to vector<8x128xf32>
    %429 = vector.broadcast %308 : vector<1x128xf32> to vector<8x128xf32>
    %430 = arith.addf %428, %429 : vector<8x128xf32>
    %431 = arith.mulf %418, %430 : vector<8x128xf32>
    %432 = arith.addf %427, %431 : vector<8x128xf32>
    %433 = math.tanh %432 : vector<8x128xf32>
    %cst_118 = arith.constant 1.000000e+00 : f32
    %434 = vector.broadcast %cst_118 : f32 to vector<8x128xf32>
    %435 = arith.subf %434, %426 : vector<8x128xf32>
    %436 = arith.mulf %435, %433 : vector<8x128xf32>
    %437 = arith.mulf %426, %406 : vector<8x128xf32>
    %438 = arith.addf %436, %437 : vector<8x128xf32>
    %c4_i32_119 = arith.constant 4 : i32
    %439 = arith.index_cast %c4_i32_119 : i32 to index
    %c0_120 = arith.constant 0 : index
    %c0_121 = arith.constant 0 : index
    %440 = vector.load %arg11[%439, %c0_120, %c0_121] : memref<8x8x384xf32, #tpu.memory_space<vmem>>, vector<1x8x384xf32>
    %441 = vector.shape_cast %440 : vector<1x8x384xf32> to vector<8x384xf32>
    %cst_122 = arith.constant dense<0.000000e+00> : vector<8x384xf32>
    %442 = tpu.matmul %438, %307, %cst_122 {dimension_numbers = #tpu.dot_dimension_numbers<[1], [0], [0], [1], [0, 0, 1, 1], [], []>} : vector<8x128xf32>, vector<128x384xf32>, vector<8x384xf32> -> vector<8x384xf32>
    %443 = vector.extract_strided_slice %441 {offsets = [0, 0], sizes = [8, 128], strides = [1, 1]} : vector<8x384xf32> to vector<8x128xf32>
    %444 = vector.extract_strided_slice %442 {offsets = [0, 0], sizes = [8, 128], strides = [1, 1]} : vector<8x384xf32> to vector<8x128xf32>
    %445 = arith.addf %443, %444 : vector<8x128xf32>
    %446 = arith.negf %445 : vector<8x128xf32>
    %447 = math.exp %446 : vector<8x128xf32>
    %cst_123 = arith.constant 1.000000e+00 : f32
    %448 = vector.broadcast %cst_123 : f32 to vector<8x128xf32>
    %449 = arith.addf %448, %447 : vector<8x128xf32>
    %450 = arith.divf %448, %449 : vector<8x128xf32>
    %451 = vector.extract_strided_slice %441 {offsets = [0, 128], sizes = [8, 128], strides = [1, 1]} : vector<8x384xf32> to vector<8x128xf32>
    %452 = vector.extract_strided_slice %442 {offsets = [0, 128], sizes = [8, 128], strides = [1, 1]} : vector<8x384xf32> to vector<8x128xf32>
    %453 = arith.addf %451, %452 : vector<8x128xf32>
    %454 = arith.negf %453 : vector<8x128xf32>
    %455 = math.exp %454 : vector<8x128xf32>
    %cst_124 = arith.constant 1.000000e+00 : f32
    %456 = vector.broadcast %cst_124 : f32 to vector<8x128xf32>
    %457 = arith.addf %456, %455 : vector<8x128xf32>
    %458 = arith.divf %456, %457 : vector<8x128xf32>
    %459 = vector.extract_strided_slice %441 {offsets = [0, 256], sizes = [8, 128], strides = [1, 1]} : vector<8x384xf32> to vector<8x128xf32>
    %460 = vector.extract_strided_slice %442 {offsets = [0, 256], sizes = [8, 128], strides = [1, 1]} : vector<8x384xf32> to vector<8x128xf32>
    %461 = vector.broadcast %308 : vector<1x128xf32> to vector<8x128xf32>
    %462 = arith.addf %460, %461 : vector<8x128xf32>
    %463 = arith.mulf %450, %462 : vector<8x128xf32>
    %464 = arith.addf %459, %463 : vector<8x128xf32>
    %465 = math.tanh %464 : vector<8x128xf32>
    %cst_125 = arith.constant 1.000000e+00 : f32
    %466 = vector.broadcast %cst_125 : f32 to vector<8x128xf32>
    %467 = arith.subf %466, %458 : vector<8x128xf32>
    %468 = arith.mulf %467, %465 : vector<8x128xf32>
    %469 = arith.mulf %458, %438 : vector<8x128xf32>
    %470 = arith.addf %468, %469 : vector<8x128xf32>
    %c5_i32_126 = arith.constant 5 : i32
    %471 = arith.index_cast %c5_i32_126 : i32 to index
    %c0_127 = arith.constant 0 : index
    %c0_128 = arith.constant 0 : index
    %472 = vector.load %arg11[%471, %c0_127, %c0_128] : memref<8x8x384xf32, #tpu.memory_space<vmem>>, vector<1x8x384xf32>
    %473 = vector.shape_cast %472 : vector<1x8x384xf32> to vector<8x384xf32>
    %cst_129 = arith.constant dense<0.000000e+00> : vector<8x384xf32>
    %474 = tpu.matmul %470, %307, %cst_129 {dimension_numbers = #tpu.dot_dimension_numbers<[1], [0], [0], [1], [0, 0, 1, 1], [], []>} : vector<8x128xf32>, vector<128x384xf32>, vector<8x384xf32> -> vector<8x384xf32>
    %475 = vector.extract_strided_slice %473 {offsets = [0, 0], sizes = [8, 128], strides = [1, 1]} : vector<8x384xf32> to vector<8x128xf32>
    %476 = vector.extract_strided_slice %474 {offsets = [0, 0], sizes = [8, 128], strides = [1, 1]} : vector<8x384xf32> to vector<8x128xf32>
    %477 = arith.addf %475, %476 : vector<8x128xf32>
    %478 = arith.negf %477 : vector<8x128xf32>
    %479 = math.exp %478 : vector<8x128xf32>
    %cst_130 = arith.constant 1.000000e+00 : f32
    %480 = vector.broadcast %cst_130 : f32 to vector<8x128xf32>
    %481 = arith.addf %480, %479 : vector<8x128xf32>
    %482 = arith.divf %480, %481 : vector<8x128xf32>
    %483 = vector.extract_strided_slice %473 {offsets = [0, 128], sizes = [8, 128], strides = [1, 1]} : vector<8x384xf32> to vector<8x128xf32>
    %484 = vector.extract_strided_slice %474 {offsets = [0, 128], sizes = [8, 128], strides = [1, 1]} : vector<8x384xf32> to vector<8x128xf32>
    %485 = arith.addf %483, %484 : vector<8x128xf32>
    %486 = arith.negf %485 : vector<8x128xf32>
    %487 = math.exp %486 : vector<8x128xf32>
    %cst_131 = arith.constant 1.000000e+00 : f32
    %488 = vector.broadcast %cst_131 : f32 to vector<8x128xf32>
    %489 = arith.addf %488, %487 : vector<8x128xf32>
    %490 = arith.divf %488, %489 : vector<8x128xf32>
    %491 = vector.extract_strided_slice %473 {offsets = [0, 256], sizes = [8, 128], strides = [1, 1]} : vector<8x384xf32> to vector<8x128xf32>
    %492 = vector.extract_strided_slice %474 {offsets = [0, 256], sizes = [8, 128], strides = [1, 1]} : vector<8x384xf32> to vector<8x128xf32>
    %493 = vector.broadcast %308 : vector<1x128xf32> to vector<8x128xf32>
    %494 = arith.addf %492, %493 : vector<8x128xf32>
    %495 = arith.mulf %482, %494 : vector<8x128xf32>
    %496 = arith.addf %491, %495 : vector<8x128xf32>
    %497 = math.tanh %496 : vector<8x128xf32>
    %cst_132 = arith.constant 1.000000e+00 : f32
    %498 = vector.broadcast %cst_132 : f32 to vector<8x128xf32>
    %499 = arith.subf %498, %490 : vector<8x128xf32>
    %500 = arith.mulf %499, %497 : vector<8x128xf32>
    %501 = arith.mulf %490, %470 : vector<8x128xf32>
    %502 = arith.addf %500, %501 : vector<8x128xf32>
    %c6_i32_133 = arith.constant 6 : i32
    %503 = arith.index_cast %c6_i32_133 : i32 to index
    %c0_134 = arith.constant 0 : index
    %c0_135 = arith.constant 0 : index
    %504 = vector.load %arg11[%503, %c0_134, %c0_135] : memref<8x8x384xf32, #tpu.memory_space<vmem>>, vector<1x8x384xf32>
    %505 = vector.shape_cast %504 : vector<1x8x384xf32> to vector<8x384xf32>
    %cst_136 = arith.constant dense<0.000000e+00> : vector<8x384xf32>
    %506 = tpu.matmul %502, %307, %cst_136 {dimension_numbers = #tpu.dot_dimension_numbers<[1], [0], [0], [1], [0, 0, 1, 1], [], []>} : vector<8x128xf32>, vector<128x384xf32>, vector<8x384xf32> -> vector<8x384xf32>
    %507 = vector.extract_strided_slice %505 {offsets = [0, 0], sizes = [8, 128], strides = [1, 1]} : vector<8x384xf32> to vector<8x128xf32>
    %508 = vector.extract_strided_slice %506 {offsets = [0, 0], sizes = [8, 128], strides = [1, 1]} : vector<8x384xf32> to vector<8x128xf32>
    %509 = arith.addf %507, %508 : vector<8x128xf32>
    %510 = arith.negf %509 : vector<8x128xf32>
    %511 = math.exp %510 : vector<8x128xf32>
    %cst_137 = arith.constant 1.000000e+00 : f32
    %512 = vector.broadcast %cst_137 : f32 to vector<8x128xf32>
    %513 = arith.addf %512, %511 : vector<8x128xf32>
    %514 = arith.divf %512, %513 : vector<8x128xf32>
    %515 = vector.extract_strided_slice %505 {offsets = [0, 128], sizes = [8, 128], strides = [1, 1]} : vector<8x384xf32> to vector<8x128xf32>
    %516 = vector.extract_strided_slice %506 {offsets = [0, 128], sizes = [8, 128], strides = [1, 1]} : vector<8x384xf32> to vector<8x128xf32>
    %517 = arith.addf %515, %516 : vector<8x128xf32>
    %518 = arith.negf %517 : vector<8x128xf32>
    %519 = math.exp %518 : vector<8x128xf32>
    %cst_138 = arith.constant 1.000000e+00 : f32
    %520 = vector.broadcast %cst_138 : f32 to vector<8x128xf32>
    %521 = arith.addf %520, %519 : vector<8x128xf32>
    %522 = arith.divf %520, %521 : vector<8x128xf32>
    %523 = vector.extract_strided_slice %505 {offsets = [0, 256], sizes = [8, 128], strides = [1, 1]} : vector<8x384xf32> to vector<8x128xf32>
    %524 = vector.extract_strided_slice %506 {offsets = [0, 256], sizes = [8, 128], strides = [1, 1]} : vector<8x384xf32> to vector<8x128xf32>
    %525 = vector.broadcast %308 : vector<1x128xf32> to vector<8x128xf32>
    %526 = arith.addf %524, %525 : vector<8x128xf32>
    %527 = arith.mulf %514, %526 : vector<8x128xf32>
    %528 = arith.addf %523, %527 : vector<8x128xf32>
    %529 = math.tanh %528 : vector<8x128xf32>
    %cst_139 = arith.constant 1.000000e+00 : f32
    %530 = vector.broadcast %cst_139 : f32 to vector<8x128xf32>
    %531 = arith.subf %530, %522 : vector<8x128xf32>
    %532 = arith.mulf %531, %529 : vector<8x128xf32>
    %533 = arith.mulf %522, %502 : vector<8x128xf32>
    %534 = arith.addf %532, %533 : vector<8x128xf32>
    %c7_i32_140 = arith.constant 7 : i32
    %535 = arith.index_cast %c7_i32_140 : i32 to index
    %c0_141 = arith.constant 0 : index
    %c0_142 = arith.constant 0 : index
    %536 = vector.load %arg11[%535, %c0_141, %c0_142] : memref<8x8x384xf32, #tpu.memory_space<vmem>>, vector<1x8x384xf32>
    %537 = vector.shape_cast %536 : vector<1x8x384xf32> to vector<8x384xf32>
    %cst_143 = arith.constant dense<0.000000e+00> : vector<8x384xf32>
    %538 = tpu.matmul %534, %307, %cst_143 {dimension_numbers = #tpu.dot_dimension_numbers<[1], [0], [0], [1], [0, 0, 1, 1], [], []>} : vector<8x128xf32>, vector<128x384xf32>, vector<8x384xf32> -> vector<8x384xf32>
    %539 = vector.extract_strided_slice %537 {offsets = [0, 0], sizes = [8, 128], strides = [1, 1]} : vector<8x384xf32> to vector<8x128xf32>
    %540 = vector.extract_strided_slice %538 {offsets = [0, 0], sizes = [8, 128], strides = [1, 1]} : vector<8x384xf32> to vector<8x128xf32>
    %541 = arith.addf %539, %540 : vector<8x128xf32>
    %542 = arith.negf %541 : vector<8x128xf32>
    %543 = math.exp %542 : vector<8x128xf32>
    %cst_144 = arith.constant 1.000000e+00 : f32
    %544 = vector.broadcast %cst_144 : f32 to vector<8x128xf32>
    %545 = arith.addf %544, %543 : vector<8x128xf32>
    %546 = arith.divf %544, %545 : vector<8x128xf32>
    %547 = vector.extract_strided_slice %537 {offsets = [0, 128], sizes = [8, 128], strides = [1, 1]} : vector<8x384xf32> to vector<8x128xf32>
    %548 = vector.extract_strided_slice %538 {offsets = [0, 128], sizes = [8, 128], strides = [1, 1]} : vector<8x384xf32> to vector<8x128xf32>
    %549 = arith.addf %547, %548 : vector<8x128xf32>
    %550 = arith.negf %549 : vector<8x128xf32>
    %551 = math.exp %550 : vector<8x128xf32>
    %cst_145 = arith.constant 1.000000e+00 : f32
    %552 = vector.broadcast %cst_145 : f32 to vector<8x128xf32>
    %553 = arith.addf %552, %551 : vector<8x128xf32>
    %554 = arith.divf %552, %553 : vector<8x128xf32>
    %555 = vector.extract_strided_slice %537 {offsets = [0, 256], sizes = [8, 128], strides = [1, 1]} : vector<8x384xf32> to vector<8x128xf32>
    %556 = vector.extract_strided_slice %538 {offsets = [0, 256], sizes = [8, 128], strides = [1, 1]} : vector<8x384xf32> to vector<8x128xf32>
    %557 = vector.broadcast %308 : vector<1x128xf32> to vector<8x128xf32>
    %558 = arith.addf %556, %557 : vector<8x128xf32>
    %559 = arith.mulf %546, %558 : vector<8x128xf32>
    %560 = arith.addf %555, %559 : vector<8x128xf32>
    %561 = math.tanh %560 : vector<8x128xf32>
    %cst_146 = arith.constant 1.000000e+00 : f32
    %562 = vector.broadcast %cst_146 : f32 to vector<8x128xf32>
    %563 = arith.subf %562, %554 : vector<8x128xf32>
    %564 = arith.mulf %563, %561 : vector<8x128xf32>
    %565 = arith.mulf %554, %534 : vector<8x128xf32>
    %566 = arith.addf %564, %565 : vector<8x128xf32>
    %c8_i32_147 = arith.constant 8 : i32
    %c1_148 = arith.constant 1 : index
    %c0_149 = arith.constant 0 : index
    %c0_150 = arith.constant 0 : index
    %567 = vector.load %arg9[%c1_148, %c0_149, %c0_150] : memref<2x8x128xf32, #tpu.memory_space<vmem>>, vector<1x8x128xf32>
    %568 = vector.shape_cast %567 : vector<1x8x128xf32> to vector<8x128xf32>
    %569 = vector.shape_cast %566 : vector<8x128xf32> to vector<1x8x128xf32>
    tpu.vector_store %arg9[%c1_148, %c0_149, %c0_150], %569 {strides = array<i32>} : memref<2x8x128xf32, #tpu.memory_space<vmem>>, vector<1x8x128xf32>,
    %c1_i32_151 = arith.constant 1 : i32
    %570 = arith.cmpi eq, %arg0, %c1_i32_151 : i32
    %571 = arith.extui %570 : i1 to i32
    %c0_i32_152 = arith.constant 0 : i32
    %572 = arith.cmpi ne, %571, %c0_i32_152 : i32
    scf.if %572 {
      %c0_153 = arith.constant 0 : index
      %c0_154 = arith.constant 0 : index
      %c0_155 = arith.constant 0 : index
      %573 = vector.load %arg9[%c0_153, %c0_154, %c0_155] : memref<2x8x128xf32, #tpu.memory_space<vmem>>, vector<2x8x128xf32>
      %c0_156 = arith.constant 0 : index
      %c0_157 = arith.constant 0 : index
      %c0_158 = arith.constant 0 : index
      %574 = vector.load %arg8[%c0_156, %c0_157, %c0_158] : memref<2x8x128xf32, #tpu.memory_space<vmem>>, vector<2x8x128xf32>
      tpu.vector_store %arg8[%c0_156, %c0_157, %c0_158], %573 {strides = array<i32>} : memref<2x8x128xf32, #tpu.memory_space<vmem>>, vector<2x8x128xf32>,
    } else {
    }
    return
  }
  func.func @transform_0(%arg0: i32) -> (i32, i32, i32) {
    %c0_i32 = arith.constant 0 : i32
    %c0_i32_0 = arith.constant 0 : i32
    %c0_i32_1 = arith.constant 0 : i32
    return %arg0, %c0_i32, %c0_i32_0 : i32, i32, i32
  }
  func.func @transform_1(%arg0: i32) -> (i32, i32) {
    %c0_i32 = arith.constant 0 : i32
    %c0_i32_0 = arith.constant 0 : i32
    %c0_i32_1 = arith.constant 0 : i32
    return %c0_i32, %c0_i32_0 : i32, i32
  }
  func.func @transform_2(%arg0: i32) -> (i32, i32) {
    %c0_i32 = arith.constant 0 : i32
    %c0_i32_0 = arith.constant 0 : i32
    %c0_i32_1 = arith.constant 0 : i32
    return %c0_i32, %c0_i32_0 : i32, i32
  }
  func.func @transform_3(%arg0: i32) -> (i32, i32) {
    %c0_i32 = arith.constant 0 : i32
    %c0_i32_0 = arith.constant 0 : i32
    %c0_i32_1 = arith.constant 0 : i32
    return %c0_i32, %c0_i32_0 : i32, i32
  }
  func.func @transform_4(%arg0: i32) -> (i32, i32) {
    %c0_i32 = arith.constant 0 : i32
    %c0_i32_0 = arith.constant 0 : i32
    %c0_i32_1 = arith.constant 0 : i32
    return %c0_i32, %c0_i32_0 : i32, i32
  }
  func.func @transform_5(%arg0: i32) -> (i32, i32) {
    %c0_i32 = arith.constant 0 : i32
    %c0_i32_0 = arith.constant 0 : i32
    %c0_i32_1 = arith.constant 0 : i32
    return %c0_i32, %c0_i32_0 : i32, i32
  }
  func.func @transform_6(%arg0: i32) -> (i32, i32) {
    %c0_i32 = arith.constant 0 : i32
    %c0_i32_0 = arith.constant 0 : i32
    %c0_i32_1 = arith.constant 0 : i32
    return %c0_i32, %c0_i32_0 : i32, i32
  }
  func.func @transform_7(%arg0: i32) -> (i32, i32, i32) {
    %c0_i32 = arith.constant 0 : i32
    %c0_i32_0 = arith.constant 0 : i32
    %c0_i32_1 = arith.constant 0 : i32
    %c0_i32_2 = arith.constant 0 : i32
    return %c0_i32, %c0_i32_0, %c0_i32_1 : i32, i32, i32
  }
}

</mosaic_0001>

<bundles_post_ra>
// kernel: tpu_custom_call.1
= control target key start
LH: loop header
LB: loop body
LE: loop exit
PB: predicated region body
PF: predicated region fallthrough
CT: control target
= control target key end

     0   :  { %12 = vsyncpa [#allocation6], 0  ;;  %s6976_s0 = inlined_call_operand.hbm [shape: f32[16,8,384], index: 0, kind: input, shape index: {}]   ;;  %s6977_s1 = inlined_call_operand.hbm [shape: f32[128,384], index: 1, kind: input, shape index: {}]   ;;  %s6978_s2 = inlined_call_operand.vmem [shape: f32[1,128], index: 2, kind: input, shape index: {}]   ;;  %s6979_s3 = inlined_call_operand.hbm [shape: f32[128,384], index: 3, kind: input, shape index: {}]   ;;  %s6980_s4 = inlined_call_operand.vmem [shape: f32[1,384], index: 4, kind: input, shape index: {}]   ;;  %s6981_s5 = inlined_call_operand.hbm [shape: f32[128,384], index: 5, kind: input, shape index: {}]   ;;  %s6982_s6 = inlined_call_operand.vmem [shape: f32[1,128], index: 6, kind: input, shape index: {}]   ;;  %s6983_s7 = inlined_call_operand.hbm [shape: f32[2,8,128], index: 7, kind: output, shape index: {}]  }
   0x1   :  { %14 = vsyncpa [#allocation6 + $0x1], 0 }
   0x2   :  { %15 = vsyncpa [#allocation9], 0 }
   0x3   :  { %16 = vsyncpa [#allocation12], 0 }
   0x4   :  { %17 = vsyncpa [#allocation7], 0  ;;  %s5097_s24 = smov 0   ;;  %s5099_s25 = smov 0  }
   0x5   :  { %s5101_s26 = smov 0   ;;  %s5103_s27 = smov 0  }
   0x6 LB: > { %s5116_s28 = sadd.s32 4294967295, %s5043_s27   ;;  %p43_p0 = scmp.ne.s32.totalorder %s5035_s25, %s5031_s24  ;;  %s5043_s27 = sphi %s5103_s27, %s7184_s27   ;;  %s5039_s26 = sphi %s5101_s26, %s7183_s26   ;;  %s5035_s25 = sphi %s5099_s25, %s7182_s25   ;;  %s5031_s24 = sphi %s5097_s24, %s7181_s24  }
   0x7   : > { %p6984_p1 = scmp.eq.s32.totalorder %s5116_s28, 0  ;;  %p3549_p2 = scmp.ge.s32.totalorder %s5043_s27, 1 }
   0x8   : > { %p201_p3 = scmp.lt.s32.totalorder %s5043_s27, 3  ;;  %s5045_s8 = smov [#allocation8]  }
   0x9   : > { %p5125_p5 = por %p6984_p1, %p43_p0  ;;  %s213_s9 = sshll.u32 %s5045_s8, 4  ;;  %s214_s9 = int_to_ptr.vmem [resolvable:$true] %s213_s9 }
   0xa   : > { %p5129_p6 = pnand %p3549_p2, %p201_p3  ;;  %s5046_s11 = smov [#allocation10]  }
   0xb   : > { %s7041_s29 = scalar_select %p5125_p5, 1, 0 }
   0xc   : > { %s7042_s30 = scalar_select %p5129_p6, 1, 0 }
   0xd   : > { %p4543_p7 = pneg %p5129_p6  ;;  %s229_s12 = sshll.u32 %s5046_s11, 4  ;;  %s230_s12 = int_to_ptr.vmem [resolvable:$true] %s229_s12 }
   0xe   : > { %s5047_s13 = smov [#allocation11]   ;;  %s4878_s15 = scalar_lea.vmem %s214_s9, 6144 }
   0xf   : > { %p5137_p8 = pnand %p4543_p7, %p6984_p1  ;;  %s245_s14 = sshll.u32 %s5047_s13, 4  ;;  %s246_s14 = int_to_ptr.vmem [resolvable:$true] %s245_s14 }
  0x10   : > { %p4879_p10 = scmp.ne.s32.totalorder %s214_s9, %s4878_s15  ;;  %p4886_p13 = scmp.lt.s32.totalorder %s214_s9, %s214_s9 }
  0x11   : > { %p4869_p9 = pneg %p5137_p8  ;;  %p4887_p0 = scmp.lt.s32.totalorder %s4878_s15, %s4878_s15 }
  0x13   : > { %p4881_p11 = pnand %p4879_p10, %p4869_p9  ;;  %p4888_p2 = por %p4887_p0, %p4886_p13 }
  0x15   : > { %p4882_p12 = pneg %p4881_p11 }
  0x17   : > { %p4889_p3 = pnand %p4888_p2, %p4882_p12 }
  0x19   : > { %4892 = shalt.err (!%p4889_p3)
}
  0x1a   : > { %s5048_s16 = smov 384   ;;  %s5049_s17 = smov 24  }
  0x1b   : > { %4546 = dma.hbm_to_vmem [thread:$0]  (!%p5137_p8), %s6977_s1, 6144, %s214_s9, [#allocation9], %s5048_s16, %s5048_s16, %s5049_s17  }
  0x1c   : > { %s4904_s20 = scalar_lea.vmem %s230_s12, 6144  ;;  %p4912_p12 = scmp.lt.s32.totalorder %s230_s12, %s230_s12 }
  0x1d   : > { %p4905_p7 = scmp.ne.s32.totalorder %s230_s12, %s4904_s20  ;;  %p4913_p13 = scmp.lt.s32.totalorder %s4904_s20, %s4904_s20 }
  0x1f   : > { %p4907_p10 = pnand %p4905_p7, %p4869_p9  ;;  %p4914_p0 = por %p4913_p13, %p4912_p12 }
  0x21   : > { %p4908_p11 = pneg %p4907_p10 }
  0x23   : > { %p4915_p2 = pnand %p4914_p0, %p4908_p11 }
  0x25   : > { %4918 = shalt.err (!%p4915_p2)
}
  0x26   : > { %4549 = dma.hbm_to_vmem [thread:$0]  (!%p5137_p8), %s6979_s3, 6144, %s230_s12, [#allocation9], %s5048_s16, %s5048_s16, %s5049_s17  }
  0x27   : > { %s4930_s23 = scalar_lea.vmem %s246_s14, 6144  ;;  %p4938_p12 = scmp.lt.s32.totalorder %s246_s14, %s246_s14 }
  0x28   : > { %p4931_p3 = scmp.ne.s32.totalorder %s246_s14, %s4930_s23  ;;  %p4939_p11 = scmp.lt.s32.totalorder %s4930_s23, %s4930_s23 }
  0x2a   : > { %p4933_p7 = pnand %p4931_p3, %p4869_p9  ;;  %p4940_p13 = por %p4939_p11, %p4938_p12 }
  0x2c   : > { %p4934_p10 = pneg %p4933_p7 }
  0x2e   : > { %p4941_p0 = pnand %p4940_p13, %p4934_p10 }
  0x30   : > { %4944 = shalt.err (!%p4941_p0)
}
  0x31   : > { %4552 = dma.hbm_to_vmem [thread:$0]  (!%p5137_p8), %s6981_s5, 6144, %s246_s14, [#allocation12], %s5048_s16, %s5048_s16, %s5049_s17  }
  0x32   : > { %s5177_s9 = sadd.s32 1, %s5043_s27   ;;  %s30_s11 = sadd.s32 1, %s5039_s26 }
  0x33   : > { %s27_s10 = ssub.s32 %s5043_s27, %s5177_s9  ;;  %p37_p2 = scmp.ne.s32.totalorder %s5039_s26, %s5035_s25 }
  0x34   : > { %p28_p9 = scmp.eq.s32.totalorder %s27_s10, 0  ;;  %p38_p3 = scmp.eq.s32.totalorder %s5043_s27, 0 }
  0x35   : > { %p4560_p7 = scmp.lt.s32.totalorder %s5043_s27, 2  ;;  %s262_s13 = sand.u32 1, %s5039_s26  }
  0x36   : > { %s5187_s12 = scalar_select %p28_p9, %s5039_s26, %s30_s11  }
  0x37   : > { %p39_p10 = por %p38_p3, %p37_p2  ;;  %s4522_s15 = smul.u32 192, %s262_s13 }
  0x38   : > { %s4523_s18 = smul.u32 3072, %s5043_s27  ;;  %s5202_s24 = scalar_lea.sflag [#allocation6], %s262_s13 }
  0x39   : > { %p5191_p12 = pnand %p4560_p7, %p39_p10  ;;  %s266_s22 = scalar_lea.vmem [#allocation5], %s4522_s15 }
  0x3a   : > { %s5198_s21 = scalar_lea.hbm %s6976_s0, %s4523_s18  ;;  %s274_s23 = sshll.u32 %s266_s22, 4  ;;  %s5200_s23 = int_to_ptr.vmem [resolvable:$true] %s274_s23 }
  0x3b   : > { %s4945_s27 = scalar_lea.hbm %s5198_s21, 3072  ;;  %p4947_p11 = pneg %p5191_p12 }
  0x3c   : > { %p4946_p8 = scmp.ne.s32.totalorder %s5198_s21, %s4945_s27  ;;  %s4950_s11 = scalar_lea.hbm %s6976_s0, 6144 }
  0x3d   : > { %p4951_p9 = scmp.lt.s32.totalorder %s5198_s21, %s6976_s0  ;;  %p4952_p2 = scmp.lt.s32.totalorder %s4950_s11, %s4945_s27 }
  0x3e   : > { %p4948_p13 = pnand %p4947_p11, %p4946_p8 }
  0x3f   : > { %p4953_p3 = por %p4952_p2, %p4951_p9 }
  0x40   : > { %p4949_p0 = pneg %p4948_p13 }
  0x42   : > { %p4954_p7 = pnand %p4953_p3, %p4949_p0 }
  0x44   : > { %4957 = shalt.err (!%p4954_p7)
}
  0x45   : > { %s4958_s13 = scalar_lea.vmem %s5200_s23, 3072  ;;  %s5050_s15 = smov [#allocation5]  }
  0x46   : > { %p4959_p10 = scmp.ne.s32.totalorder %s5200_s23, %s4958_s13  ;;  %s4963_s20 = sshll.u32 %s5050_s15, 4  ;;  %s4964_s20 = int_to_ptr.vmem [resolvable:$false] %s4963_s20 }
  0x47   : > { %s4965_s22 = scalar_lea.vmem %s4964_s20, 6144  ;;  %p4966_p13 = scmp.lt.s32.totalorder %s5200_s23, %s4964_s20 }
  0x48   : > { %p4961_p4 = pnand %p4959_p10, %p4947_p11  ;;  %p4967_p1 = scmp.lt.s32.totalorder %s4965_s22, %s4958_s13 }
  0x4a   : > { %p4962_p8 = pneg %p4961_p4  ;;  %p4968_p5 = por %p4967_p1, %p4966_p13 }
  0x4c   : > { %p4969_p6 = pnand %p4968_p5, %p4962_p8 }
  0x4e   : > { %4972 = shalt.err (!%p4969_p6)
}
  0x4f   : > { %4556 = dma.hbm_to_vmem [thread:$0]  (!%p5191_p12), %s5198_s21, 3072, %s5200_s23, %s5202_s24, %s5048_s16, %s5048_s16, %s5049_s17  }
  0x50   : > { %p7045_p4 = scmp.ne.s32.totalorder %s7042_s30, 0 }
  0x52   : > { %286 = sbr.rel (%p7045_p4) target bundleno = 4153 (0x1039), region = 48 }
  0x57   : > { %s288_s27 = sand.u32 1, %s5035_s25   ;;  %p7046_p1 = scmp.ne.s32.totalorder %s7041_s29, 0 }
  0x58   : > { %s4524_s8 = smul.u32 192, %s288_s27  ;;  %s289_s10 = scalar_lea.sflag [#allocation6], %s288_s27 }
  0x5a   : > { %s5229_s11 = scalar_lea.vmem [#allocation5], %s4524_s8 }
  0x5b   : > { %5014 = dma.done.wait (%p7046_p1), %s289_s10, 3072  }
  0x5c   : > { %5016 = vsyncadd (%p7046_p1), %s289_s10, 4294964224  ;;  %p7047_p5 = scmp.eq.s32.totalorder %s5116_s28, 0 }
  0x5e   : > { %5018 = dma.done.wait (%p7047_p5), [#allocation9], 12288   ;;  %p7048_p6 = pmov %p7047_p5 }
  0x5f   : > { %p7049_p12 = pmov %p7047_p5 }
  0x60   : > { %5020 = vsyncadd (%p7048_p6), [#allocation9], 4294955008 }
  0x61   : > { %5022 = dma.done.wait (%p7049_p12), [#allocation12], 6144   ;;  %p7050_p11 = pmov %p7047_p5 }
  0x62   : > { %p7051_p0 = scmp.ne.s32.totalorder %s5116_s28, 0 }
  0x63   : > { %5024 = vsyncadd (%p7050_p11), [#allocation12], 4294961152 }
  0x64   : > { %334 = sbr.rel (%p7051_p0) target bundleno = 107 (0x6b), region = 68 }
  0x69   : > { %v5051_v0 = vmov 0.0  }
  0x6a   : > { %335 = vst [vmem:[#allocation2] sm:$0xff] %v5051_v0  ;;  %336 = vst [vmem:[#allocation2 + $0x8] sm:$0xff] %v5051_v0 }
  0x6b PF: > { %v5245_v1 = vld [vmem:[#allocation8 + $0x170] sm:$0xff]  ;;  %v5247_v2 = vld [vmem:[#allocation8 + $0x168] sm:$0xff]  ;;  %v5249_v3 = vld [vmem:[#allocation8 + $0x158] sm:$0xff]  ;;  %v6987_v5 = vmov 0.0   ;;  %vm5053_vm0 = vmmov 0   ;;  %p3617_p9 = scmp.ne.s32.totalorder %s5116_s28, 1 }
  0x6c   : > { %7052 = vst [vmem:[#allocation18_spill] sm:$0xff] %v5245_v1  ;;  %390 = vmatprep.subr.mxu0 %v5245_v1  ;;  %v5252_v4 = vld [vmem:[#allocation8 + $0x150] sm:$0xff]  ;;  %3918 = vmatprep.subr.mxu1 %v6987_v5  ;;  %v5256_v6 = vld [vmem:[#allocation8 + $0x140] sm:$0xff]  ;;  %v5260_v7 = vld [vmem:[#allocation8 + $0x138] sm:$0xff] }
  0x6d   : > { %391 = vmatpush1.msra.mxu0 %v5247_v2  ;;  %454 = vmatprep.mubr.f32.mxu0 %v6987_v5  ;;  %v5265_v8 = vld [vmem:[#allocation8 + $0x128] sm:$0xff]  ;;  %v5268_v9 = vld [vmem:[#allocation8 + $0x120] sm:$0xff]  ;;  %v5271_v10 = vld [vmem:[#allocation8 + $0x110] sm:$0xff] }
  0x6e   : > { %392 = vmatprep.subr.mxu0 %v5249_v3  ;;  %3950 = vmatprep.mubr.msk.f32.mxu1 %vm5053_vm0, %v6987_v5  ;;  %v5274_v11 = vld [vmem:[#allocation8 + $0x108] sm:$0xff]  ;;  %v5277_v12 = vld [vmem:[#allocation8 + $0xf8] sm:$0xff]  ;;  %v5280_v13 = vld [vmem:[#allocation8 + $0xf0] sm:$0xff] }
  0x6f   : > { %393 = vmatpush1.msra.mxu0 %v5252_v4  ;;  %v5283_v14 = vld [vmem:[#allocation8 + $0xe0] sm:$0xff]  ;;  %v5285_v15 = vld [vmem:[#allocation8 + $0x178] sm:$0xff]  ;;  %v5294_v18 = vld [vmem:[#allocation8 + $0xc8] sm:$0xff] }
  0x70   : > { %394 = vmatprep.subr.mxu0 %v5256_v6  ;;  %v5288_v16 = vld [vmem:[#allocation8 + $0xd8] sm:$0xff]  ;;  %3919 = vmatpush3.msra.mxu1 %v5285_v15  ;;  %v5291_v17 = vld [vmem:[#allocation8 + $0x160] sm:$0xff]  ;;  %v5297_v19 = vld [vmem:[#allocation8 + $0x148] sm:$0xff] }
  0x71   : > { %395 = vmatpush1.msra.mxu0 %v5260_v7  ;;  %3920 = vmatprep.subr.mxu1 %v6987_v5  ;;  %v5300_v20 = vld [vmem:[#allocation8 + $0xc0] sm:$0xff]  ;;  %v5304_v21 = vld [vmem:[#allocation8 + $0xb0] sm:$0xff]  ;;  %v5310_v23 = vld [vmem:[#allocation8 + $0xa8] sm:$0xff] }
  0x72   : > { %396 = vmatprep.subr.mxu0 %v5265_v8  ;;  %3921 = vmatpush3.msra.mxu1 %v5291_v17  ;;  %v5307_v22 = vld [vmem:[#allocation8 + $0x130] sm:$0xff]  ;;  %v5314_v24 = vld [vmem:[#allocation8 + $0x98] sm:$0xff]  ;;  %v5324_v27 = vld [vmem:[#allocation8 + $0x80] sm:$0xff] }
  0x73   : > { %397 = vmatpush1.msra.mxu0 %v5268_v9  ;;  %3922 = vmatprep.subr.mxu1 %v6987_v5  ;;  %v5317_v25 = vld [vmem:[#allocation8 + $0x118] sm:$0xff]  ;;  %v5320_v26 = vld [vmem:[#allocation8 + $0x90] sm:$0xff]  ;;  %v5327_v28 = vld [vmem:[#allocation8 + $0x100] sm:$0xff] }
  0x74   : > { %398 = vmatprep.subr.mxu0 %v5271_v10  ;;  %3923 = vmatpush3.msra.mxu1 %v5297_v19  ;;  %v5330_v29 = vld [vmem:[#allocation8 + $0x78] sm:$0xff]  ;;  %v5334_v30 = vld [vmem:[#allocation8 + $0x68] sm:$0xff]  ;;  %v5340_v32 = vld [vmem:[#allocation8 + $0x60] sm:$0xff] }
  0x75   : > { %399 = vmatpush1.msra.mxu0 %v5274_v11  ;;  %3924 = vmatprep.subr.mxu1 %v6987_v5  ;;  %v5337_v31 = vld [vmem:[#allocation8 + $0xe8] sm:$0xff]  ;;  %v5344_v33 = vld [vmem:[#allocation8 + $0x50] sm:$0xff]  ;;  %v5354_v36 = vld [vmem:[#allocation8 + $0x38] sm:$0xff] }
  0x76   : > { %400 = vmatprep.subr.mxu0 %v5277_v12  ;;  %3925 = vmatpush3.msra.mxu1 %v5307_v22  ;;  %v5347_v34 = vld [vmem:[#allocation8 + $0xd0] sm:$0xff]  ;;  %v5350_v35 = vld [vmem:[#allocation8 + $0x48] sm:$0xff]  ;;  %v5357_v37 = vld [vmem:[#allocation8 + $0xb8] sm:$0xff] }
  0x77   : > { %401 = vmatpush1.msra.mxu0 %v5280_v13  ;;  %3926 = vmatprep.subr.mxu1 %v6987_v5  ;;  %v5360_v38 = vld [vmem:[#allocation8 + $0x30] sm:$0xff]  ;;  %v5364_v39 = vld [vmem:[#allocation8 + $0x20] sm:$0xff]  ;;  %v5370_v41 = vld [vmem:[#allocation8 + $0x18] sm:$0xff] }
  0x78   : > { %402 = vmatprep.subr.mxu0 %v5283_v14  ;;  %3927 = vmatpush3.msra.mxu1 %v5317_v25  ;;  %v5367_v40 = vld [vmem:[#allocation8 + $0xa0] sm:$0xff]  ;;  %v5374_v42 = vld [vmem:[#allocation8 + $0x8] sm:$0xff]  ;;  %v5384_v45 = vld [vmem:[#allocation2] sm:$0xff] }
  0x79   : > { %403 = vmatpush1.msra.mxu0 %v5288_v16  ;;  %3928 = vmatprep.subr.mxu1 %v6987_v5  ;;  %7053 = vst [vmem:[#allocation19_spill] sm:$0xff] %v5374_v42  ;;  %v5377_v43 = vld [vmem:[#allocation8 + $0x88] sm:$0xff]  ;;  %v5380_v44 = vld [vmem:[#allocation8] sm:$0xff]  ;;  %v5387_v46 = vld [vmem:[#allocation8 + $0x70] sm:$0xff] }
  0x7a   : > { %404 = vmatprep.subr.mxu0 %v5294_v18  ;;  %3929 = vmatpush3.msra.mxu1 %v5327_v28  ;;  %7054 = vst [vmem:[#allocation20_spill] sm:$0xff] %v5380_v44  ;;  %v5393_v47 = vld [vmem:[#allocation8 + $0x58] sm:$0xff]  ;;  %v5398_v48 = vld [vmem:[#allocation8 + $0x40] sm:$0xff]  ;;  %v5404_v49 = vld [vmem:[#allocation8 + $0x28] sm:$0xff] }
  0x7b   : > { %405 = vmatpush1.msra.mxu0 %v5300_v20  ;;  %3930 = vmatprep.subr.mxu1 %v6987_v5  ;;  %7055 = vst [vmem:[#allocation21_spill] sm:$0xff] %v5404_v49  ;;  %v5410_v50 = vld [vmem:[#allocation8 + $0x10] sm:$0xff]  ;;  %v387_v51 = vld [vmem:[%s5229_s11] sm:$0xff]  ;;  %v388_v55 = vld [vmem:[%s5229_s11 + $0x8] sm:$0xff] }
  0x7c   : > { %406 = vmatprep.subr.mxu0 %v5304_v21  ;;  %3931 = vmatpush3.msra.mxu1 %v5337_v31  ;;  %7056 = vst [vmem:[#allocation22_spill] sm:$0xff] %v5410_v50  ;;  %v5486_v0 = vld [vmem:[%s6978_s2] ss:$0 sm:$0xff] }
  0x7d   : > { %407 = vmatpush1.msra.mxu0 %v5310_v23  ;;  %3932 = vmatprep.subr.mxu1 %v6987_v5 }
  0x7e   : > { %408 = vmatprep.subr.mxu0 %v5314_v24  ;;  %3933 = vmatpush3.msra.mxu1 %v5347_v34 }
  0x7f   : > { %409 = vmatpush1.msra.mxu0 %v5320_v26  ;;  %3934 = vmatprep.subr.mxu1 %v6987_v5 }
  0x80   : > { %410 = vmatprep.subr.mxu0 %v5324_v27  ;;  %3935 = vmatpush3.msra.mxu1 %v5357_v37 }
  0x81   : > { %411 = vmatpush1.msra.mxu0 %v5330_v29  ;;  %3936 = vmatprep.subr.mxu1 %v6987_v5 }
  0x82   : > { %412 = vmatprep.subr.mxu0 %v5334_v30  ;;  %3937 = vmatpush3.msra.mxu1 %v5367_v40 }
  0x83   : > { %413 = vmatpush1.msra.mxu0 %v5340_v32  ;;  %3938 = vmatprep.subr.mxu1 %v6987_v5 }
  0x84   : > { %414 = vmatprep.subr.mxu0 %v5344_v33  ;;  %3939 = vmatpush3.msra.mxu1 %v5377_v43 }
  0x85   : > { %415 = vmatpush1.msra.mxu0 %v5350_v35  ;;  %3940 = vmatprep.subr.mxu1 %v6987_v5 }
  0x86   : > { %416 = vmatprep.subr.mxu0 %v5354_v36  ;;  %3941 = vmatpush3.msra.mxu1 %v5387_v46 }
  0x87   : > { %417 = vmatpush1.msra.mxu0 %v5360_v38  ;;  %3942 = vmatprep.subr.mxu1 %v6987_v5 }
  0x88   : > { %418 = vmatprep.subr.mxu0 %v5364_v39  ;;  %3943 = vmatpush3.msra.mxu1 %v5393_v47 }
  0x89   : > { %419 = vmatpush1.msra.mxu0 %v5370_v41  ;;  %3944 = vmatprep.subr.mxu1 %v6987_v5 }
  0x8a   : > { %420 = vmatprep.subr.mxu0 %v5374_v42  ;;  %3945 = vmatpush3.msra.mxu1 %v5398_v48 }
  0x8b   : > { %421 = vmatpush1.msra.mxu0 %v5380_v44  ;;  %3946 = vmatprep.subr.mxu1 %v6987_v5 }
  0x8c   : > { %455 = vmatmul.mubr.f32.vlgmr.msra.gmra.mxu0 %v5384_v45  ;;  %564 = vmatprep.subr.mxu0 %v5245_v1 }
  0x8d   : > { %565 = vmatpush1.msra.mxu0 %v5247_v2  ;;  %3947 = vmatpush3.msra.mxu1 %v5404_v49 }
  0x8e   : > { %566 = vmatprep.subr.mxu0 %v5249_v3  ;;  %3948 = vmatprep.subr.mxu1 %v6987_v5 }
  0x8f   : > { %567 = vmatpush1.msra.mxu0 %v5252_v4  ;;  %3949 = vmatpush3.msra.mxu1 %v5410_v50 }
  0x90   : > { %568 = vmatprep.subr.mxu0 %v5256_v6  ;;  %3951 = vmatmul.mubr.f32.vlgmr.msra.gmra.mxu1 %v5384_v45 }
  0x91   : > { %569 = vmatpush1.msra.mxu0 %v5260_v7  ;;  %3953 = vmatprep.subr.mxu1 %v6987_v5 }
  0x92   : > { %570 = vmatprep.subr.mxu0 %v5265_v8  ;;  %3954 = vmatpush3.msra.mxu1 %v5285_v15 }
  0x93   : > { %571 = vmatpush1.msra.mxu0 %v5268_v9  ;;  %3955 = vmatprep.subr.mxu1 %v6987_v5 }
  0x94   : > { %572 = vmatprep.subr.mxu0 %v5271_v10  ;;  %3956 = vmatpush3.msra.mxu1 %v5291_v17 }
  0x95   : > { %573 = vmatpush1.msra.mxu0 %v5274_v11  ;;  %3957 = vmatprep.subr.mxu1 %v6987_v5 }
  0x96   : > { %574 = vmatprep.subr.mxu0 %v5277_v12  ;;  %3958 = vmatpush3.msra.mxu1 %v5297_v19 }
  0x97   : > { %575 = vmatpush1.msra.mxu0 %v5280_v13  ;;  %3959 = vmatprep.subr.mxu1 %v6987_v5 }
  0x98   : > { %576 = vmatprep.subr.mxu0 %v5283_v14  ;;  %3960 = vmatpush3.msra.mxu1 %v5307_v22 }
  0x99   : > { %577 = vmatpush1.msra.mxu0 %v5288_v16  ;;  %3961 = vmatprep.subr.mxu1 %v6987_v5 }
  0x9a   : > { %578 = vmatprep.subr.mxu0 %v5294_v18  ;;  %3962 = vmatpush3.msra.mxu1 %v5317_v25 }
  0x9b   : > { %579 = vmatpush1.msra.mxu0 %v5300_v20  ;;  %3963 = vmatprep.subr.mxu1 %v6987_v5 }
  0x9c   : > { %580 = vmatprep.subr.mxu0 %v5304_v21  ;;  %3964 = vmatpush3.msra.mxu1 %v5327_v28 }
  0x9d   : > { %581 = vmatpush1.msra.mxu0 %v5310_v23  ;;  %3965 = vmatprep.subr.mxu1 %v6987_v5 }
  0x9e   : > { %582 = vmatprep.subr.mxu0 %v5314_v24  ;;  %3966 = vmatpush3.msra.mxu1 %v5337_v31 }
  0x9f   : > { %583 = vmatpush1.msra.mxu0 %v5320_v26  ;;  %3967 = vmatprep.subr.mxu1 %v6987_v5 }
  0xa0   : > { %584 = vmatprep.subr.mxu0 %v5324_v27  ;;  %3968 = vmatpush3.msra.mxu1 %v5347_v34 }
  0xa1   : > { %585 = vmatpush1.msra.mxu0 %v5330_v29  ;;  %3969 = vmatprep.subr.mxu1 %v6987_v5 }
  0xa2   : > { %586 = vmatprep.subr.mxu0 %v5334_v30  ;;  %3970 = vmatpush3.msra.mxu1 %v5357_v37 }
  0xa3   : > { %587 = vmatpush1.msra.mxu0 %v5340_v32  ;;  %3971 = vmatprep.subr.mxu1 %v6987_v5 }
  0xa4   : > { %588 = vmatprep.subr.mxu0 %v5344_v33  ;;  %3972 = vmatpush3.msra.mxu1 %v5367_v40 }
  0xa5   : > { %589 = vmatpush1.msra.mxu0 %v5350_v35  ;;  %3973 = vmatprep.subr.mxu1 %v6987_v5 }
  0xa6   : > { %590 = vmatprep.subr.mxu0 %v5354_v36  ;;  %3974 = vmatpush3.msra.mxu1 %v5377_v43 }
  0xa7   : > { %591 = vmatpush1.msra.mxu0 %v5360_v38  ;;  %3975 = vmatprep.subr.mxu1 %v6987_v5 }
  0xa8   : > { %592 = vmatprep.subr.mxu0 %v5364_v39  ;;  %3976 = vmatpush3.msra.mxu1 %v5387_v46 }
  0xa9   : > { %593 = vmatpush1.msra.mxu0 %v5370_v41  ;;  %3977 = vmatprep.subr.mxu1 %v6987_v5 }
  0xaa   : > { %594 = vmatprep.subr.mxu0 %v5374_v42  ;;  %3978 = vmatpush3.msra.mxu1 %v5393_v47 }
  0xab   : > { %595 = vmatpush1.msra.mxu0 %v5380_v44  ;;  %628 = vmatprep.mubr.f32.mxu0 %v6987_v5 }
  0xac   : > { %3979 = vmatprep.subr.mxu1 %v6987_v5  ;;  %3985 = vmatprep.mubr.msk.f32.mxu1 %vm5053_vm0, %v6987_v5 }
  0xad   : > { %3980 = vmatpush3.msra.mxu1 %v5398_v48  ;;  %733 = vmatprep.subr.mxu0 %v5245_v1 }
  0xae   : > { %3981 = vmatprep.subr.mxu1 %v6987_v5 }
  0xaf   : > { %3982 = vmatpush3.msra.mxu1 %v5404_v49 }
  0xb0   : > { %3983 = vmatprep.subr.mxu1 %v6987_v5 }
  0xb1   : > { %3984 = vmatpush3.msra.mxu1 %v5410_v50 }
  0xb2   : > { %3988 = vmatprep.subr.mxu1 %v6987_v5  ;;  %v389_v5 = vld [vmem:[%s5229_s11 + $0x10] sm:$0xff] }
 0x14c   : > { %v456_v52 = vpop.f32.mrf.mxu0 }
 0x14d   : > { %v531_v53 = vadd.f32 %v456_v52, %v387_v51 }
 0x14e   : > { %v458_v56 = vpop.f32.mrf.mxu0 }
 0x14f   : > { %v3562_v54 = vmul.f32 -1.442695, %v531_v53  ;;  %v538_v57 = vadd.f32 %v458_v56, %v388_v55 }
 0x150   : > { %v527_v58 = vpop.f32.mrf.mxu1 }
 0x151   : > { %4609 = vpow2.f32 %v3562_v54  ;;  %v3563_v59 = vmul.f32 -1.442695, %v538_v57  ;;  %v551_v52 = vadd.f32 %v5486_v0, %v527_v58 }
 0x152   : > { %v3952_v60 = vpop.f32.mrf.mxu1 }
 0x153   : > { %4611 = vpow2.f32 %v3563_v59 }
 0x15e   : > { %v4610_v61 = vpop.eup %4609 }
 0x15f   : > { %v535_v62 = vadd.f32 1.0, %v4610_v61 }
 0x160   : > { %v4612_v63 = vpop.eup %4611 }
 0x161   : > { %4613 = vrcp.f32 %v535_v62  ;;  %v542_v51 = vadd.f32 1.0, %v4612_v63 }
 0x163   : > { %4615 = vrcp.f32 %v542_v51 }
 0x16e   : > { %v4614_v53 = vpop.eup %4613 }
 0x16f   : > { %v552_v54 = vmul.f32 %v4614_v53, %v551_v52 }
 0x170   : > { %v4616_v56 = vpop.eup %4615 }
 0x171   : > { %v553_v55 = vadd.f32 %v552_v54, %v389_v5  ;;  %v555_v57 = vsub.f32 1.0, %v4616_v56  ;;  %v557_v61 = vmul.f32 %v4616_v56, %v5384_v45  ;;  %v7058_v5 = vmov 0.0   ;;  %v3565_v45 = vld [vmem:[%s5229_s11 + $0x18] sm:$0xff]  ;;  %v3566_v54 = vld [vmem:[%s5229_s11 + $0x20] sm:$0xff] }
 0x173   : > { %4617 = vtanh.f32 %v553_v55 }
 0x180   : > { %v4618_v59 = vpop.eup %4617 }
 0x181   : > { %v556_v60 = vmul.f32 %v4618_v59, %v555_v57 }
 0x183   : > { %v5491_v62 = vadd.f32 %v557_v61, %v556_v60 }
 0x185   : > { %7057 = vst [vmem:[#allocation23_spill] sm:$0xff] %v5491_v62  ;;  %629 = vmatmul.mubr.f32.vlgmr.msra.gmra.mxu0 %v5491_v62  ;;  %3986 = vmatmul.mubr.f32.vlgmr.msra.gmra.mxu1 %v5491_v62 }
 0x186   : > { %734 = vmatpush1.msra.mxu0 %v5247_v2  ;;  %3989 = vmatpush3.msra.mxu1 %v5285_v15 }
 0x187   : > { %735 = vmatprep.subr.mxu0 %v5249_v3  ;;  %3990 = vmatprep.subr.mxu1 %v7058_v5 }
 0x188   : > { %736 = vmatpush1.msra.mxu0 %v5252_v4  ;;  %3991 = vmatpush3.msra.mxu1 %v5291_v17 }
 0x189   : > { %737 = vmatprep.subr.mxu0 %v5256_v6  ;;  %3992 = vmatprep.subr.mxu1 %v7058_v5 }
 0x18a   : > { %738 = vmatpush1.msra.mxu0 %v5260_v7  ;;  %3993 = vmatpush3.msra.mxu1 %v5297_v19 }
 0x18b   : > { %739 = vmatprep.subr.mxu0 %v5265_v8  ;;  %3994 = vmatprep.subr.mxu1 %v7058_v5 }
 0x18c   : > { %740 = vmatpush1.msra.mxu0 %v5268_v9  ;;  %3995 = vmatpush3.msra.mxu1 %v5307_v22 }
 0x18d   : > { %741 = vmatprep.subr.mxu0 %v5271_v10  ;;  %3996 = vmatprep.subr.mxu1 %v7058_v5 }
 0x18e   : > { %742 = vmatpush1.msra.mxu0 %v5274_v11  ;;  %3997 = vmatpush3.msra.mxu1 %v5317_v25 }
 0x18f   : > { %743 = vmatprep.subr.mxu0 %v5277_v12  ;;  %3998 = vmatprep.subr.mxu1 %v7058_v5 }
 0x190   : > { %744 = vmatpush1.msra.mxu0 %v5280_v13  ;;  %3999 = vmatpush3.msra.mxu1 %v5327_v28 }
 0x191   : > { %745 = vmatprep.subr.mxu0 %v5283_v14  ;;  %4000 = vmatprep.subr.mxu1 %v7058_v5 }
 0x192   : > { %746 = vmatpush1.msra.mxu0 %v5288_v16  ;;  %4001 = vmatpush3.msra.mxu1 %v5337_v31 }
 0x193   : > { %747 = vmatprep.subr.mxu0 %v5294_v18  ;;  %4002 = vmatprep.subr.mxu1 %v7058_v5 }
 0x194   : > { %748 = vmatpush1.msra.mxu0 %v5300_v20  ;;  %4003 = vmatpush3.msra.mxu1 %v5347_v34 }
 0x195   : > { %749 = vmatprep.subr.mxu0 %v5304_v21  ;;  %4004 = vmatprep.subr.mxu1 %v7058_v5 }
 0x196   : > { %750 = vmatpush1.msra.mxu0 %v5310_v23  ;;  %4005 = vmatpush3.msra.mxu1 %v5357_v37 }
 0x197   : > { %751 = vmatprep.subr.mxu0 %v5314_v24  ;;  %4006 = vmatprep.subr.mxu1 %v7058_v5 }
 0x198   : > { %752 = vmatpush1.msra.mxu0 %v5320_v26  ;;  %4007 = vmatpush3.msra.mxu1 %v5367_v40 }
 0x199   : > { %753 = vmatprep.subr.mxu0 %v5324_v27  ;;  %4008 = vmatprep.subr.mxu1 %v7058_v5 }
 0x19a   : > { %754 = vmatpush1.msra.mxu0 %v5330_v29  ;;  %4009 = vmatpush3.msra.mxu1 %v5377_v43 }
 0x19b   : > { %755 = vmatprep.subr.mxu0 %v5334_v30  ;;  %4010 = vmatprep.subr.mxu1 %v7058_v5 }
 0x19c   : > { %756 = vmatpush1.msra.mxu0 %v5340_v32  ;;  %4011 = vmatpush3.msra.mxu1 %v5387_v46 }
 0x19d   : > { %757 = vmatprep.subr.mxu0 %v5344_v33  ;;  %4012 = vmatprep.subr.mxu1 %v7058_v5 }
 0x19e   : > { %758 = vmatpush1.msra.mxu0 %v5350_v35  ;;  %4013 = vmatpush3.msra.mxu1 %v5393_v47 }
 0x19f   : > { %759 = vmatprep.subr.mxu0 %v5354_v36  ;;  %4014 = vmatprep.subr.mxu1 %v7058_v5 }
 0x1a0   : > { %760 = vmatpush1.msra.mxu0 %v5360_v38  ;;  %4015 = vmatpush3.msra.mxu1 %v5398_v48 }
 0x1a1   : > { %761 = vmatprep.subr.mxu0 %v5364_v39  ;;  %4016 = vmatprep.subr.mxu1 %v7058_v5 }
 0x1a2   : > { %762 = vmatpush1.msra.mxu0 %v5370_v41  ;;  %4017 = vmatpush3.msra.mxu1 %v5404_v49 }
 0x1a3   : > { %763 = vmatprep.subr.mxu0 %v5374_v42  ;;  %4018 = vmatprep.subr.mxu1 %v7058_v5  ;;  %v3567_v42 = vld [vmem:[%s5229_s11 + $0x28] sm:$0xff] }
 0x1a4   : > { %764 = vmatpush1.msra.mxu0 %v5380_v44  ;;  %797 = vmatprep.mubr.f32.mxu0 %v7058_v5 }
 0x1a5   : > { %4019 = vmatpush3.msra.mxu1 %v5410_v50  ;;  %4020 = vmatprep.mubr.msk.f32.mxu1 %vm5053_vm0, %v7058_v5 }
 0x1a6   : > { %902 = vmatprep.subr.mxu0 %v5245_v1  ;;  %4023 = vmatprep.subr.mxu1 %v7058_v5 }
 0x245   : > { %v630_v58 = vpop.f32.mrf.mxu0  ;;  %v701_v63 = vpop.f32.mrf.mxu1 }
 0x246   : > { %v705_v51 = vadd.f32 %v3565_v45, %v630_v58  ;;  %v719_v50 = vadd.f32 %v5486_v0, %v701_v63  ;;  %v3570_v63 = vld [vmem:[%s5229_s11 + $0x30] sm:$0xff] }
 0x247   : > { %v3987_v52 = vpop.f32.mrf.mxu1  ;;  %v632_v55 = vpop.f32.mrf.mxu0 }
 0x248   : > { %v3568_v53 = vmul.f32 -1.442695, %v705_v51  ;;  %v712_v56 = vadd.f32 %v3566_v54, %v632_v55 }
 0x24a   : > { %4619 = vpow2.f32 %v3568_v53  ;;  %v3569_v57 = vmul.f32 -1.442695, %v712_v56 }
 0x24c   : > { %4621 = vpow2.f32 %v3569_v57 }
 0x257   : > { %v4620_v59 = vpop.eup %4619 }
 0x258   : > { %v709_v60 = vadd.f32 1.0, %v4620_v59 }
 0x259   : > { %v4622_v61 = vpop.eup %4621 }
 0x25a   : > { %4623 = vrcp.f32 %v709_v60  ;;  %v716_v1 = vadd.f32 1.0, %v4622_v61 }
 0x25c   : > { %4625 = vrcp.f32 %v716_v1  ;;  %v7060_v1 = vld [vmem:[#allocation21_spill] sm:$0xff] }
 0x267   : > { %v4624_v44 = vpop.eup %4623 }
 0x268   : > { %v720_v49 = vmul.f32 %v4624_v44, %v719_v50  ;;  %v7062_v44 = vld [vmem:[#allocation20_spill] sm:$0xff]  ;;  %v7064_v50 = vld [vmem:[#allocation18_spill] sm:$0xff] }
 0x269   : > { %v4626_v58 = vpop.eup %4625 }
 0x26a   : > { %v721_v45 = vadd.f32 %v3567_v42, %v720_v49  ;;  %v723_v51 = vsub.f32 1.0, %v4626_v58  ;;  %v725_v54 = vmul.f32 %v4626_v58, %v5491_v62  ;;  %v7061_v42 = vld [vmem:[#allocation19_spill] sm:$0xff]  ;;  %v7063_v49 = vld [vmem:[#allocation22_spill] sm:$0xff] }
 0x26c   : > { %4627 = vtanh.f32 %v721_v45  ;;  %v3571_v45 = vld [vmem:[%s5229_s11 + $0x38] sm:$0xff] }
 0x279   : > { %v4628_v52 = vpop.eup %4627 }
 0x27a   : > { %v724_v53 = vmul.f32 %v4628_v52, %v723_v51 }
 0x27c   : > { %v5567_v55 = vadd.f32 %v725_v54, %v724_v53 }
 0x27e   : > { %7059 = vst [vmem:[#allocation24_spill] sm:$0xff] %v5567_v55  ;;  %798 = vmatmul.mubr.f32.vlgmr.msra.gmra.mxu0 %v5567_v55  ;;  %4021 = vmatmul.mubr.f32.vlgmr.msra.gmra.mxu1 %v5567_v55 }
 0x27f   : > { %903 = vmatpush1.msra.mxu0 %v5247_v2  ;;  %4024 = vmatpush3.msra.mxu1 %v5285_v15 }
 0x280   : > { %904 = vmatprep.subr.mxu0 %v5249_v3  ;;  %4025 = vmatprep.subr.mxu1 %v7058_v5 }
 0x281   : > { %905 = vmatpush1.msra.mxu0 %v5252_v4  ;;  %4026 = vmatpush3.msra.mxu1 %v5291_v17 }
 0x282   : > { %906 = vmatprep.subr.mxu0 %v5256_v6  ;;  %4027 = vmatprep.subr.mxu1 %v7058_v5 }
 0x283   : > { %907 = vmatpush1.msra.mxu0 %v5260_v7  ;;  %4028 = vmatpush3.msra.mxu1 %v5297_v19 }
 0x284   : > { %908 = vmatprep.subr.mxu0 %v5265_v8  ;;  %4029 = vmatprep.subr.mxu1 %v7058_v5 }
 0x285   : > { %909 = vmatpush1.msra.mxu0 %v5268_v9  ;;  %4030 = vmatpush3.msra.mxu1 %v5307_v22 }
 0x286   : > { %910 = vmatprep.subr.mxu0 %v5271_v10  ;;  %4031 = vmatprep.subr.mxu1 %v7058_v5 }
 0x287   : > { %911 = vmatpush1.msra.mxu0 %v5274_v11  ;;  %4032 = vmatpush3.msra.mxu1 %v5317_v25 }
 0x288   : > { %912 = vmatprep.subr.mxu0 %v5277_v12  ;;  %4033 = vmatprep.subr.mxu1 %v7058_v5 }
 0x289   : > { %913 = vmatpush1.msra.mxu0 %v5280_v13  ;;  %4034 = vmatpush3.msra.mxu1 %v5327_v28 }
 0x28a   : > { %914 = vmatprep.subr.mxu0 %v5283_v14  ;;  %4035 = vmatprep.subr.mxu1 %v7058_v5 }
 0x28b   : > { %915 = vmatpush1.msra.mxu0 %v5288_v16  ;;  %4036 = vmatpush3.msra.mxu1 %v5337_v31 }
 0x28c   : > { %916 = vmatprep.subr.mxu0 %v5294_v18  ;;  %4037 = vmatprep.subr.mxu1 %v7058_v5 }
 0x28d   : > { %917 = vmatpush1.msra.mxu0 %v5300_v20  ;;  %4038 = vmatpush3.msra.mxu1 %v5347_v34 }
 0x28e   : > { %918 = vmatprep.subr.mxu0 %v5304_v21  ;;  %4039 = vmatprep.subr.mxu1 %v7058_v5 }
 0x28f   : > { %919 = vmatpush1.msra.mxu0 %v5310_v23  ;;  %4040 = vmatpush3.msra.mxu1 %v5357_v37 }
 0x290   : > { %920 = vmatprep.subr.mxu0 %v5314_v24  ;;  %4041 = vmatprep.subr.mxu1 %v7058_v5 }
 0x291   : > { %921 = vmatpush1.msra.mxu0 %v5320_v26  ;;  %4042 = vmatpush3.msra.mxu1 %v5367_v40 }
 0x292   : > { %922 = vmatprep.subr.mxu0 %v5324_v27  ;;  %4043 = vmatprep.subr.mxu1 %v7058_v5 }
 0x293   : > { %923 = vmatpush1.msra.mxu0 %v5330_v29  ;;  %4044 = vmatpush3.msra.mxu1 %v5377_v43 }
 0x294   : > { %924 = vmatprep.subr.mxu0 %v5334_v30  ;;  %4045 = vmatprep.subr.mxu1 %v7058_v5 }
 0x295   : > { %925 = vmatpush1.msra.mxu0 %v5340_v32  ;;  %4046 = vmatpush3.msra.mxu1 %v5387_v46 }
 0x296   : > { %926 = vmatprep.subr.mxu0 %v5344_v33  ;;  %4047 = vmatprep.subr.mxu1 %v7058_v5 }
 0x297   : > { %927 = vmatpush1.msra.mxu0 %v5350_v35  ;;  %4048 = vmatpush3.msra.mxu1 %v5393_v47 }
 0x298   : > { %928 = vmatprep.subr.mxu0 %v5354_v36  ;;  %4049 = vmatprep.subr.mxu1 %v7058_v5 }
 0x299   : > { %929 = vmatpush1.msra.mxu0 %v5360_v38  ;;  %4050 = vmatpush3.msra.mxu1 %v5398_v48 }
 0x29a   : > { %930 = vmatprep.subr.mxu0 %v5364_v39  ;;  %4051 = vmatprep.subr.mxu1 %v7058_v5 }
 0x29b   : > { %931 = vmatpush1.msra.mxu0 %v5370_v41  ;;  %4052 = vmatpush3.msra.mxu1 %v7060_v1 }
 0x29c   : > { %932 = vmatprep.subr.mxu0 %v7061_v42  ;;  %4053 = vmatprep.subr.mxu1 %v7058_v5  ;;  %v3572_v42 = vld [vmem:[%s5229_s11 + $0x40] sm:$0xff] }
 0x29d   : > { %933 = vmatpush1.msra.mxu0 %v7062_v44  ;;  %966 = vmatprep.mubr.f32.mxu0 %v7058_v5 }
 0x29e   : > { %4054 = vmatpush3.msra.mxu1 %v7063_v49  ;;  %4055 = vmatprep.mubr.msk.f32.mxu1 %vm5053_vm0, %v7058_v5 }
 0x29f   : > { %1071 = vmatprep.subr.mxu0 %v7064_v50  ;;  %4058 = vmatprep.subr.mxu1 %v7058_v5 }
 0x33e   : > { %v799_v56 = vpop.f32.mrf.mxu0  ;;  %v870_v57 = vpop.f32.mrf.mxu1 }
 0x33f   : > { %v874_v59 = vadd.f32 %v3570_v63, %v799_v56  ;;  %v888_v49 = vadd.f32 %v5486_v0, %v870_v57 }
 0x340   : > { %v4022_v60 = vpop.f32.mrf.mxu1  ;;  %v801_v58 = vpop.f32.mrf.mxu0 }
 0x341   : > { %v3573_v61 = vmul.f32 -1.442695, %v874_v59  ;;  %v881_v51 = vadd.f32 %v3571_v45, %v801_v58 }
 0x343   : > { %4629 = vpow2.f32 %v3573_v61  ;;  %v3574_v52 = vmul.f32 -1.442695, %v881_v51 }
 0x345   : > { %4631 = vpow2.f32 %v3574_v52  ;;  %v3576_v52 = vld [vmem:[%s5229_s11 + $0x50] sm:$0xff] }
 0x350   : > { %v4630_v53 = vpop.eup %4629 }
 0x351   : > { %v878_v54 = vadd.f32 1.0, %v4630_v53 }
 0x352   : > { %v4632_v62 = vpop.eup %4631 }
 0x353   : > { %4633 = vrcp.f32 %v878_v54  ;;  %v885_v50 = vadd.f32 1.0, %v4632_v62  ;;  %v7069_v62 = vld [vmem:[#allocation22_spill] sm:$0xff] }
 0x355   : > { %4635 = vrcp.f32 %v885_v50 }
 0x360   : > { %v4634_v44 = vpop.eup %4633 }
 0x361   : > { %v889_v1 = vmul.f32 %v4634_v44, %v888_v49 }
 0x362   : > { %v4636_v56 = vpop.eup %4635 }
 0x363   : > { %v890_v63 = vadd.f32 %v3572_v42, %v889_v1  ;;  %v892_v59 = vsub.f32 1.0, %v4636_v56  ;;  %v894_v45 = vmul.f32 %v4636_v56, %v5567_v55  ;;  %v7070_v1 = vld [vmem:[#allocation18_spill] sm:$0xff]  ;;  %v3575_v42 = vld [vmem:[%s5229_s11 + $0x48] sm:$0xff]  ;;  %v3577_v55 = vld [vmem:[%s5229_s11 + $0x58] sm:$0xff] }
 0x365   : > { %4637 = vtanh.f32 %v890_v63 }
 0x372   : > { %v4638_v60 = vpop.eup %4637 }
 0x373   : > { %v893_v61 = vmul.f32 %v4638_v60, %v892_v59 }
 0x375   : > { %v5643_v58 = vadd.f32 %v894_v45, %v893_v61 }
 0x377   : > { %7065 = vst [vmem:[#allocation25_spill] sm:$0xff] %v5643_v58  ;;  %967 = vmatmul.mubr.f32.vlgmr.msra.gmra.mxu0 %v5643_v58  ;;  %4056 = vmatmul.mubr.f32.vlgmr.msra.gmra.mxu1 %v5643_v58 }
 0x378   : > { %1072 = vmatpush1.msra.mxu0 %v5247_v2  ;;  %4059 = vmatpush3.msra.mxu1 %v5285_v15  ;;  %v7066_v2 = vld [vmem:[#allocation21_spill] sm:$0xff] }
 0x379   : > { %1073 = vmatprep.subr.mxu0 %v5249_v3  ;;  %4060 = vmatprep.subr.mxu1 %v7058_v5  ;;  %v7067_v3 = vld [vmem:[#allocation19_spill] sm:$0xff] }
 0x37a   : > { %1074 = vmatpush1.msra.mxu0 %v5252_v4  ;;  %4061 = vmatpush3.msra.mxu1 %v5291_v17  ;;  %v7068_v4 = vld [vmem:[#allocation20_spill] sm:$0xff] }
 0x37b   : > { %1075 = vmatprep.subr.mxu0 %v5256_v6  ;;  %4062 = vmatprep.subr.mxu1 %v7058_v5 }
 0x37c   : > { %1076 = vmatpush1.msra.mxu0 %v5260_v7  ;;  %4063 = vmatpush3.msra.mxu1 %v5297_v19 }
 0x37d   : > { %1077 = vmatprep.subr.mxu0 %v5265_v8  ;;  %4064 = vmatprep.subr.mxu1 %v7058_v5 }
 0x37e   : > { %1078 = vmatpush1.msra.mxu0 %v5268_v9  ;;  %4065 = vmatpush3.msra.mxu1 %v5307_v22 }
 0x37f   : > { %1079 = vmatprep.subr.mxu0 %v5271_v10  ;;  %4066 = vmatprep.subr.mxu1 %v7058_v5 }
 0x380   : > { %1080 = vmatpush1.msra.mxu0 %v5274_v11  ;;  %4067 = vmatpush3.msra.mxu1 %v5317_v25 }
 0x381   : > { %1081 = vmatprep.subr.mxu0 %v5277_v12  ;;  %4068 = vmatprep.subr.mxu1 %v7058_v5 }
 0x382   : > { %1082 = vmatpush1.msra.mxu0 %v5280_v13  ;;  %4069 = vmatpush3.msra.mxu1 %v5327_v28 }
 0x383   : > { %1083 = vmatprep.subr.mxu0 %v5283_v14  ;;  %4070 = vmatprep.subr.mxu1 %v7058_v5 }
 0x384   : > { %1084 = vmatpush1.msra.mxu0 %v5288_v16  ;;  %4071 = vmatpush3.msra.mxu1 %v5337_v31 }
 0x385   : > { %1085 = vmatprep.subr.mxu0 %v5294_v18  ;;  %4072 = vmatprep.subr.mxu1 %v7058_v5 }
 0x386   : > { %1086 = vmatpush1.msra.mxu0 %v5300_v20  ;;  %4073 = vmatpush3.msra.mxu1 %v5347_v34 }
 0x387   : > { %1087 = vmatprep.subr.mxu0 %v5304_v21  ;;  %4074 = vmatprep.subr.mxu1 %v7058_v5 }
 0x388   : > { %1088 = vmatpush1.msra.mxu0 %v5310_v23  ;;  %4075 = vmatpush3.msra.mxu1 %v5357_v37 }
 0x389   : > { %1089 = vmatprep.subr.mxu0 %v5314_v24  ;;  %4076 = vmatprep.subr.mxu1 %v7058_v5 }
 0x38a   : > { %1090 = vmatpush1.msra.mxu0 %v5320_v26  ;;  %4077 = vmatpush3.msra.mxu1 %v5367_v40 }
 0x38b   : > { %1091 = vmatprep.subr.mxu0 %v5324_v27  ;;  %4078 = vmatprep.subr.mxu1 %v7058_v5 }
 0x38c   : > { %1092 = vmatpush1.msra.mxu0 %v5330_v29  ;;  %4079 = vmatpush3.msra.mxu1 %v5377_v43 }
 0x38d   : > { %1093 = vmatprep.subr.mxu0 %v5334_v30  ;;  %4080 = vmatprep.subr.mxu1 %v7058_v5 }
 0x38e   : > { %1094 = vmatpush1.msra.mxu0 %v5340_v32  ;;  %4081 = vmatpush3.msra.mxu1 %v5387_v46 }
 0x38f   : > { %1095 = vmatprep.subr.mxu0 %v5344_v33  ;;  %4082 = vmatprep.subr.mxu1 %v7058_v5 }
 0x390   : > { %1096 = vmatpush1.msra.mxu0 %v5350_v35  ;;  %4083 = vmatpush3.msra.mxu1 %v5393_v47 }
 0x391   : > { %1097 = vmatprep.subr.mxu0 %v5354_v36  ;;  %4084 = vmatprep.subr.mxu1 %v7058_v5 }
 0x392   : > { %1098 = vmatpush1.msra.mxu0 %v5360_v38  ;;  %4085 = vmatpush3.msra.mxu1 %v5398_v48 }
 0x393   : > { %1099 = vmatprep.subr.mxu0 %v5364_v39  ;;  %4086 = vmatprep.subr.mxu1 %v7058_v5 }
 0x394   : > { %1100 = vmatpush1.msra.mxu0 %v5370_v41  ;;  %4087 = vmatpush3.msra.mxu1 %v7066_v2 }
 0x395   : > { %1101 = vmatprep.subr.mxu0 %v7067_v3  ;;  %4088 = vmatprep.subr.mxu1 %v7058_v5 }
 0x396   : > { %1102 = vmatpush1.msra.mxu0 %v7068_v4  ;;  %1135 = vmatprep.mubr.f32.mxu0 %v7058_v5 }
 0x397   : > { %4089 = vmatpush3.msra.mxu1 %v7069_v62  ;;  %4090 = vmatprep.mubr.msk.f32.mxu1 %vm5053_vm0, %v7058_v5 }
 0x398   : > { %1240 = vmatprep.subr.mxu0 %v7070_v1  ;;  %4093 = vmatprep.subr.mxu1 %v7058_v5 }
 0x437   : > { %v968_v44 = vpop.f32.mrf.mxu0  ;;  %v1039_v49 = vpop.f32.mrf.mxu1 }
 0x438   : > { %v1043_v50 = vadd.f32 %v3575_v42, %v968_v44  ;;  %v1057_v45 = vadd.f32 %v5486_v0, %v1039_v49  ;;  %v5864_v49 = vld [vmem:[#allocation8 + $0xe8] sm:$0xff] }
 0x439   : > { %v4057_v57 = vpop.f32.mrf.mxu1  ;;  %v970_v53 = vpop.f32.mrf.mxu0 }
 0x43a   : > { %v3578_v51 = vmul.f32 -1.442695, %v1043_v50  ;;  %v1050_v54 = vadd.f32 %v3576_v52, %v970_v53 }
 0x43c   : > { %4639 = vpow2.f32 %v3578_v51  ;;  %v3579_v63 = vmul.f32 -1.442695, %v1050_v54  ;;  %v5723_v54 = vld [vmem:[#allocation8 + $0x168] sm:$0xff] }
 0x43e   : > { %4641 = vpow2.f32 %v3579_v63  ;;  %v5867_v63 = vld [vmem:[#allocation8 + $0xc8] sm:$0xff] }
 0x449   : > { %v4640_v56 = vpop.eup %4639 }
 0x44a   : > { %v1047_v59 = vadd.f32 1.0, %v4640_v56  ;;  %v5871_v56 = vld [vmem:[#allocation8 + $0xc0] sm:$0xff] }
 0x44b   : > { %v4642_v60 = vpop.eup %4641 }
 0x44c   : > { %4643 = vrcp.f32 %v1047_v59  ;;  %v1054_v61 = vadd.f32 1.0, %v4642_v60  ;;  %v5874_v59 = vld [vmem:[#allocation8 + $0xd0] sm:$0xff] }
 0x44d   : > { %v5877_v60 = vld [vmem:[#allocation8 + $0xb0] sm:$0xff] }
 0x44e   : > { %4645 = vrcp.f32 %v1054_v61  ;;  %v5881_v61 = vld [vmem:[#allocation8 + $0xa8] sm:$0xff] }
 0x459   : > { %v4644_v1 = vpop.eup %4643 }
 0x45a   : > { %v1058_v62 = vmul.f32 %v4644_v1, %v1057_v45  ;;  %v5884_v45 = vld [vmem:[#allocation8 + $0xb8] sm:$0xff] }
 0x45b   : > { %v4646_v44 = vpop.eup %4645  ;;  %v5887_v1 = vld [vmem:[#allocation8 + $0x98] sm:$0xff] }
 0x45c   : > { %v1059_v42 = vadd.f32 %v3577_v55, %v1058_v62  ;;  %v1061_v50 = vsub.f32 1.0, %v4646_v44  ;;  %v1063_v52 = vmul.f32 %v4646_v44, %v5643_v58  ;;  %v5727_v55 = vld [vmem:[#allocation8 + $0x158] sm:$0xff]  ;;  %v5731_v62 = vld [vmem:[#allocation8 + $0x150] sm:$0xff]  ;;  %v5894_v44 = vld [vmem:[#allocation8 + $0xa0] sm:$0xff] }
 0x45e   : > { %4647 = vtanh.f32 %v1059_v42  ;;  %v5891_v42 = vld [vmem:[#allocation8 + $0x90] sm:$0xff] }
 0x46b   : > { %v4648_v57 = vpop.eup %4647 }
 0x46c   : > { %v1062_v51 = vmul.f32 %v4648_v57, %v1061_v50  ;;  %v5897_v50 = vld [vmem:[#allocation8 + $0x80] sm:$0xff]  ;;  %v5901_v57 = vld [vmem:[#allocation8 + $0x78] sm:$0xff] }
 0x46e   : > { %v5719_v53 = vadd.f32 %v1063_v52, %v1062_v51  ;;  %v5904_v51 = vld [vmem:[#allocation8 + $0x88] sm:$0xff] }
 0x46f   : > { %v5907_v52 = vld [vmem:[#allocation8 + $0x68] sm:$0xff] }
 0x470   : > { %7071 = vst [vmem:[#allocation21_spill] sm:$0xff] %v5719_v53  ;;  %1136 = vmatmul.mubr.f32.vlgmr.msra.gmra.mxu0 %v5719_v53  ;;  %4091 = vmatmul.mubr.f32.vlgmr.msra.gmra.mxu1 %v5719_v53 }
 0x471   : > { %1241 = vmatpush1.msra.mxu0 %v5723_v54  ;;  %4094 = vmatpush3.msra.mxu1 %v5285_v15 }
 0x472   : > { %1242 = vmatprep.subr.mxu0 %v5727_v55  ;;  %4095 = vmatprep.subr.mxu1 %v7058_v5 }
 0x473   : > { %1243 = vmatpush1.msra.mxu0 %v5731_v62  ;;  %4096 = vmatpush3.msra.mxu1 %v5291_v17 }
 0x474   : > { %1244 = vmatprep.subr.mxu0 %v5256_v6  ;;  %4097 = vmatprep.subr.mxu1 %v7058_v5  ;;  %v7072_v6 = vld [vmem:[#allocation22_spill] sm:$0xff] }
 0x475   : > { %1245 = vmatpush1.msra.mxu0 %v5260_v7  ;;  %4098 = vmatpush3.msra.mxu1 %v5297_v19  ;;  %v5794_v7 = vld [vmem:[#allocation8 + $0x170] sm:$0xff] }
 0x476   : > { %1246 = vmatprep.subr.mxu0 %v5265_v8  ;;  %4099 = vmatprep.subr.mxu1 %v7058_v5  ;;  %v3580_v8 = vld [vmem:[%s5229_s11 + $0x60] sm:$0xff] }
 0x477   : > { %1247 = vmatpush1.msra.mxu0 %v5268_v9  ;;  %4100 = vmatpush3.msra.mxu1 %v5307_v22 }
 0x478   : > { %1248 = vmatprep.subr.mxu0 %v5271_v10  ;;  %4101 = vmatprep.subr.mxu1 %v7058_v5 }
 0x479   : > { %1249 = vmatpush1.msra.mxu0 %v5274_v11  ;;  %4102 = vmatpush3.msra.mxu1 %v5317_v25 }
 0x47a   : > { %1250 = vmatprep.subr.mxu0 %v5277_v12  ;;  %4103 = vmatprep.subr.mxu1 %v7058_v5 }
 0x47b   : > { %1251 = vmatpush1.msra.mxu0 %v5280_v13  ;;  %4104 = vmatpush3.msra.mxu1 %v5327_v28 }
 0x47c   : > { %1252 = vmatprep.subr.mxu0 %v5283_v14  ;;  %4105 = vmatprep.subr.mxu1 %v7058_v5  ;;  %v3581_v14 = vld [vmem:[%s5229_s11 + $0x68] sm:$0xff] }
 0x47d   : > { %1253 = vmatpush1.msra.mxu0 %v5288_v16  ;;  %4106 = vmatpush3.msra.mxu1 %v5337_v31 }
 0x47e   : > { %1254 = vmatprep.subr.mxu0 %v5294_v18  ;;  %4107 = vmatprep.subr.mxu1 %v7058_v5 }
 0x47f   : > { %1255 = vmatpush1.msra.mxu0 %v5300_v20  ;;  %4108 = vmatpush3.msra.mxu1 %v5347_v34  ;;  %v5814_v34 = vld [vmem:[#allocation8 + $0x160] sm:$0xff] }
 0x480   : > { %1256 = vmatprep.subr.mxu0 %v5304_v21  ;;  %4109 = vmatprep.subr.mxu1 %v7058_v5 }
 0x481   : > { %1257 = vmatpush1.msra.mxu0 %v5310_v23  ;;  %4110 = vmatpush3.msra.mxu1 %v5357_v37  ;;  %v5824_v37 = vld [vmem:[#allocation8 + $0x148] sm:$0xff] }
 0x482   : > { %1258 = vmatprep.subr.mxu0 %v5314_v24  ;;  %4111 = vmatprep.subr.mxu1 %v7058_v5  ;;  %v3582_v24 = vld [vmem:[%s5229_s11 + $0x70] sm:$0xff] }
 0x483   : > { %1259 = vmatpush1.msra.mxu0 %v5320_v26  ;;  %4112 = vmatpush3.msra.mxu1 %v5367_v40  ;;  %v5834_v40 = vld [vmem:[#allocation8 + $0x130] sm:$0xff] }
 0x484   : > { %1260 = vmatprep.subr.mxu0 %v5324_v27  ;;  %4113 = vmatprep.subr.mxu1 %v7058_v5 }
 0x485   : > { %1261 = vmatpush1.msra.mxu0 %v5330_v29  ;;  %4114 = vmatpush3.msra.mxu1 %v5377_v43  ;;  %v5841_v43 = vld [vmem:[#allocation8 + $0x108] sm:$0xff] }
 0x486   : > { %1262 = vmatprep.subr.mxu0 %v5334_v30  ;;  %4115 = vmatprep.subr.mxu1 %v7058_v5 }
 0x487   : > { %1263 = vmatpush1.msra.mxu0 %v5340_v32  ;;  %4116 = vmatpush3.msra.mxu1 %v5387_v46  ;;  %v5844_v46 = vld [vmem:[#allocation8 + $0x118] sm:$0xff] }
 0x488   : > { %1264 = vmatprep.subr.mxu0 %v5344_v33  ;;  %4117 = vmatprep.subr.mxu1 %v7058_v5  ;;  %v5808_v33 = vld [vmem:[#allocation8 + $0x178] sm:$0xff] }
 0x489   : > { %1265 = vmatpush1.msra.mxu0 %v5350_v35  ;;  %4118 = vmatpush3.msra.mxu1 %v5393_v47  ;;  %v5817_v35 = vld [vmem:[#allocation8 + $0x140] sm:$0xff]  ;;  %v5847_v47 = vld [vmem:[#allocation8 + $0xf8] sm:$0xff] }
 0x48a   : > { %1266 = vmatprep.subr.mxu0 %v5354_v36  ;;  %4119 = vmatprep.subr.mxu1 %v7058_v5  ;;  %v5821_v36 = vld [vmem:[#allocation8 + $0x138] sm:$0xff] }
 0x48b   : > { %1267 = vmatpush1.msra.mxu0 %v5360_v38  ;;  %4120 = vmatpush3.msra.mxu1 %v5398_v48  ;;  %v5827_v38 = vld [vmem:[#allocation8 + $0x128] sm:$0xff]  ;;  %v5851_v48 = vld [vmem:[#allocation8 + $0xf0] sm:$0xff] }
 0x48c   : > { %1268 = vmatprep.subr.mxu0 %v5364_v39  ;;  %4121 = vmatprep.subr.mxu1 %v7058_v5  ;;  %v5831_v39 = vld [vmem:[#allocation8 + $0x120] sm:$0xff] }
 0x48d   : > { %1269 = vmatpush1.msra.mxu0 %v5370_v41  ;;  %4122 = vmatpush3.msra.mxu1 %v7066_v2  ;;  %v5837_v41 = vld [vmem:[#allocation8 + $0x110] sm:$0xff]  ;;  %v5854_v2 = vld [vmem:[#allocation8 + $0x100] sm:$0xff] }
 0x48e   : > { %1270 = vmatprep.subr.mxu0 %v7067_v3  ;;  %4123 = vmatprep.subr.mxu1 %v7058_v5  ;;  %v5857_v3 = vld [vmem:[#allocation8 + $0xe0] sm:$0xff] }
 0x48f   : > { %1271 = vmatpush1.msra.mxu0 %v7068_v4  ;;  %1304 = vmatprep.mubr.f32.mxu0 %v7058_v5  ;;  %v5861_v4 = vld [vmem:[#allocation8 + $0xd8] sm:$0xff] }
 0x490   : > { %4124 = vmatpush3.msra.mxu1 %v7072_v6  ;;  %4125 = vmatprep.mubr.msk.f32.mxu1 %vm5053_vm0, %v7058_v5  ;;  %v5911_v6 = vld [vmem:[#allocation8 + $0x60] sm:$0xff] }
 0x491   : > { %1409 = vmatprep.subr.mxu0 %v5794_v7  ;;  %4128 = vmatprep.subr.mxu1 %v7058_v5 }
 0x530   : > { %v1137_v9 = vpop.f32.mrf.mxu0  ;;  %v1208_v10 = vpop.f32.mrf.mxu1 }
 0x531   : > { %v1212_v11 = vadd.f32 %v3580_v8, %v1137_v9  ;;  %v1226_v22 = vadd.f32 %v5486_v0, %v1208_v10  ;;  %v5914_v8 = vld [vmem:[#allocation8 + $0x70] sm:$0xff]  ;;  %v5921_v10 = vld [vmem:[#allocation8 + $0x48] sm:$0xff] }
 0x532   : > { %v4092_v12 = vpop.f32.mrf.mxu1  ;;  %v1139_v15 = vpop.f32.mrf.mxu0  ;;  %v5917_v9 = vld [vmem:[#allocation8 + $0x50] sm:$0xff] }
 0x533   : > { %v3583_v13 = vmul.f32 -1.442695, %v1212_v11  ;;  %v1219_v16 = vadd.f32 %v3581_v14, %v1139_v15  ;;  %v5924_v11 = vld [vmem:[#allocation8 + $0x58] sm:$0xff]  ;;  %v5934_v14 = vld [vmem:[#allocation8 + $0x40] sm:$0xff] }
 0x534   : > { %v5927_v12 = vld [vmem:[#allocation8 + $0x38] sm:$0xff]  ;;  %v5937_v15 = vld [vmem:[#allocation8 + $0x20] sm:$0xff] }
 0x535   : > { %4649 = vpow2.f32 %v3583_v13  ;;  %v3584_v17 = vmul.f32 -1.442695, %v1219_v16  ;;  %v5931_v13 = vld [vmem:[#allocation8 + $0x30] sm:$0xff]  ;;  %v5941_v16 = vld [vmem:[#allocation8 + $0x18] sm:$0xff] }
 0x537   : > { %4651 = vpow2.f32 %v3584_v17  ;;  %v5944_v17 = vld [vmem:[#allocation8 + $0x28] sm:$0xff] }
 0x538   : > { %7073 = vst [vmem:[#allocation19_spill] sm:$0xff] %v5944_v17 }
 0x542   : > { %v4650_v18 = vpop.eup %4649 }
 0x543   : > { %v1216_v19 = vadd.f32 1.0, %v4650_v18  ;;  %v5947_v18 = vld [vmem:[#allocation8 + $0x8] sm:$0xff] }
 0x544   : > { %v4652_v20 = vpop.eup %4651  ;;  %7074 = vst [vmem:[#allocation20_spill] sm:$0xff] %v5947_v18 }
 0x545   : > { %4653 = vrcp.f32 %v1216_v19  ;;  %v1223_v21 = vadd.f32 1.0, %v4652_v20  ;;  %v5951_v19 = vld [vmem:[#allocation8] sm:$0xff]  ;;  %v5955_v20 = vld [vmem:[#allocation8 + $0x10] sm:$0xff] }
 0x546   : > { %7075 = vst [vmem:[#allocation18_spill] sm:$0xff] %v5951_v19  ;;  %7076 = vst [vmem:[#allocation22_spill] sm:$0xff] %v5955_v20 }
 0x547   : > { %4655 = vrcp.f32 %v1223_v21  ;;  %v3585_v21 = vld [vmem:[%s5229_s11 + $0x78] sm:$0xff] }
 0x552   : > { %v4654_v23 = vpop.eup %4653 }
 0x553   : > { %v1227_v25 = vmul.f32 %v4654_v23, %v1226_v22 }
 0x554   : > { %v4656_v27 = vpop.eup %4655 }
 0x555   : > { %v1228_v26 = vadd.f32 %v3582_v24, %v1227_v25  ;;  %v1230_v28 = vsub.f32 1.0, %v4656_v27  ;;  %v1232_v31 = vmul.f32 %v4656_v27, %v5719_v53  ;;  %v3586_v27 = vld [vmem:[%s5229_s11 + $0x80] sm:$0xff] }
 0x557   : > { %4657 = vtanh.f32 %v1228_v26 }
 0x564   : > { %v4658_v29 = vpop.eup %4657 }
 0x565   : > { %v1231_v30 = vmul.f32 %v4658_v29, %v1230_v28 }
 0x567   : > { %v5803_v32 = vadd.f32 %v1232_v31, %v1231_v30 }
 0x569   : > { %1305 = vmatmul.mubr.f32.vlgmr.msra.gmra.mxu0 %v5803_v32  ;;  %4126 = vmatmul.mubr.f32.vlgmr.msra.gmra.mxu1 %v5803_v32 }
 0x56a   : > { %1410 = vmatpush1.msra.mxu0 %v5723_v54  ;;  %4129 = vmatpush3.msra.mxu1 %v5808_v33 }
 0x56b   : > { %1411 = vmatprep.subr.mxu0 %v5727_v55  ;;  %4130 = vmatprep.subr.mxu1 %v7058_v5 }
 0x56c   : > { %1412 = vmatpush1.msra.mxu0 %v5731_v62  ;;  %4131 = vmatpush3.msra.mxu1 %v5814_v34 }
 0x56d   : > { %1413 = vmatprep.subr.mxu0 %v5817_v35  ;;  %4132 = vmatprep.subr.mxu1 %v7058_v5 }
 0x56e   : > { %1414 = vmatpush1.msra.mxu0 %v5821_v36  ;;  %4133 = vmatpush3.msra.mxu1 %v5824_v37 }
 0x56f   : > { %1415 = vmatprep.subr.mxu0 %v5827_v38  ;;  %4134 = vmatprep.subr.mxu1 %v7058_v5 }
 0x570   : > { %1416 = vmatpush1.msra.mxu0 %v5831_v39  ;;  %4135 = vmatpush3.msra.mxu1 %v5834_v40 }
 0x571   : > { %1417 = vmatprep.subr.mxu0 %v5837_v41  ;;  %4136 = vmatprep.subr.mxu1 %v7058_v5 }
 0x572   : > { %1418 = vmatpush1.msra.mxu0 %v5841_v43  ;;  %4137 = vmatpush3.msra.mxu1 %v5844_v46 }
 0x573   : > { %1419 = vmatprep.subr.mxu0 %v5847_v47  ;;  %4138 = vmatprep.subr.mxu1 %v7058_v5 }
 0x574   : > { %1420 = vmatpush1.msra.mxu0 %v5851_v48  ;;  %4139 = vmatpush3.msra.mxu1 %v5854_v2 }
 0x575   : > { %1421 = vmatprep.subr.mxu0 %v5857_v3  ;;  %4140 = vmatprep.subr.mxu1 %v7058_v5 }
 0x576   : > { %1422 = vmatpush1.msra.mxu0 %v5861_v4  ;;  %4141 = vmatpush3.msra.mxu1 %v5864_v49 }
 0x577   : > { %1423 = vmatprep.subr.mxu0 %v5867_v63  ;;  %4142 = vmatprep.subr.mxu1 %v7058_v5 }
 0x578   : > { %1424 = vmatpush1.msra.mxu0 %v5871_v56  ;;  %4143 = vmatpush3.msra.mxu1 %v5874_v59 }
 0x579   : > { %1425 = vmatprep.subr.mxu0 %v5877_v60  ;;  %4144 = vmatprep.subr.mxu1 %v7058_v5 }
 0x57a   : > { %1426 = vmatpush1.msra.mxu0 %v5881_v61  ;;  %4145 = vmatpush3.msra.mxu1 %v5884_v45 }
 0x57b   : > { %1427 = vmatprep.subr.mxu0 %v5887_v1  ;;  %4146 = vmatprep.subr.mxu1 %v7058_v5 }
 0x57c   : > { %1428 = vmatpush1.msra.mxu0 %v5891_v42  ;;  %4147 = vmatpush3.msra.mxu1 %v5894_v44 }
 0x57d   : > { %1429 = vmatprep.subr.mxu0 %v5897_v50  ;;  %4148 = vmatprep.subr.mxu1 %v7058_v5 }
 0x57e   : > { %1430 = vmatpush1.msra.mxu0 %v5901_v57  ;;  %4149 = vmatpush3.msra.mxu1 %v5904_v51 }
 0x57f   : > { %1431 = vmatprep.subr.mxu0 %v5907_v52  ;;  %4150 = vmatprep.subr.mxu1 %v7058_v5 }
 0x580   : > { %1432 = vmatpush1.msra.mxu0 %v5911_v6  ;;  %4151 = vmatpush3.msra.mxu1 %v5914_v8 }
 0x581   : > { %1433 = vmatprep.subr.mxu0 %v5917_v9  ;;  %4152 = vmatprep.subr.mxu1 %v7058_v5 }
 0x582   : > { %1434 = vmatpush1.msra.mxu0 %v5921_v10  ;;  %4153 = vmatpush3.msra.mxu1 %v5924_v11 }
 0x583   : > { %1435 = vmatprep.subr.mxu0 %v5927_v12  ;;  %4154 = vmatprep.subr.mxu1 %v7058_v5 }
 0x584   : > { %1436 = vmatpush1.msra.mxu0 %v5931_v13  ;;  %4155 = vmatpush3.msra.mxu1 %v5934_v14 }
 0x585   : > { %1437 = vmatprep.subr.mxu0 %v5937_v15  ;;  %4156 = vmatprep.subr.mxu1 %v7058_v5 }
 0x586   : > { %1438 = vmatpush1.msra.mxu0 %v5941_v16  ;;  %4157 = vmatpush3.msra.mxu1 %v5944_v17 }
 0x587   : > { %1439 = vmatprep.subr.mxu0 %v5947_v18  ;;  %4158 = vmatprep.subr.mxu1 %v7058_v5  ;;  %v3587_v18 = vld [vmem:[%s5229_s11 + $0x88] sm:$0xff] }
 0x588   : > { %1440 = vmatpush1.msra.mxu0 %v5951_v19  ;;  %1473 = vmatprep.mubr.f32.mxu0 %v7058_v5 }
 0x589   : > { %4159 = vmatpush3.msra.mxu1 %v5955_v20  ;;  %4160 = vmatprep.mubr.msk.f32.mxu1 %vm5053_vm0, %v7058_v5 }
 0x58a   : > { %1578 = vmatprep.subr.mxu0 %v5794_v7  ;;  %4163 = vmatprep.subr.mxu1 %v7058_v5 }
 0x629   : > { %v1306_v22 = vpop.f32.mrf.mxu0  ;;  %v1377_v23 = vpop.f32.mrf.mxu1 }
 0x62a   : > { %v1381_v24 = vadd.f32 %v3585_v21, %v1306_v22  ;;  %v1395_v20 = vadd.f32 %v5486_v0, %v1377_v23  ;;  %v7077_v0 = vld [vmem:[#allocation19_spill] sm:$0xff]  ;;  %v1781_v23 = vld [vmem:[#allocation10 + $0xe8] sm:$0xff] }
 0x62b   : > { %v4127_v25 = vpop.f32.mrf.mxu1  ;;  %v1308_v28 = vpop.f32.mrf.mxu0 }
 0x62c   : > { %v3588_v26 = vmul.f32 -1.442695, %v1381_v24  ;;  %v1388_v29 = vadd.f32 %v3586_v27, %v1308_v28 }
 0x62e   : > { %4659 = vpow2.f32 %v3588_v26  ;;  %v3589_v30 = vmul.f32 -1.442695, %v1388_v29  ;;  %v1779_v29 = vld [vmem:[#allocation10 + $0xd8] sm:$0xff] }
 0x630   : > { %4661 = vpow2.f32 %v3589_v30  ;;  %v1777_v30 = vld [vmem:[#allocation10 + $0xc8] sm:$0xff] }
 0x63b   : > { %v4660_v31 = vpop.eup %4659 }
 0x63c   : > { %v1385_v53 = vadd.f32 1.0, %v4660_v31  ;;  %v1778_v31 = vld [vmem:[#allocation10 + $0xd0] sm:$0xff] }
 0x63d   : > { %v4662_v58 = vpop.eup %4661 }
 0x63e   : > { %4663 = vrcp.f32 %v1385_v53  ;;  %v1392_v7 = vadd.f32 1.0, %v4662_v58  ;;  %v7078_v58 = vld [vmem:[#allocation20_spill] sm:$0xff]  ;;  %v7079_v53 = vld [vmem:[#allocation18_spill] sm:$0xff] }
 0x640   : > { %4665 = vrcp.f32 %v1392_v7  ;;  %v1776_v7 = vld [vmem:[#allocation10 + $0xc0] sm:$0xff] }
 0x64b   : > { %v4664_v19 = vpop.eup %4663 }
 0x64c   : > { %v1396_v17 = vmul.f32 %v4664_v19, %v1395_v20  ;;  %v1782_v19 = vld [vmem:[#allocation10 + $0xf0] sm:$0xff]  ;;  %v1780_v20 = vld [vmem:[#allocation10 + $0xe0] sm:$0xff] }
 0x64d   : > { %v4666_v22 = vpop.eup %4665 }
 0x64e   : > { %v1397_v21 = vadd.f32 %v3587_v18, %v1396_v17  ;;  %v1399_v24 = vsub.f32 1.0, %v4666_v22  ;;  %v1401_v27 = vmul.f32 %v4666_v22, %v5803_v32  ;;  %v1783_v17 = vld [vmem:[#allocation10 + $0xf8] sm:$0xff]  ;;  %v1784_v18 = vld [vmem:[#allocation10 + $0x100] sm:$0xff] }
 0x64f   : > { %v1775_v22 = vld [vmem:[#allocation10 + $0xb8] sm:$0xff] }
 0x650   : > { %4667 = vtanh.f32 %v1397_v21  ;;  %v1774_v21 = vld [vmem:[#allocation10 + $0xb0] sm:$0xff] }
 0x65d   : > { %v4668_v25 = vpop.eup %4667 }
 0x65e   : > { %v1400_v26 = vmul.f32 %v4668_v25, %v1399_v24  ;;  %v1773_v24 = vld [vmem:[#allocation10 + $0xa8] sm:$0xff]  ;;  %v1771_v25 = vld [vmem:[#allocation10 + $0x98] sm:$0xff] }
 0x660   : > { %v5967_v28 = vadd.f32 %v1401_v27, %v1400_v26  ;;  %v1772_v26 = vld [vmem:[#allocation10 + $0xa0] sm:$0xff]  ;;  %v1770_v27 = vld [vmem:[#allocation10 + $0x90] sm:$0xff] }
 0x662   : > { %1474 = vmatmul.mubr.f32.vlgmr.msra.gmra.mxu0 %v5967_v28  ;;  %4161 = vmatmul.mubr.f32.vlgmr.msra.gmra.mxu1 %v5967_v28 }
 0x663   : > { %1579 = vmatpush1.msra.mxu0 %v5723_v54  ;;  %4164 = vmatpush3.msra.mxu1 %v5808_v33  ;;  %v7080_v54 = vld [vmem:[#allocation22_spill] sm:$0xff] }
 0x664   : > { %1580 = vmatprep.subr.mxu0 %v5727_v55  ;;  %4165 = vmatprep.subr.mxu1 %v7058_v5  ;;  %v1798_v55 = vld [vmem:[#allocation10 + $0x170] sm:$0xff] }
 0x665   : > { %1581 = vmatpush1.msra.mxu0 %v5731_v62  ;;  %4166 = vmatpush3.msra.mxu1 %v5814_v34  ;;  %v1799_v62 = vld [vmem:[#allocation10 + $0x178] sm:$0xff]  ;;  %v3590_v33 = vld [vmem:[%s5229_s11 + $0x90] sm:$0xff] }
 0x666   : > { %1582 = vmatprep.subr.mxu0 %v5817_v35  ;;  %4167 = vmatprep.subr.mxu1 %v7058_v5 }
 0x667   : > { %1583 = vmatpush1.msra.mxu0 %v5821_v36  ;;  %4168 = vmatpush3.msra.mxu1 %v5824_v37 }
 0x668   : > { %1584 = vmatprep.subr.mxu0 %v5827_v38  ;;  %4169 = vmatprep.subr.mxu1 %v7058_v5 }
 0x669   : > { %1585 = vmatpush1.msra.mxu0 %v5831_v39  ;;  %4170 = vmatpush3.msra.mxu1 %v5834_v40  ;;  %v3591_v39 = vld [vmem:[%s5229_s11 + $0x98] sm:$0xff] }
 0x66a   : > { %1586 = vmatprep.subr.mxu0 %v5837_v41  ;;  %4171 = vmatprep.subr.mxu1 %v7058_v5 }
 0x66b   : > { %1587 = vmatpush1.msra.mxu0 %v5841_v43  ;;  %4172 = vmatpush3.msra.mxu1 %v5844_v46 }
 0x66c   : > { %1588 = vmatprep.subr.mxu0 %v5847_v47  ;;  %4173 = vmatprep.subr.mxu1 %v7058_v5 }
 0x66d   : > { %1589 = vmatpush1.msra.mxu0 %v5851_v48  ;;  %4174 = vmatpush3.msra.mxu1 %v5854_v2 }
 0x66e   : > { %1590 = vmatprep.subr.mxu0 %v5857_v3  ;;  %4175 = vmatprep.subr.mxu1 %v7058_v5  ;;  %v6041_v3 = vld [vmem:[%s6978_s2] ss:$0 sm:$0xff] }
 0x66f   : > { %1591 = vmatpush1.msra.mxu0 %v5861_v4  ;;  %4176 = vmatpush3.msra.mxu1 %v5864_v49 }
 0x670   : > { %1592 = vmatprep.subr.mxu0 %v5867_v63  ;;  %4177 = vmatprep.subr.mxu1 %v7058_v5  ;;  %v3592_v63 = vld [vmem:[%s5229_s11 + $0xa0] sm:$0xff] }
 0x671   : > { %1593 = vmatpush1.msra.mxu0 %v5871_v56  ;;  %4178 = vmatpush3.msra.mxu1 %v5874_v59 }
 0x672   : > { %1594 = vmatprep.subr.mxu0 %v5877_v60  ;;  %4179 = vmatprep.subr.mxu1 %v7058_v5 }
 0x673   : > { %1595 = vmatpush1.msra.mxu0 %v5881_v61  ;;  %4180 = vmatpush3.msra.mxu1 %v5884_v45 }
 0x674   : > { %1596 = vmatprep.subr.mxu0 %v5887_v1  ;;  %4181 = vmatprep.subr.mxu1 %v7058_v5 }
 0x675   : > { %1597 = vmatpush1.msra.mxu0 %v5891_v42  ;;  %4182 = vmatpush3.msra.mxu1 %v5894_v44 }
 0x676   : > { %1598 = vmatprep.subr.mxu0 %v5897_v50  ;;  %4183 = vmatprep.subr.mxu1 %v7058_v5  ;;  %v1797_v50 = vld [vmem:[#allocation10 + $0x168] sm:$0xff] }
 0x677   : > { %1599 = vmatpush1.msra.mxu0 %v5901_v57  ;;  %4184 = vmatpush3.msra.mxu1 %v5904_v51  ;;  %v1795_v57 = vld [vmem:[#allocation10 + $0x158] sm:$0xff]  ;;  %v1796_v51 = vld [vmem:[#allocation10 + $0x160] sm:$0xff] }
 0x678   : > { %1600 = vmatprep.subr.mxu0 %v5907_v52  ;;  %4185 = vmatprep.subr.mxu1 %v7058_v5  ;;  %v1794_v52 = vld [vmem:[#allocation10 + $0x150] sm:$0xff] }
 0x679   : > { %1601 = vmatpush1.msra.mxu0 %v5911_v6  ;;  %4186 = vmatpush3.msra.mxu1 %v5914_v8  ;;  %v1792_v6 = vld [vmem:[#allocation10 + $0x140] sm:$0xff]  ;;  %v1793_v8 = vld [vmem:[#allocation10 + $0x148] sm:$0xff] }
 0x67a   : > { %1602 = vmatprep.subr.mxu0 %v5917_v9  ;;  %4187 = vmatprep.subr.mxu1 %v7058_v5  ;;  %v1791_v9 = vld [vmem:[#allocation10 + $0x138] sm:$0xff] }
 0x67b   : > { %1603 = vmatpush1.msra.mxu0 %v5921_v10  ;;  %4188 = vmatpush3.msra.mxu1 %v5924_v11  ;;  %v7081_v10 = vld [vmem:[#allocation23_spill] sm:$0xff]  ;;  %v1789_v11 = vld [vmem:[#allocation10 + $0x128] sm:$0xff] }
 0x67c   : > { %1604 = vmatprep.subr.mxu0 %v5927_v12  ;;  %4189 = vmatprep.subr.mxu1 %v7058_v5  ;;  %v1790_v12 = vld [vmem:[#allocation10 + $0x130] sm:$0xff] }
 0x67d   : > { %1605 = vmatpush1.msra.mxu0 %v5931_v13  ;;  %4190 = vmatpush3.msra.mxu1 %v5934_v14  ;;  %v1788_v13 = vld [vmem:[#allocation10 + $0x120] sm:$0xff]  ;;  %v1786_v14 = vld [vmem:[#allocation10 + $0x110] sm:$0xff] }
 0x67e   : > { %1606 = vmatprep.subr.mxu0 %v5937_v15  ;;  %4191 = vmatprep.subr.mxu1 %v7058_v5  ;;  %v1787_v15 = vld [vmem:[#allocation10 + $0x118] sm:$0xff] }
 0x67f   : > { %1607 = vmatpush1.msra.mxu0 %v5941_v16  ;;  %4192 = vmatpush3.msra.mxu1 %v7077_v0  ;;  %v1785_v16 = vld [vmem:[#allocation10 + $0x108] sm:$0xff]  ;;  %v1768_v0 = vld [vmem:[#allocation10 + $0x80] sm:$0xff] }
 0x680   : > { %1608 = vmatprep.subr.mxu0 %v7078_v58  ;;  %4193 = vmatprep.subr.mxu1 %v7058_v5  ;;  %v1769_v58 = vld [vmem:[#allocation10 + $0x88] sm:$0xff] }
 0x681   : > { %1609 = vmatpush1.msra.mxu0 %v7079_v53  ;;  %4194 = vmatpush3.msra.mxu1 %v7080_v54  ;;  %v1767_v53 = vld [vmem:[#allocation10 + $0x78] sm:$0xff]  ;;  %v1765_v54 = vld [vmem:[#allocation10 + $0x68] sm:$0xff] }
 0x682   : > { %1642 = vmatprep.mubr.f32.mxu0 %v7058_v5  ;;  %4195 = vmatprep.mubr.msk.f32.mxu1 %vm5053_vm0, %v7058_v5 }
 0x683   : > { %1817 = vmatprep.subr.mxu0 %v1798_v55  ;;  %4198 = vmatprep.subr.mxu1 %v1799_v62  ;;  %v1766_v55 = vld [vmem:[#allocation10 + $0x70] sm:$0xff] }
 0x722   : > { %v1475_v34 = vpop.f32.mrf.mxu0  ;;  %v1546_v35 = vpop.f32.mrf.mxu1 }
 0x723   : > { %v1550_v36 = vadd.f32 %v3590_v33, %v1475_v34  ;;  %v1564_v4 = vadd.f32 %v6041_v3, %v1546_v35  ;;  %v1762_v33 = vld [vmem:[#allocation10 + $0x50] sm:$0xff]  ;;  %v1763_v34 = vld [vmem:[#allocation10 + $0x58] sm:$0xff]  ;;  %v1761_v35 = vld [vmem:[#allocation10 + $0x48] sm:$0xff] }
 0x724   : > { %v4162_v37 = vpop.f32.mrf.mxu1  ;;  %v1477_v40 = vpop.f32.mrf.mxu0 }
 0x725   : > { %v3593_v38 = vmul.f32 -1.442695, %v1550_v36  ;;  %v1557_v41 = vadd.f32 %v3591_v39, %v1477_v40  ;;  %v1759_v36 = vld [vmem:[#allocation10 + $0x38] sm:$0xff]  ;;  %v1760_v37 = vld [vmem:[#allocation10 + $0x40] sm:$0xff]  ;;  %v1757_v40 = vld [vmem:[#allocation10 + $0x28] sm:$0xff] }
 0x726   : > { %v1756_v39 = vld [vmem:[#allocation10 + $0x20] sm:$0xff] }
 0x727   : > { %4669 = vpow2.f32 %v3593_v38  ;;  %v3594_v43 = vmul.f32 -1.442695, %v1557_v41  ;;  %v1758_v38 = vld [vmem:[#allocation10 + $0x30] sm:$0xff]  ;;  %v1755_v41 = vld [vmem:[#allocation10 + $0x18] sm:$0xff] }
 0x729   : > { %4671 = vpow2.f32 %v3594_v43  ;;  %v1753_v43 = vld [vmem:[#allocation10 + $0x8] sm:$0xff] }
 0x734   : > { %v4670_v46 = vpop.eup %4669 }
 0x735   : > { %v1554_v47 = vadd.f32 1.0, %v4670_v46  ;;  %v1754_v46 = vld [vmem:[#allocation10 + $0x10] sm:$0xff] }
 0x736   : > { %v4672_v48 = vpop.eup %4671 }
 0x737   : > { %4673 = vrcp.f32 %v1554_v47  ;;  %v1561_v2 = vadd.f32 1.0, %v4672_v48  ;;  %v1752_v47 = vld [vmem:[#allocation10] sm:$0xff] }
 0x738   : > { %v7082_v48 = vld [vmem:[#allocation24_spill] sm:$0xff] }
 0x739   : > { %4675 = vrcp.f32 %v1561_v2  ;;  %v7083_v2 = vld [vmem:[#allocation25_spill] sm:$0xff] }
 0x744   : > { %v4674_v49 = vpop.eup %4673 }
 0x745   : > { %v1565_v56 = vmul.f32 %v4674_v49, %v1564_v4  ;;  %v7084_v4 = vld [vmem:[#allocation21_spill] sm:$0xff]  ;;  %v6073_v49 = vld [vmem:[#allocation11 + $0x170] sm:$0xff] }
 0x746   : > { %v4676_v60 = vpop.eup %4675  ;;  %7085 = vst [vmem:[#allocation19_spill] sm:$0xff] %v6073_v49 }
 0x747   : > { %v1566_v59 = vadd.f32 %v3592_v63, %v1565_v56  ;;  %v1568_v61 = vsub.f32 1.0, %v4676_v60  ;;  %v1570_v42 = vmul.f32 %v4676_v60, %v5967_v28  ;;  %v6076_v63 = vld [vmem:[#allocation11 + $0x168] sm:$0xff]  ;;  %v6079_v56 = vld [vmem:[#allocation11 + $0x158] sm:$0xff] }
 0x748   : > { %v6091_v60 = vld [vmem:[#allocation11 + $0x128] sm:$0xff] }
 0x749   : > { %4677 = vtanh.f32 %v1566_v59  ;;  %v6088_v59 = vld [vmem:[#allocation11 + $0x138] sm:$0xff] }
 0x756   : > { %v4678_v45 = vpop.eup %4677 }
 0x757   : > { %v1569_v1 = vmul.f32 %v4678_v45, %v1568_v61  ;;  %v6094_v61 = vld [vmem:[#allocation11 + $0x120] sm:$0xff]  ;;  %v6097_v45 = vld [vmem:[#allocation11 + $0x110] sm:$0xff] }
 0x759   : > { %v6046_v44 = vadd.f32 %v1570_v42, %v1569_v1  ;;  %v6100_v1 = vld [vmem:[#allocation11 + $0x108] sm:$0xff]  ;;  %v6103_v42 = vld [vmem:[#allocation11 + $0xf8] sm:$0xff] }
 0x75b   : > { %1643 = vmatmul.mubr.f32.vlgmr.msra.gmra.mxu0 %v6046_v44  ;;  %4196 = vmatmul.mubr.f32.vlgmr.msra.gmra.mxu1 %v6046_v44 }
 0x75c   : > { %1818 = vmatpush1.msra.mxu0 %v1797_v50  ;;  %4199 = vmatpush3.msra.mxu1 %v1799_v62  ;;  %v1764_v62 = vld [vmem:[#allocation10 + $0x60] sm:$0xff]  ;;  %v6106_v50 = vld [vmem:[#allocation11 + $0xf0] sm:$0xff] }
 0x75d   : > { %1819 = vmatprep.subr.mxu0 %v1795_v57  ;;  %4200 = vmatprep.subr.mxu1 %v1796_v51  ;;  %v6109_v57 = vld [vmem:[#allocation11 + $0xe0] sm:$0xff] }
 0x75e   : > { %4230 = vmatprep.mubr.f32.mxu1 %v7081_v10  ;;  %1820 = vmatpush1.msra.mxu0 %v1794_v52  ;;  %v6115_v52 = vld [vmem:[#allocation11 + $0xc8] sm:$0xff] }
 0x75f   : > { %4201 = vmatpush3.msra.mxu1 %v1796_v51  ;;  %1821 = vmatprep.subr.mxu0 %v1792_v6  ;;  %v6112_v51 = vld [vmem:[#allocation11 + $0xd8] sm:$0xff]  ;;  %v6118_v6 = vld [vmem:[#allocation11 + $0xc0] sm:$0xff] }
 0x760   : > { %4202 = vmatprep.subr.mxu1 %v1793_v8  ;;  %1822 = vmatpush1.msra.mxu0 %v1791_v9  ;;  %v6124_v9 = vld [vmem:[#allocation11 + $0xa8] sm:$0xff] }
 0x761   : > { %4203 = vmatpush3.msra.mxu1 %v1793_v8  ;;  %1823 = vmatprep.subr.mxu0 %v1789_v11  ;;  %v6121_v8 = vld [vmem:[#allocation11 + $0xb0] sm:$0xff] }
 0x762   : > { %4204 = vmatprep.subr.mxu1 %v1790_v12  ;;  %1824 = vmatpush1.msra.mxu0 %v1788_v13  ;;  %v6130_v11 = vld [vmem:[#allocation11 + $0x90] sm:$0xff]  ;;  %v6136_v13 = vld [vmem:[#allocation11 + $0x78] sm:$0xff] }
 0x763   : > { %4205 = vmatpush3.msra.mxu1 %v1790_v12  ;;  %1825 = vmatprep.subr.mxu0 %v1786_v14  ;;  %v6133_v12 = vld [vmem:[#allocation11 + $0x80] sm:$0xff]  ;;  %v6139_v14 = vld [vmem:[#allocation11 + $0x68] sm:$0xff] }
 0x764   : > { %4206 = vmatprep.subr.mxu1 %v1787_v15  ;;  %1826 = vmatpush1.msra.mxu0 %v1785_v16  ;;  %v6145_v16 = vld [vmem:[#allocation11 + $0x50] sm:$0xff] }
 0x765   : > { %4207 = vmatpush3.msra.mxu1 %v1787_v15  ;;  %1827 = vmatprep.subr.mxu0 %v1783_v17  ;;  %v6142_v15 = vld [vmem:[#allocation11 + $0x60] sm:$0xff]  ;;  %v6148_v17 = vld [vmem:[#allocation11 + $0x48] sm:$0xff] }
 0x766   : > { %4208 = vmatprep.subr.mxu1 %v1784_v18  ;;  %1828 = vmatpush1.msra.mxu0 %v1782_v19  ;;  %v6154_v19 = vld [vmem:[#allocation11 + $0x30] sm:$0xff] }
 0x767   : > { %4209 = vmatpush3.msra.mxu1 %v1784_v18  ;;  %1829 = vmatprep.subr.mxu0 %v1780_v20  ;;  %v6151_v18 = vld [vmem:[#allocation11 + $0x38] sm:$0xff]  ;;  %v6157_v20 = vld [vmem:[#allocation11 + $0x20] sm:$0xff] }
 0x768   : > { %4210 = vmatprep.subr.mxu1 %v1781_v23  ;;  %1830 = vmatpush1.msra.mxu0 %v1779_v29  ;;  %7086 = vst [vmem:[#allocation20_spill] sm:$0xff] %v6157_v20  ;;  %v6163_v29 = vld [vmem:[#allocation11 + $0x8] sm:$0xff] }
 0x769   : > { %4211 = vmatpush3.msra.mxu1 %v1781_v23  ;;  %1831 = vmatprep.subr.mxu0 %v1777_v30  ;;  %v6160_v23 = vld [vmem:[#allocation11 + $0x18] sm:$0xff]  ;;  %7088 = vst [vmem:[#allocation22_spill] sm:$0xff] %v6163_v29  ;;  %v6165_v30 = vld [vmem:[#allocation11] sm:$0xff] }
 0x76a   : > { %4212 = vmatprep.subr.mxu1 %v1778_v31  ;;  %1832 = vmatpush1.msra.mxu0 %v1776_v7  ;;  %7087 = vst [vmem:[#allocation18_spill] sm:$0xff] %v6160_v23  ;;  %7089 = vst [vmem:[#allocation23_spill] sm:$0xff] %v6165_v30  ;;  %v6171_v7 = vld [vmem:[#allocation11 + $0x160] sm:$0xff] }
 0x76b   : > { %4213 = vmatpush3.msra.mxu1 %v1778_v31  ;;  %1833 = vmatprep.subr.mxu0 %v1774_v21  ;;  %v6167_v31 = vld [vmem:[#allocation11 + $0x178] sm:$0xff]  ;;  %v6175_v21 = vld [vmem:[#allocation11 + $0x148] sm:$0xff] }
 0x76c   : > { %4214 = vmatprep.subr.mxu1 %v1775_v22  ;;  %1834 = vmatpush1.msra.mxu0 %v1773_v24  ;;  %v6184_v24 = vld [vmem:[#allocation11 + $0x118] sm:$0xff] }
 0x76d   : > { %4215 = vmatpush3.msra.mxu1 %v1775_v22  ;;  %1835 = vmatprep.subr.mxu0 %v1771_v25  ;;  %v6180_v22 = vld [vmem:[#allocation11 + $0x130] sm:$0xff]  ;;  %v6188_v25 = vld [vmem:[#allocation11 + $0x100] sm:$0xff] }
 0x76e   : > { %4216 = vmatprep.subr.mxu1 %v1772_v26  ;;  %1836 = vmatpush1.msra.mxu0 %v1770_v27  ;;  %v6196_v27 = vld [vmem:[#allocation11 + $0xd0] sm:$0xff] }
 0x76f   : > { %4217 = vmatpush3.msra.mxu1 %v1772_v26  ;;  %1837 = vmatprep.subr.mxu0 %v1768_v0  ;;  %v6192_v26 = vld [vmem:[#allocation11 + $0xe8] sm:$0xff]  ;;  %v6200_v0 = vld [vmem:[#allocation11 + $0xb8] sm:$0xff] }
 0x770   : > { %4218 = vmatprep.subr.mxu1 %v1769_v58  ;;  %1838 = vmatpush1.msra.mxu0 %v1767_v53  ;;  %v6208_v53 = vld [vmem:[#allocation11 + $0x88] sm:$0xff] }
 0x771   : > { %4219 = vmatpush3.msra.mxu1 %v1769_v58  ;;  %1839 = vmatprep.subr.mxu0 %v1765_v54  ;;  %v6204_v58 = vld [vmem:[#allocation11 + $0xa0] sm:$0xff]  ;;  %v6212_v54 = vld [vmem:[#allocation11 + $0x70] sm:$0xff] }
 0x772   : > { %4220 = vmatprep.subr.mxu1 %v1766_v55  ;;  %1840 = vmatpush1.msra.mxu0 %v1764_v62  ;;  %v6220_v62 = vld [vmem:[#allocation11 + $0x40] sm:$0xff] }
 0x773   : > { %4221 = vmatpush3.msra.mxu1 %v1766_v55  ;;  %1841 = vmatprep.subr.mxu0 %v1762_v33  ;;  %v6216_v55 = vld [vmem:[#allocation11 + $0x58] sm:$0xff]  ;;  %v6224_v33 = vld [vmem:[#allocation11 + $0x28] sm:$0xff] }
 0x774   : > { %4222 = vmatprep.subr.mxu1 %v1763_v34  ;;  %1842 = vmatpush1.msra.mxu0 %v1761_v35  ;;  %7090 = vst [vmem:[#allocation24_spill] sm:$0xff] %v6224_v33  ;;  %v3595_v35 = vld [vmem:[%s5229_s11 + $0xa8] sm:$0xff] }
 0x775   : > { %4223 = vmatpush3.msra.mxu1 %v1763_v34  ;;  %1843 = vmatprep.subr.mxu0 %v1759_v36  ;;  %v6228_v34 = vld [vmem:[#allocation11 + $0x10] sm:$0xff] }
 0x776   : > { %4224 = vmatprep.subr.mxu1 %v1760_v37  ;;  %1844 = vmatpush1.msra.mxu0 %v1758_v38  ;;  %7091 = vst [vmem:[#allocation25_spill] sm:$0xff] %v6228_v34 }
 0x777   : > { %4225 = vmatpush3.msra.mxu1 %v1760_v37  ;;  %1845 = vmatprep.subr.mxu0 %v1756_v39 }
 0x778   : > { %4226 = vmatprep.subr.mxu1 %v1757_v40  ;;  %1846 = vmatpush1.msra.mxu0 %v1755_v41  ;;  %v3596_v41 = vld [vmem:[%s5229_s11 + $0xb0] sm:$0xff] }
 0x779   : > { %4227 = vmatpush3.msra.mxu1 %v1757_v40  ;;  %1847 = vmatprep.subr.mxu0 %v1753_v43 }
 0x77a   : > { %4228 = vmatprep.subr.mxu1 %v1754_v46  ;;  %1848 = vmatpush1.msra.mxu0 %v1752_v47 }
 0x77b   : > { %1881 = vmatprep.mubr.f32.mxu0 %v7058_v5  ;;  %4229 = vmatpush3.msra.mxu1 %v1754_v46 }
 0x77c   : > { %1882 = vmatmul.mubr.f32.vlgmr.msra.gmra.mxu0 %v7081_v10  ;;  %4231 = vmatmul.mubr.f32.vlgmr.msra.gmra.mxu1 %v7082_v48  ;;  %v6127_v10 = vld [vmem:[#allocation11 + $0x98] sm:$0xff] }
 0x77d   : > { %4233 = vmatprep.mubr.f32.mxu1 %v7083_v2  ;;  %1887 = vmatprep.mubr.f32.mxu0 %v7058_v5 }
 0x77e   : > { %4242 = vmatprep.subr.mxu1 %v7058_v5  ;;  %2113 = vmatprep.subr.mxu0 %v6073_v49 }
 0x77f   : > { %2114 = vmatpush1.msra.mxu0 %v6076_v63  ;;  %4243 = vmatpush3.msra.mxu1 %v6167_v31 }
 0x780   : > { %1888 = vmatmul.mubr.f32.gmra.mxu0 %v7082_v48  ;;  %4234 = vmatmul.mubr.f32.gmra.mxu1 %v7084_v4 }
 0x781   : > { %4236 = vmatprep.mubr.f32.mxu1 %v5803_v32  ;;  %1893 = vmatprep.mubr.f32.mxu0 %v7058_v5 }
 0x782   : > { %2115 = vmatprep.subr.mxu0 %v6079_v56  ;;  %4244 = vmatprep.subr.mxu1 %v7058_v5 }
 0x783   : > { %4245 = vmatpush3.msra.mxu1 %v6171_v7 }
 0x784   : > { %1894 = vmatmul.mubr.f32.gmra.mxu0 %v7083_v2  ;;  %4237 = vmatmul.mubr.f32.gmra.mxu1 %v5967_v28 }
 0x785   : > { %4239 = vmatprep.mubr.f32.mxu1 %v6046_v44  ;;  %1899 = vmatprep.mubr.f32.mxu0 %v7058_v5 }
 0x786   : > { %4246 = vmatprep.subr.mxu1 %v7058_v5 }
 0x787   : > { %4247 = vmatpush3.msra.mxu1 %v6175_v21 }
 0x788   : > { %1900 = vmatmul.mubr.f32.gmra.mxu0 %v7084_v4  ;;  %4248 = vmatprep.subr.mxu1 %v7058_v5 }
 0x789   : > { %1905 = vmatprep.mubr.f32.mxu0 %v7058_v5  ;;  %4249 = vmatpush3.msra.mxu1 %v6180_v22 }
 0x78a   : > { %4250 = vmatprep.subr.mxu1 %v7058_v5 }
 0x78b   : > { %4251 = vmatpush3.msra.mxu1 %v6184_v24 }
 0x78c   : > { %1906 = vmatmul.mubr.f32.gmra.mxu0 %v5803_v32  ;;  %v6082_v32 = vld [vmem:[#allocation11 + $0x150] sm:$0xff]  ;;  %4252 = vmatprep.subr.mxu1 %v7058_v5 }
 0x78d   : > { %1911 = vmatprep.mubr.f32.mxu0 %v7058_v5  ;;  %2116 = vmatpush1.msra.mxu0 %v6082_v32 }
 0x78e   : > { %4253 = vmatpush3.msra.mxu1 %v6188_v25 }
 0x78f   : > { %4254 = vmatprep.subr.mxu1 %v7058_v5 }
 0x790   : > { %1912 = vmatmul.mubr.f32.gmra.mxu0 %v5967_v28  ;;  %v6085_v28 = vld [vmem:[#allocation11 + $0x140] sm:$0xff]  ;;  %4255 = vmatpush3.msra.mxu1 %v6192_v26 }
 0x791   : > { %1917 = vmatprep.mubr.f32.mxu0 %v7058_v5  ;;  %2117 = vmatprep.subr.mxu0 %v6085_v28 }
 0x792   : > { %2118 = vmatpush1.msra.mxu0 %v6088_v59  ;;  %4256 = vmatprep.subr.mxu1 %v7058_v5 }
 0x793   : > { %2119 = vmatprep.subr.mxu0 %v6091_v60  ;;  %4257 = vmatpush3.msra.mxu1 %v6196_v27 }
 0x794   : > { %1918 = vmatmul.mubr.f32.gmra.mxu0 %v6046_v44  ;;  %4258 = vmatprep.subr.mxu1 %v7058_v5 }
 0x795   : > { %1923 = vmatprep.mubr.f32.mxu0 %v7058_v5  ;;  %2120 = vmatpush1.msra.mxu0 %v6094_v61 }
 0x796   : > { %2121 = vmatprep.subr.mxu0 %v6097_v45  ;;  %4259 = vmatpush3.msra.mxu1 %v6200_v0 }
 0x797   : > { %2122 = vmatpush1.msra.mxu0 %v6100_v1  ;;  %4260 = vmatprep.subr.mxu1 %v7058_v5 }
 0x798   : > { %2123 = vmatprep.subr.mxu0 %v6103_v42  ;;  %4261 = vmatpush3.msra.mxu1 %v6204_v58 }
 0x799   : > { %2124 = vmatpush1.msra.mxu0 %v6106_v50  ;;  %4262 = vmatprep.subr.mxu1 %v7058_v5 }
 0x79a   : > { %2125 = vmatprep.subr.mxu0 %v6109_v57  ;;  %4263 = vmatpush3.msra.mxu1 %v6208_v53 }
 0x79b   : > { %2126 = vmatpush1.msra.mxu0 %v6112_v51  ;;  %4264 = vmatprep.subr.mxu1 %v7058_v5 }
 0x79c   : > { %2127 = vmatprep.subr.mxu0 %v6115_v52  ;;  %4265 = vmatpush3.msra.mxu1 %v6212_v54 }
 0x79d   : > { %2128 = vmatpush1.msra.mxu0 %v6118_v6  ;;  %4266 = vmatprep.subr.mxu1 %v7058_v5 }
 0x79e   : > { %2129 = vmatprep.subr.mxu0 %v6121_v8  ;;  %4267 = vmatpush3.msra.mxu1 %v6216_v55 }
 0x79f   : > { %2130 = vmatpush1.msra.mxu0 %v6124_v9  ;;  %4268 = vmatprep.subr.mxu1 %v7058_v5 }
 0x7a0   : > { %2131 = vmatprep.subr.mxu0 %v6127_v10  ;;  %4269 = vmatpush3.msra.mxu1 %v6220_v62 }
 0x7a1   : > { %2132 = vmatpush1.msra.mxu0 %v6130_v11  ;;  %4270 = vmatprep.subr.mxu1 %v7058_v5 }
 0x7a2   : > { %2133 = vmatprep.subr.mxu0 %v6133_v12  ;;  %4271 = vmatpush3.msra.mxu1 %v6224_v33 }
 0x7a3   : > { %2134 = vmatpush1.msra.mxu0 %v6136_v13  ;;  %4272 = vmatprep.subr.mxu1 %v7058_v5 }
 0x7a4   : > { %2135 = vmatprep.subr.mxu0 %v6139_v14  ;;  %4273 = vmatpush3.msra.mxu1 %v6228_v34 }
 0x7a5   : > { %2136 = vmatpush1.msra.mxu0 %v6142_v15  ;;  %4277 = vmatprep.subr.mxu1 %v7058_v5 }
 0x7a6   : > { %2137 = vmatprep.subr.mxu0 %v6145_v16 }
 0x7a7   : > { %2138 = vmatpush1.msra.mxu0 %v6148_v17 }
 0x7a8   : > { %2139 = vmatprep.subr.mxu0 %v6151_v18 }
 0x7a9   : > { %2140 = vmatpush1.msra.mxu0 %v6154_v19 }
 0x7aa   : > { %2141 = vmatprep.subr.mxu0 %v6157_v20 }
 0x7ab   : > { %2142 = vmatpush1.msra.mxu0 %v6160_v23 }
 0x7ac   : > { %2143 = vmatprep.subr.mxu0 %v6163_v29  ;;  %v3597_v29 = vld [vmem:[%s5229_s11 + $0xb8] sm:$0xff] }
 0x7ad   : > { %2144 = vmatpush1.msra.mxu0 %v6165_v30 }
 0x7ae   : > { %2286 = vmatprep.subr.mxu0 %v6073_v49 }
 0x81b   : > { %v1644_v36 = vpop.f32.mrf.mxu0  ;;  %v1715_v37 = vpop.f32.mrf.mxu1 }
 0x81c   : > { %v1719_v38 = vadd.f32 %v3595_v35, %v1644_v36  ;;  %v1733_v34 = vadd.f32 %v6041_v3, %v1715_v37  ;;  %v7092_v3 = vld [vmem:[#allocation24_spill] sm:$0xff] }
 0x81d   : > { %v4197_v39 = vpop.f32.mrf.mxu1  ;;  %v1646_v43 = vpop.f32.mrf.mxu0 }
 0x81e   : > { %v3598_v40 = vmul.f32 -1.442695, %v1719_v38  ;;  %v1726_v46 = vadd.f32 %v3596_v41, %v1646_v43 }
 0x820   : > { %4679 = vpow2.f32 %v3598_v40  ;;  %v3599_v47 = vmul.f32 -1.442695, %v1726_v46  ;;  %v6240_v46 = vld [vmem:[#allocation2 + $0x8] sm:$0xff] }
 0x822   : > { %4681 = vpow2.f32 %v3599_v47 }
 0x82d   : > { %v4680_v48 = vpop.eup %4679 }
 0x82e   : > { %v1723_v2 = vadd.f32 1.0, %v4680_v48 }
 0x82f   : > { %v4682_v4 = vpop.eup %4681 }
 0x830   : > { %4683 = vrcp.f32 %v1723_v2  ;;  %v1730_v49 = vadd.f32 1.0, %v4682_v4 }
 0x832   : > { %4685 = vrcp.f32 %v1730_v49  ;;  %v7094_v49 = vld [vmem:[#allocation23_spill] sm:$0xff] }
 0x83d   : > { %v4684_v30 = vpop.eup %4683 }
 0x83e   : > { %v1734_v33 = vmul.f32 %v4684_v30, %v1733_v34  ;;  %v7096_v30 = vld [vmem:[#allocation19_spill] sm:$0xff] }
 0x83f   : > { %v4686_v36 = vpop.eup %4685 }
 0x840   : > { %v1735_v35 = vadd.f32 %v3597_v29, %v1734_v33  ;;  %v1737_v38 = vsub.f32 1.0, %v4686_v36  ;;  %v1739_v41 = vmul.f32 %v4686_v36, %v6046_v44  ;;  %v7093_v44 = vld [vmem:[#allocation22_spill] sm:$0xff]  ;;  %v7095_v29 = vld [vmem:[#allocation25_spill] sm:$0xff]  ;;  %v1883_v33 = vpop.f32.mrf.mxu0  ;;  %v6325_v36 = vpop.f32.mrf.mxu1 }
 0x841   : > { %7103 = vst [vmem:[#allocation31_spill] sm:$0xff] %v6325_v36 }
 0x842   : > { %4687 = vtanh.f32 %v1735_v35  ;;  %v1885_v34 = vpop.f32.mrf.mxu0 }
 0x844   : > { %v6313_v37 = vpop.f32.mrf.mxu0 }
 0x845   : > { %7097 = vst [vmem:[#allocation21_spill] sm:$0xff] %v6313_v37 }
 0x846   : > { %v6315_v47 = vpop.f32.mrf.mxu0 }
 0x847   : > { %7098 = vst [vmem:[#allocation26_spill] sm:$0xff] %v6315_v47  ;;  %v1802_v47 = vlaneseq }
 0x848   : > { %v6317_v48 = vpop.f32.mrf.mxu0 }
 0x849   : > { %7099 = vst [vmem:[#allocation27_spill] sm:$0xff] %v6317_v48 }
 0x84a   : > { %v6319_v2 = vpop.f32.mrf.mxu0 }
 0x84b   : > { %7100 = vst [vmem:[#allocation28_spill] sm:$0xff] %v6319_v2  ;;  %v1803_v2 = vshrl.u32 %v1802_v47, 7 }
 0x84c   : > { %v6321_v4 = vpop.f32.mrf.mxu0 }
 0x84d   : > { %7101 = vst [vmem:[#allocation29_spill] sm:$0xff] %v6321_v4  ;;  %v1804_v36 = vsub.s32 0, %v1803_v2  ;;  %v1808_v47 = vsub.s32 1, %v1803_v2 }
 0x84e   : > { %v6323_v35 = vpop.f32.mrf.mxu0 }
 0x84f   : > { %v4688_v39 = vpop.eup %4687  ;;  %7102 = vst [vmem:[#allocation30_spill] sm:$0xff] %v6323_v35 }
 0x850   : > { %v1738_v40 = vmul.f32 %v4688_v39, %v1737_v38  ;;  %v6327_v38 = vpop.f32.mrf.mxu0  ;;  %v1996_v39 = vpop.f32.mrf.mxu1 }
 0x851   : > { %7104 = vst [vmem:[#allocation32_spill] sm:$0xff] %v6327_v38  ;;  %v1800_v38 = vld [vmem:[%s6980_s4] sm:$0x7] }
 0x852   : > { %v1740_v43 = vadd.f32 %v1739_v41, %v1738_v40  ;;  %v6329_v40 = vpop.f32.mrf.mxu0  ;;  %v6331_v41 = vpop.f32.mrf.mxu1 }
 0x853   : > { %7105 = vst [vmem:[#allocation33_spill] sm:$0xff] %v6329_v40  ;;  %7106 = vst [vmem:[#allocation34_spill] sm:$0xff] %v6331_v41 }
 0x854   : > { %1743 = vst [vmem:[#allocation2] sm:$0xff] %v1740_v43  ;;  %1924 = vmatmul.mubr.f32.gmra.mxu0 %v1740_v43  ;;  %4240 = vmatmul.mubr.f32.gmra.mxu1 %v1740_v43  ;;  %v6333_v43 = vpop.f32.mrf.mxu0  ;;  %v6335_v37 = vpop.f32.mrf.mxu1 }
 0x855   : > { %2177 = vmatprep.mubr.f32.mxu0 %v7058_v5  ;;  %4274 = vmatprep.mubr.msk.f32.mxu1 %vm5053_vm0, %v7058_v5  ;;  %7107 = vst [vmem:[#allocation35_spill] sm:$0xff] %v6333_v43  ;;  %7108 = vst [vmem:[#allocation36_spill] sm:$0xff] %v6335_v37  ;;  %v6350_v43 = vrot.slane %v1800_v38, %v1804_v36 }
 0x856   : > { %v6337_v48 = vpop.f32.mrf.mxu0  ;;  %v6339_v4 = vpop.f32.mrf.mxu1 }
 0x857   : > { %7109 = vst [vmem:[#allocation37_spill] sm:$0xff] %v6337_v48  ;;  %7110 = vst [vmem:[#allocation38_spill] sm:$0xff] %v6339_v4 }
 0x858   : > { %2178 = vmatmul.mubr.f32.vlgmr.msra.gmra.mxu0 %v6240_v46  ;;  %4275 = vmatmul.mubr.f32.vlgmr.msra.gmra.mxu1 %v6240_v46  ;;  %v6341_v35 = vpop.f32.mrf.mxu0  ;;  %v6346_v40 = vpop.f32.mrf.mxu1  ;;  %7114 = vst [vmem:[#allocation42_spill] sm:$0xff] %v6350_v43 }
 0x859   : > { %2287 = vmatpush1.msra.mxu0 %v6076_v63  ;;  %4278 = vmatpush3.msra.mxu1 %v6167_v31  ;;  %7111 = vst [vmem:[#allocation39_spill] sm:$0xff] %v6341_v35  ;;  %7112 = vst [vmem:[#allocation40_spill] sm:$0xff] %v6346_v40  ;;  %v1884_v35 = vadd.f32 %v1883_v33, %v6350_v43  ;;  %v6367_v33 = vld [vmem:[%s6982_s6] ss:$0 sm:$0xff] }
 0x85a   : > { %2288 = vmatprep.subr.mxu0 %v6079_v56  ;;  %4279 = vmatprep.subr.mxu1 %v7058_v5  ;;  %v6348_v41 = vpop.f32.mrf.mxu0 }
 0x85b   : > { %2289 = vmatpush1.msra.mxu0 %v6082_v32  ;;  %4280 = vmatpush3.msra.mxu1 %v6171_v7  ;;  %7113 = vst [vmem:[#allocation41_spill] sm:$0xff] %v6348_v41 }
 0x85c   : > { %2290 = vmatprep.subr.mxu0 %v6085_v28  ;;  %4281 = vmatprep.subr.mxu1 %v7058_v5 }
 0x85d   : > { %2291 = vmatpush1.msra.mxu0 %v6088_v59  ;;  %4282 = vmatpush3.msra.mxu1 %v6175_v21 }
 0x85e   : > { %2292 = vmatprep.subr.mxu0 %v6091_v60  ;;  %4283 = vmatprep.subr.mxu1 %v7058_v5 }
 0x85f   : > { %2293 = vmatpush1.msra.mxu0 %v6094_v61  ;;  %4284 = vmatpush3.msra.mxu1 %v6180_v22 }
 0x860   : > { %2294 = vmatprep.subr.mxu0 %v6097_v45  ;;  %4285 = vmatprep.subr.mxu1 %v7058_v5 }
 0x861   : > { %2295 = vmatpush1.msra.mxu0 %v6100_v1  ;;  %4286 = vmatpush3.msra.mxu1 %v6184_v24 }
 0x862   : > { %2296 = vmatprep.subr.mxu0 %v6103_v42  ;;  %4287 = vmatprep.subr.mxu1 %v7058_v5 }
 0x863   : > { %2297 = vmatpush1.msra.mxu0 %v6106_v50  ;;  %4288 = vmatpush3.msra.mxu1 %v6188_v25 }
 0x864   : > { %2298 = vmatprep.subr.mxu0 %v6109_v57  ;;  %4289 = vmatprep.subr.mxu1 %v7058_v5 }
 0x865   : > { %2299 = vmatpush1.msra.mxu0 %v6112_v51  ;;  %4290 = vmatpush3.msra.mxu1 %v6192_v26 }
 0x866   : > { %2300 = vmatprep.subr.mxu0 %v6115_v52  ;;  %4291 = vmatprep.subr.mxu1 %v7058_v5 }
 0x867   : > { %2301 = vmatpush1.msra.mxu0 %v6118_v6  ;;  %4292 = vmatpush3.msra.mxu1 %v6196_v27 }
 0x868   : > { %2302 = vmatprep.subr.mxu0 %v6121_v8  ;;  %4293 = vmatprep.subr.mxu1 %v7058_v5 }
 0x869   : > { %2303 = vmatpush1.msra.mxu0 %v6124_v9  ;;  %4294 = vmatpush3.msra.mxu1 %v6200_v0 }
 0x86a   : > { %2304 = vmatprep.subr.mxu0 %v6127_v10  ;;  %4295 = vmatprep.subr.mxu1 %v7058_v5 }
 0x86b   : > { %2305 = vmatpush1.msra.mxu0 %v6130_v11  ;;  %4296 = vmatpush3.msra.mxu1 %v6204_v58 }
 0x86c   : > { %2306 = vmatprep.subr.mxu0 %v6133_v12  ;;  %4297 = vmatprep.subr.mxu1 %v7058_v5 }
 0x86d   : > { %2307 = vmatpush1.msra.mxu0 %v6136_v13  ;;  %4298 = vmatpush3.msra.mxu1 %v6208_v53 }
 0x86e   : > { %2308 = vmatprep.subr.mxu0 %v6139_v14  ;;  %4299 = vmatprep.subr.mxu1 %v7058_v5 }
 0x86f   : > { %2309 = vmatpush1.msra.mxu0 %v6142_v15  ;;  %4300 = vmatpush3.msra.mxu1 %v6212_v54 }
 0x870   : > { %2310 = vmatprep.subr.mxu0 %v6145_v16  ;;  %4301 = vmatprep.subr.mxu1 %v7058_v5 }
 0x871   : > { %2311 = vmatpush1.msra.mxu0 %v6148_v17  ;;  %4302 = vmatpush3.msra.mxu1 %v6216_v55 }
 0x872   : > { %2312 = vmatprep.subr.mxu0 %v6151_v18  ;;  %4303 = vmatprep.subr.mxu1 %v7058_v5 }
 0x873   : > { %2313 = vmatpush1.msra.mxu0 %v6154_v19  ;;  %4304 = vmatpush3.msra.mxu1 %v6220_v62 }
 0x874   : > { %2314 = vmatprep.subr.mxu0 %v6157_v20  ;;  %4305 = vmatprep.subr.mxu1 %v7058_v5 }
 0x875   : > { %2315 = vmatpush1.msra.mxu0 %v6160_v23  ;;  %4306 = vmatpush3.msra.mxu1 %v7092_v3 }
 0x876   : > { %2316 = vmatprep.subr.mxu0 %v7093_v44  ;;  %4307 = vmatprep.subr.mxu1 %v7058_v5  ;;  %v6361_v44 = vrot.slane %v1800_v38, %v1808_v47  ;;  %v1812_v47 = vsub.s32 2, %v1803_v2  ;;  %v7122_v2 = vld [vmem:[#allocation24_spill] sm:$0xff] }
 0x877   : > { %2317 = vmatpush1.msra.mxu0 %v7094_v49  ;;  %2350 = vmatprep.mubr.f32.mxu0 %v7058_v5 }
 0x878   : > { %4308 = vmatpush3.msra.mxu1 %v7095_v29  ;;  %4309 = vmatprep.mubr.msk.f32.mxu1 %vm5053_vm0, %v7058_v5  ;;  %7119 = vst [vmem:[#allocation47_spill] sm:$0xff] %v6361_v44  ;;  %v1886_v23 = vadd.f32 %v1885_v34, %v6361_v44 }
 0x879   : > { %2453 = vmatprep.subr.mxu0 %v7096_v30  ;;  %4312 = vmatprep.subr.mxu1 %v7058_v5 }
 0x914   : > { %v6352_v30 = vpop.f32.mrf.mxu0  ;;  %v6354_v37 = vpop.f32.mrf.mxu1 }
 0x915   : > { %7115 = vst [vmem:[#allocation43_spill] sm:$0xff] %v6352_v30  ;;  %7116 = vst [vmem:[#allocation44_spill] sm:$0xff] %v6354_v37 }
 0x916   : > { %v6356_v48 = vpop.f32.mrf.mxu0  ;;  %v6358_v4 = vpop.f32.mrf.mxu1 }
 0x917   : > { %7117 = vst [vmem:[#allocation45_spill] sm:$0xff] %v6356_v48  ;;  %7118 = vst [vmem:[#allocation46_spill] sm:$0xff] %v6358_v4 }
 0x918   : > { %v2179_v29 = vpop.f32.mrf.mxu0  ;;  %v2250_v49 = vpop.f32.mrf.mxu1 }
 0x919   : > { %v2254_v40 = vadd.f32 %v2179_v29, %v1884_v35  ;;  %v6370_v35 = vrot.slane %v1800_v38, %v1812_v47  ;;  %v7124_v38 = vld [vmem:[#allocation23_spill] sm:$0xff] }
 0x91a   : > { %v4276_v3 = vpop.f32.mrf.mxu1  ;;  %v2181_v36 = vpop.f32.mrf.mxu0  ;;  %v7126_v47 = vld [vmem:[#allocation19_spill] sm:$0xff] }
 0x91b   : > { %v3600_v41 = vmul.f32 -1.442695, %v2254_v40  ;;  %v2261_v30 = vadd.f32 %v2181_v36, %v1886_v23  ;;  %v2274_v3 = vadd.f32 %v6367_v33, %v2250_v49  ;;  %v1997_v23 = vadd.f32 %v1996_v39, %v6370_v35  ;;  %v7121_v49 = vld [vmem:[#allocation18_spill] sm:$0xff]  ;;  %v7125_v39 = vld [vmem:[#allocation25_spill] sm:$0xff] }
 0x91d   : > { %4689 = vpow2.f32 %v3600_v41  ;;  %v3601_v37 = vmul.f32 -1.442695, %v2261_v30 }
 0x91f   : > { %4691 = vpow2.f32 %v3601_v37 }
 0x92a   : > { %v4690_v20 = vpop.eup %4689 }
 0x92b   : > { %v2258_v48 = vadd.f32 1.0, %v4690_v20 }
 0x92c   : > { %v4692_v4 = vpop.eup %4691 }
 0x92d   : > { %4693 = vrcp.f32 %v2258_v48  ;;  %v2265_v29 = vadd.f32 1.0, %v4692_v4  ;;  %v7123_v4 = vld [vmem:[#allocation22_spill] sm:$0xff] }
 0x92f   : > { %4695 = vrcp.f32 %v2265_v29  ;;  %v7127_v29 = vld [vmem:[#allocation21_spill] sm:$0xff] }
 0x93a   : > { %v4694_v34 = vpop.eup %4693 }
 0x93b   : > { %v2275_v30 = vmul.f32 %v4694_v34, %v2274_v3  ;;  %v1890_v3 = vadd.f32 %v7127_v29, %v6350_v43 }
 0x93c   : > { %v4696_v20 = vpop.eup %4695 }
 0x93d   : > { %v2276_v37 = vadd.f32 %v2275_v30, %v1997_v23  ;;  %v2278_v48 = vsub.f32 1.0, %v4696_v20  ;;  %v2280_v36 = vmul.f32 %v4696_v20, %v6240_v46  ;;  %v7120_v46 = vld [vmem:[#allocation20_spill] sm:$0xff] }
 0x93f   : > { %4697 = vtanh.f32 %v2276_v37 }
 0x94c   : > { %v4698_v40 = vpop.eup %4697 }
 0x94d   : > { %v2279_v41 = vmul.f32 %v4698_v40, %v2278_v48  ;;  %v7128_v40 = vld [vmem:[#allocation47_spill] sm:$0xff] }
 0x94f   : > { %v6374_v44 = vadd.f32 %v2280_v36, %v2279_v41  ;;  %v7129_v41 = vld [vmem:[#allocation26_spill] sm:$0xff] }
 0x950   : > { %v1892_v36 = vadd.f32 %v7129_v41, %v7128_v40 }
 0x951   : > { %2351 = vmatmul.mubr.f32.vlgmr.msra.gmra.mxu0 %v6374_v44  ;;  %4310 = vmatmul.mubr.f32.vlgmr.msra.gmra.mxu1 %v6374_v44 }
 0x952   : > { %2454 = vmatpush1.msra.mxu0 %v6076_v63  ;;  %4313 = vmatpush3.msra.mxu1 %v6167_v31 }
 0x953   : > { %2455 = vmatprep.subr.mxu0 %v6079_v56  ;;  %4314 = vmatprep.subr.mxu1 %v7058_v5 }
 0x954   : > { %2456 = vmatpush1.msra.mxu0 %v6082_v32  ;;  %4315 = vmatpush3.msra.mxu1 %v6171_v7 }
 0x955   : > { %2457 = vmatprep.subr.mxu0 %v6085_v28  ;;  %4316 = vmatprep.subr.mxu1 %v7058_v5 }
 0x956   : > { %2458 = vmatpush1.msra.mxu0 %v6088_v59  ;;  %4317 = vmatpush3.msra.mxu1 %v6175_v21 }
 0x957   : > { %2459 = vmatprep.subr.mxu0 %v6091_v60  ;;  %4318 = vmatprep.subr.mxu1 %v7058_v5 }
 0x958   : > { %2460 = vmatpush1.msra.mxu0 %v6094_v61  ;;  %4319 = vmatpush3.msra.mxu1 %v6180_v22 }
 0x959   : > { %2461 = vmatprep.subr.mxu0 %v6097_v45  ;;  %4320 = vmatprep.subr.mxu1 %v7058_v5 }
 0x95a   : > { %2462 = vmatpush1.msra.mxu0 %v6100_v1  ;;  %4321 = vmatpush3.msra.mxu1 %v6184_v24 }
 0x95b   : > { %2463 = vmatprep.subr.mxu0 %v6103_v42  ;;  %4322 = vmatprep.subr.mxu1 %v7058_v5 }
 0x95c   : > { %2464 = vmatpush1.msra.mxu0 %v6106_v50  ;;  %4323 = vmatpush3.msra.mxu1 %v6188_v25 }
 0x95d   : > { %2465 = vmatprep.subr.mxu0 %v6109_v57  ;;  %4324 = vmatprep.subr.mxu1 %v7058_v5 }
 0x95e   : > { %2466 = vmatpush1.msra.mxu0 %v6112_v51  ;;  %4325 = vmatpush3.msra.mxu1 %v6192_v26 }
 0x95f   : > { %2467 = vmatprep.subr.mxu0 %v6115_v52  ;;  %4326 = vmatprep.subr.mxu1 %v7058_v5 }
 0x960   : > { %2468 = vmatpush1.msra.mxu0 %v6118_v6  ;;  %4327 = vmatpush3.msra.mxu1 %v6196_v27 }
 0x961   : > { %2469 = vmatprep.subr.mxu0 %v6121_v8  ;;  %4328 = vmatprep.subr.mxu1 %v7058_v5 }
 0x962   : > { %2470 = vmatpush1.msra.mxu0 %v6124_v9  ;;  %4329 = vmatpush3.msra.mxu1 %v6200_v0 }
 0x963   : > { %2471 = vmatprep.subr.mxu0 %v6127_v10  ;;  %4330 = vmatprep.subr.mxu1 %v7058_v5 }
 0x964   : > { %2472 = vmatpush1.msra.mxu0 %v6130_v11  ;;  %4331 = vmatpush3.msra.mxu1 %v6204_v58 }
 0x965   : > { %2473 = vmatprep.subr.mxu0 %v6133_v12  ;;  %4332 = vmatprep.subr.mxu1 %v7058_v5 }
 0x966   : > { %2474 = vmatpush1.msra.mxu0 %v6136_v13  ;;  %4333 = vmatpush3.msra.mxu1 %v6208_v53 }
 0x967   : > { %2475 = vmatprep.subr.mxu0 %v6139_v14  ;;  %4334 = vmatprep.subr.mxu1 %v7058_v5 }
 0x968   : > { %2476 = vmatpush1.msra.mxu0 %v6142_v15  ;;  %4335 = vmatpush3.msra.mxu1 %v6212_v54 }
 0x969   : > { %2477 = vmatprep.subr.mxu0 %v6145_v16  ;;  %4336 = vmatprep.subr.mxu1 %v7058_v5 }
 0x96a   : > { %2478 = vmatpush1.msra.mxu0 %v6148_v17  ;;  %4337 = vmatpush3.msra.mxu1 %v6216_v55 }
 0x96b   : > { %2479 = vmatprep.subr.mxu0 %v6151_v18  ;;  %4338 = vmatprep.subr.mxu1 %v7058_v5 }
 0x96c   : > { %2480 = vmatpush1.msra.mxu0 %v6154_v19  ;;  %4339 = vmatpush3.msra.mxu1 %v6220_v62 }
 0x96d   : > { %2481 = vmatprep.subr.mxu0 %v7120_v46  ;;  %4340 = vmatprep.subr.mxu1 %v7058_v5 }
 0x96e   : > { %2482 = vmatpush1.msra.mxu0 %v7121_v49  ;;  %4341 = vmatpush3.msra.mxu1 %v7122_v2 }
 0x96f   : > { %2483 = vmatprep.subr.mxu0 %v7123_v4  ;;  %4342 = vmatprep.subr.mxu1 %v7058_v5 }
 0x970   : > { %2484 = vmatpush1.msra.mxu0 %v7124_v38  ;;  %2517 = vmatprep.mubr.f32.mxu0 %v7058_v5 }
 0x971   : > { %4343 = vmatpush3.msra.mxu1 %v7125_v39  ;;  %4344 = vmatprep.mubr.msk.f32.mxu1 %vm5053_vm0, %v7058_v5 }
 0x972   : > { %2620 = vmatprep.subr.mxu0 %v7126_v47  ;;  %4347 = vmatprep.subr.mxu1 %v7058_v5 }
 0xa11   : > { %v2352_v34 = vpop.f32.mrf.mxu0  ;;  %v2423_v23 = vpop.f32.mrf.mxu1 }
 0xa12   : > { %v2427_v30 = vadd.f32 %v2352_v34, %v1890_v3  ;;  %v2441_v29 = vadd.f32 %v6367_v33, %v2423_v23  ;;  %v7130_v3 = vld [vmem:[#allocation31_spill] sm:$0xff] }
 0xa13   : > { %v4311_v37 = vpop.f32.mrf.mxu1  ;;  %v2354_v48 = vpop.f32.mrf.mxu0  ;;  %v2002_v34 = vadd.f32 %v7130_v3, %v6370_v35  ;;  %v7136_v23 = vld [vmem:[#allocation19_spill] sm:$0xff] }
 0xa14   : > { %v3603_v20 = vmul.f32 -1.442695, %v2427_v30  ;;  %v2434_v39 = vadd.f32 %v2354_v48, %v1892_v36  ;;  %v7137_v36 = vld [vmem:[#allocation42_spill] sm:$0xff] }
 0xa16   : > { %4699 = vpow2.f32 %v3603_v20  ;;  %v3604_v38 = vmul.f32 -1.442695, %v2434_v39 }
 0xa18   : > { %4701 = vpow2.f32 %v3604_v38 }
 0xa23   : > { %v4700_v4 = vpop.eup %4699 }
 0xa24   : > { %v2431_v47 = vadd.f32 1.0, %v4700_v4 }
 0xa25   : > { %v4702_v2 = vpop.eup %4701 }
 0xa26   : > { %4703 = vrcp.f32 %v2431_v47  ;;  %v2438_v49 = vadd.f32 1.0, %v4702_v2  ;;  %v7134_v2 = vld [vmem:[#allocation23_spill] sm:$0xff]  ;;  %v7135_v47 = vld [vmem:[#allocation25_spill] sm:$0xff] }
 0xa28   : > { %4705 = vrcp.f32 %v2438_v49  ;;  %v7133_v49 = vld [vmem:[#allocation22_spill] sm:$0xff] }
 0xa33   : > { %v4704_v43 = vpop.eup %4703 }
 0xa34   : > { %v2442_v30 = vmul.f32 %v4704_v43, %v2441_v29  ;;  %v7132_v43 = vld [vmem:[#allocation24_spill] sm:$0xff]  ;;  %v7138_v29 = vld [vmem:[#allocation27_spill] sm:$0xff] }
 0xa35   : > { %v4706_v41 = vpop.eup %4705  ;;  %v1896_v3 = vadd.f32 %v7138_v29, %v7137_v36 }
 0xa36   : > { %v2443_v37 = vadd.f32 %v2442_v30, %v2002_v34  ;;  %v2445_v20 = vsub.f32 1.0, %v4706_v41  ;;  %v2447_v38 = vmul.f32 %v4706_v41, %v6374_v44  ;;  %v7131_v44 = vld [vmem:[#allocation18_spill] sm:$0xff] }
 0xa38   : > { %4707 = vtanh.f32 %v2443_v37 }
 0xa45   : > { %v4708_v48 = vpop.eup %4707 }
 0xa46   : > { %v2446_v39 = vmul.f32 %v4708_v48, %v2445_v20 }
 0xa48   : > { %v6453_v4 = vadd.f32 %v2447_v38, %v2446_v39  ;;  %v7139_v39 = vld [vmem:[#allocation28_spill] sm:$0xff] }
 0xa49   : > { %v1898_v38 = vadd.f32 %v7139_v39, %v7128_v40 }
 0xa4a   : > { %2518 = vmatmul.mubr.f32.vlgmr.msra.gmra.mxu0 %v6453_v4  ;;  %4345 = vmatmul.mubr.f32.vlgmr.msra.gmra.mxu1 %v6453_v4 }
 0xa4b   : > { %2621 = vmatpush1.msra.mxu0 %v6076_v63  ;;  %4348 = vmatpush3.msra.mxu1 %v6167_v31 }
 0xa4c   : > { %2622 = vmatprep.subr.mxu0 %v6079_v56  ;;  %4349 = vmatprep.subr.mxu1 %v7058_v5 }
 0xa4d   : > { %2623 = vmatpush1.msra.mxu0 %v6082_v32  ;;  %4350 = vmatpush3.msra.mxu1 %v6171_v7 }
 0xa4e   : > { %2624 = vmatprep.subr.mxu0 %v6085_v28  ;;  %4351 = vmatprep.subr.mxu1 %v7058_v5 }
 0xa4f   : > { %2625 = vmatpush1.msra.mxu0 %v6088_v59  ;;  %4352 = vmatpush3.msra.mxu1 %v6175_v21 }
 0xa50   : > { %2626 = vmatprep.subr.mxu0 %v6091_v60  ;;  %4353 = vmatprep.subr.mxu1 %v7058_v5 }
 0xa51   : > { %2627 = vmatpush1.msra.mxu0 %v6094_v61  ;;  %4354 = vmatpush3.msra.mxu1 %v6180_v22 }
 0xa52   : > { %2628 = vmatprep.subr.mxu0 %v6097_v45  ;;  %4355 = vmatprep.subr.mxu1 %v7058_v5 }
 0xa53   : > { %2629 = vmatpush1.msra.mxu0 %v6100_v1  ;;  %4356 = vmatpush3.msra.mxu1 %v6184_v24 }
 0xa54   : > { %2630 = vmatprep.subr.mxu0 %v6103_v42  ;;  %4357 = vmatprep.subr.mxu1 %v7058_v5 }
 0xa55   : > { %2631 = vmatpush1.msra.mxu0 %v6106_v50  ;;  %4358 = vmatpush3.msra.mxu1 %v6188_v25 }
 0xa56   : > { %2632 = vmatprep.subr.mxu0 %v6109_v57  ;;  %4359 = vmatprep.subr.mxu1 %v7058_v5 }
 0xa57   : > { %2633 = vmatpush1.msra.mxu0 %v6112_v51  ;;  %4360 = vmatpush3.msra.mxu1 %v6192_v26 }
 0xa58   : > { %2634 = vmatprep.subr.mxu0 %v6115_v52  ;;  %4361 = vmatprep.subr.mxu1 %v7058_v5 }
 0xa59   : > { %2635 = vmatpush1.msra.mxu0 %v6118_v6  ;;  %4362 = vmatpush3.msra.mxu1 %v6196_v27 }
 0xa5a   : > { %2636 = vmatprep.subr.mxu0 %v6121_v8  ;;  %4363 = vmatprep.subr.mxu1 %v7058_v5 }
 0xa5b   : > { %2637 = vmatpush1.msra.mxu0 %v6124_v9  ;;  %4364 = vmatpush3.msra.mxu1 %v6200_v0 }
 0xa5c   : > { %2638 = vmatprep.subr.mxu0 %v6127_v10  ;;  %4365 = vmatprep.subr.mxu1 %v7058_v5 }
 0xa5d   : > { %2639 = vmatpush1.msra.mxu0 %v6130_v11  ;;  %4366 = vmatpush3.msra.mxu1 %v6204_v58 }
 0xa5e   : > { %2640 = vmatprep.subr.mxu0 %v6133_v12  ;;  %4367 = vmatprep.subr.mxu1 %v7058_v5 }
 0xa5f   : > { %2641 = vmatpush1.msra.mxu0 %v6136_v13  ;;  %4368 = vmatpush3.msra.mxu1 %v6208_v53 }
 0xa60   : > { %2642 = vmatprep.subr.mxu0 %v6139_v14  ;;  %4369 = vmatprep.subr.mxu1 %v7058_v5 }
 0xa61   : > { %2643 = vmatpush1.msra.mxu0 %v6142_v15  ;;  %4370 = vmatpush3.msra.mxu1 %v6212_v54 }
 0xa62   : > { %2644 = vmatprep.subr.mxu0 %v6145_v16  ;;  %4371 = vmatprep.subr.mxu1 %v7058_v5 }
 0xa63   : > { %2645 = vmatpush1.msra.mxu0 %v6148_v17  ;;  %4372 = vmatpush3.msra.mxu1 %v6216_v55 }
 0xa64   : > { %2646 = vmatprep.subr.mxu0 %v6151_v18  ;;  %4373 = vmatprep.subr.mxu1 %v7058_v5 }
 0xa65   : > { %2647 = vmatpush1.msra.mxu0 %v6154_v19  ;;  %4374 = vmatpush3.msra.mxu1 %v6220_v62 }
 0xa66   : > { %2648 = vmatprep.subr.mxu0 %v7120_v46  ;;  %4375 = vmatprep.subr.mxu1 %v7058_v5 }
 0xa67   : > { %2649 = vmatpush1.msra.mxu0 %v7131_v44  ;;  %4376 = vmatpush3.msra.mxu1 %v7132_v43 }
 0xa68   : > { %2650 = vmatprep.subr.mxu0 %v7133_v49  ;;  %4377 = vmatprep.subr.mxu1 %v7058_v5 }
 0xa69   : > { %2651 = vmatpush1.msra.mxu0 %v7134_v2  ;;  %2684 = vmatprep.mubr.f32.mxu0 %v7058_v5 }
 0xa6a   : > { %4378 = vmatpush3.msra.mxu1 %v7135_v47  ;;  %4379 = vmatprep.mubr.msk.f32.mxu1 %vm5053_vm0, %v7058_v5 }
 0xa6b   : > { %2787 = vmatprep.subr.mxu0 %v7136_v23  ;;  %4382 = vmatprep.subr.mxu1 %v7058_v5 }
 0xb0a   : > { %v2519_v34 = vpop.f32.mrf.mxu0  ;;  %v2590_v30 = vpop.f32.mrf.mxu1 }
 0xb0b   : > { %v2594_v37 = vadd.f32 %v2519_v34, %v1896_v3  ;;  %v2608_v29 = vadd.f32 %v6367_v33, %v2590_v30  ;;  %v7140_v3 = vld [vmem:[#allocation36_spill] sm:$0xff]  ;;  %v6653_v30 = vld [vmem:[#allocation11 + $0x110] sm:$0xff] }
 0xb0c   : > { %v4346_v41 = vpop.f32.mrf.mxu1  ;;  %v2521_v48 = vpop.f32.mrf.mxu0  ;;  %v2007_v34 = vadd.f32 %v7140_v3, %v6370_v35  ;;  %v6667_v3 = vld [vmem:[#allocation11 + $0xf0] sm:$0xff] }
 0xb0d   : > { %v3605_v20 = vmul.f32 -1.442695, %v2594_v37  ;;  %v2601_v47 = vadd.f32 %v2521_v48, %v1898_v38  ;;  %v6657_v38 = vld [vmem:[#allocation11 + $0x108] sm:$0xff] }
 0xb0f   : > { %4709 = vpow2.f32 %v3605_v20  ;;  %v3606_v2 = vmul.f32 -1.442695, %v2601_v47 }
 0xb11   : > { %4711 = vpow2.f32 %v3606_v2 }
 0xb1c   : > { %v4710_v49 = vpop.eup %4709 }
 0xb1d   : > { %v2598_v23 = vadd.f32 1.0, %v4710_v49 }
 0xb1e   : > { %v4712_v43 = vpop.eup %4711 }
 0xb1f   : > { %4713 = vrcp.f32 %v2598_v23  ;;  %v2605_v44 = vadd.f32 1.0, %v4712_v43  ;;  %v6647_v43 = vld [vmem:[#allocation11 + $0x120] sm:$0xff]  ;;  %v6660_v23 = vld [vmem:[#allocation11 + $0x118] sm:$0xff] }
 0xb21   : > { %4715 = vrcp.f32 %v2605_v44  ;;  %v6643_v44 = vld [vmem:[#allocation11 + $0x128] sm:$0xff] }
 0xb2c   : > { %v4714_v36 = vpop.eup %4713 }
 0xb2d   : > { %v2609_v37 = vmul.f32 %v4714_v36, %v2608_v29  ;;  %v6650_v36 = vld [vmem:[#allocation11 + $0x130] sm:$0xff]  ;;  %v6663_v29 = vld [vmem:[#allocation11 + $0xf8] sm:$0xff] }
 0xb2e   : > { %v4716_v39 = vpop.eup %4715 }
 0xb2f   : > { %v2610_v41 = vadd.f32 %v2609_v37, %v2007_v34  ;;  %v2612_v20 = vsub.f32 1.0, %v4716_v39  ;;  %v2614_v2 = vmul.f32 %v4716_v39, %v6453_v4  ;;  %v6640_v4 = vld [vmem:[#allocation11 + $0x148] sm:$0xff]  ;;  %v6670_v34 = vld [vmem:[#allocation11 + $0x100] sm:$0xff] }
 0xb30   : > { %v6673_v37 = vld [vmem:[#allocation11 + $0xe0] sm:$0xff]  ;;  %v6680_v39 = vld [vmem:[#allocation11 + $0xe8] sm:$0xff] }
 0xb31   : > { %4717 = vtanh.f32 %v2610_v41  ;;  %v6677_v41 = vld [vmem:[#allocation11 + $0xd8] sm:$0xff] }
 0xb3e   : > { %v4718_v48 = vpop.eup %4717 }
 0xb3f   : > { %v2613_v47 = vmul.f32 %v4718_v48, %v2612_v20  ;;  %v6683_v20 = vld [vmem:[#allocation11 + $0xc8] sm:$0xff]  ;;  %v6687_v48 = vld [vmem:[#allocation11 + $0xc0] sm:$0xff] }
 0xb41   : > { %v6532_v49 = vadd.f32 %v2614_v2, %v2613_v47  ;;  %v6690_v47 = vld [vmem:[#allocation11 + $0xd0] sm:$0xff] }
 0xb42   : > { %v6693_v2 = vld [vmem:[#allocation11 + $0xb0] sm:$0xff] }
 0xb43   : > { %2685 = vmatmul.mubr.f32.vlgmr.msra.gmra.mxu0 %v6532_v49  ;;  %4380 = vmatmul.mubr.f32.vlgmr.msra.gmra.mxu1 %v6532_v49 }
 0xb44   : > { %2788 = vmatpush1.msra.mxu0 %v6076_v63  ;;  %4383 = vmatpush3.msra.mxu1 %v6167_v31  ;;  %v7141_v63 = vld [vmem:[#allocation18_spill] sm:$0xff] }
 0xb45   : > { %2789 = vmatprep.subr.mxu0 %v6079_v56  ;;  %4384 = vmatprep.subr.mxu1 %v7058_v5  ;;  %v7142_v56 = vld [vmem:[#allocation24_spill] sm:$0xff] }
 0xb46   : > { %2790 = vmatpush1.msra.mxu0 %v6082_v32  ;;  %4385 = vmatpush3.msra.mxu1 %v6171_v7  ;;  %v7143_v32 = vld [vmem:[#allocation22_spill] sm:$0xff] }
 0xb47   : > { %2791 = vmatprep.subr.mxu0 %v6085_v28  ;;  %4386 = vmatprep.subr.mxu1 %v7058_v5  ;;  %v7144_v28 = vld [vmem:[#allocation23_spill] sm:$0xff] }
 0xb48   : > { %2792 = vmatpush1.msra.mxu0 %v6088_v59  ;;  %4387 = vmatpush3.msra.mxu1 %v6175_v21  ;;  %v7145_v59 = vld [vmem:[#allocation25_spill] sm:$0xff] }
 0xb49   : > { %2793 = vmatprep.subr.mxu0 %v6091_v60  ;;  %4388 = vmatprep.subr.mxu1 %v7058_v5  ;;  %v6601_v60 = vld [vmem:[#allocation11 + $0x170] sm:$0xff] }
 0xb4a   : > { %2794 = vmatpush1.msra.mxu0 %v6094_v61  ;;  %4389 = vmatpush3.msra.mxu1 %v6180_v22  ;;  %7146 = vst [vmem:[#allocation20_spill] sm:$0xff] %v6601_v60  ;;  %v7147_v61 = vld [vmem:[#allocation42_spill] sm:$0xff] }
 0xb4b   : > { %2795 = vmatprep.subr.mxu0 %v6097_v45  ;;  %4390 = vmatprep.subr.mxu1 %v7058_v5  ;;  %v7148_v45 = vld [vmem:[#allocation29_spill] sm:$0xff] }
 0xb4c   : > { %2796 = vmatpush1.msra.mxu0 %v6100_v1  ;;  %4391 = vmatpush3.msra.mxu1 %v6184_v24  ;;  %v1902_v1 = vadd.f32 %v7148_v45, %v7147_v61  ;;  %v6717_v45 = vld [vmem:[#allocation11 + $0x78] sm:$0xff] }
 0xb4d   : > { %2797 = vmatprep.subr.mxu0 %v6103_v42  ;;  %4392 = vmatprep.subr.mxu1 %v7058_v5 }
 0xb4e   : > { %2798 = vmatpush1.msra.mxu0 %v6106_v50  ;;  %4393 = vmatpush3.msra.mxu1 %v6188_v25 }
 0xb4f   : > { %2799 = vmatprep.subr.mxu0 %v6109_v57  ;;  %4394 = vmatprep.subr.mxu1 %v7058_v5 }
 0xb50   : > { %2800 = vmatpush1.msra.mxu0 %v6112_v51  ;;  %4395 = vmatpush3.msra.mxu1 %v6192_v26 }
 0xb51   : > { %2801 = vmatprep.subr.mxu0 %v6115_v52  ;;  %4396 = vmatprep.subr.mxu1 %v7058_v5 }
 0xb52   : > { %2802 = vmatpush1.msra.mxu0 %v6118_v6  ;;  %4397 = vmatpush3.msra.mxu1 %v6196_v27 }
 0xb53   : > { %2803 = vmatprep.subr.mxu0 %v6121_v8  ;;  %4398 = vmatprep.subr.mxu1 %v7058_v5  ;;  %v7149_v8 = vld [vmem:[#allocation30_spill] sm:$0xff] }
 0xb54   : > { %2804 = vmatpush1.msra.mxu0 %v6124_v9  ;;  %4399 = vmatpush3.msra.mxu1 %v6200_v0  ;;  %v1904_v9 = vadd.f32 %v7149_v8, %v7128_v40  ;;  %v6617_v0 = vld [vmem:[#allocation11 + $0x168] sm:$0xff]  ;;  %v6743_v8 = vld [vmem:[#allocation11 + $0x38] sm:$0xff] }
 0xb55   : > { %2805 = vmatprep.subr.mxu0 %v6127_v10  ;;  %4400 = vmatprep.subr.mxu1 %v7058_v5 }
 0xb56   : > { %2806 = vmatpush1.msra.mxu0 %v6130_v11  ;;  %4401 = vmatpush3.msra.mxu1 %v6204_v58  ;;  %v6620_v58 = vld [vmem:[#allocation11 + $0x178] sm:$0xff] }
 0xb57   : > { %2807 = vmatprep.subr.mxu0 %v6133_v12  ;;  %4402 = vmatprep.subr.mxu1 %v7058_v5 }
 0xb58   : > { %2808 = vmatpush1.msra.mxu0 %v6136_v13  ;;  %4403 = vmatpush3.msra.mxu1 %v6208_v53  ;;  %v6623_v53 = vld [vmem:[#allocation11 + $0x158] sm:$0xff] }
 0xb59   : > { %2809 = vmatprep.subr.mxu0 %v6139_v14  ;;  %4404 = vmatprep.subr.mxu1 %v7058_v5 }
 0xb5a   : > { %2810 = vmatpush1.msra.mxu0 %v6142_v15  ;;  %4405 = vmatpush3.msra.mxu1 %v6212_v54  ;;  %v6627_v54 = vld [vmem:[#allocation11 + $0x150] sm:$0xff] }
 0xb5b   : > { %2811 = vmatprep.subr.mxu0 %v6145_v16  ;;  %4406 = vmatprep.subr.mxu1 %v7058_v5 }
 0xb5c   : > { %2812 = vmatpush1.msra.mxu0 %v6148_v17  ;;  %4407 = vmatpush3.msra.mxu1 %v6216_v55  ;;  %v6630_v55 = vld [vmem:[#allocation11 + $0x160] sm:$0xff] }
 0xb5d   : > { %2813 = vmatprep.subr.mxu0 %v6151_v18  ;;  %4408 = vmatprep.subr.mxu1 %v7058_v5  ;;  %v7150_v18 = vld [vmem:[#allocation34_spill] sm:$0xff] }
 0xb5e   : > { %2814 = vmatpush1.msra.mxu0 %v6154_v19  ;;  %4409 = vmatpush3.msra.mxu1 %v6220_v62  ;;  %v2012_v19 = vadd.f32 %v7150_v18, %v6370_v35  ;;  %v6633_v62 = vld [vmem:[#allocation11 + $0x140] sm:$0xff] }
 0xb5f   : > { %2815 = vmatprep.subr.mxu0 %v7120_v46  ;;  %4410 = vmatprep.subr.mxu1 %v7058_v5  ;;  %v6637_v46 = vld [vmem:[#allocation11 + $0x138] sm:$0xff] }
 0xb60   : > { %2816 = vmatpush1.msra.mxu0 %v7141_v63  ;;  %4411 = vmatpush3.msra.mxu1 %v7142_v56  ;;  %v6700_v63 = vld [vmem:[#allocation11 + $0xb8] sm:$0xff] }
 0xb61   : > { %2817 = vmatprep.subr.mxu0 %v7143_v32  ;;  %4412 = vmatprep.subr.mxu1 %v7058_v5  ;;  %v6703_v56 = vld [vmem:[#allocation11 + $0x98] sm:$0xff]  ;;  %v6707_v32 = vld [vmem:[#allocation11 + $0x90] sm:$0xff] }
 0xb62   : > { %2818 = vmatpush1.msra.mxu0 %v7144_v28  ;;  %2851 = vmatprep.mubr.f32.mxu0 %v7058_v5  ;;  %v6710_v28 = vld [vmem:[#allocation11 + $0xa0] sm:$0xff] }
 0xb63   : > { %4413 = vmatpush3.msra.mxu1 %v7145_v59  ;;  %4414 = vmatprep.mubr.msk.f32.mxu1 %vm5053_vm0, %v7058_v5  ;;  %v6713_v59 = vld [vmem:[#allocation11 + $0x80] sm:$0xff] }
 0xb64   : > { %2954 = vmatprep.subr.mxu0 %v6601_v60  ;;  %4417 = vmatprep.subr.mxu1 %v7058_v5 }
 0xc03   : > { %v2686_v42 = vpop.f32.mrf.mxu0  ;;  %v2757_v50 = vpop.f32.mrf.mxu1 }
 0xc04   : > { %v2761_v57 = vadd.f32 %v2686_v42, %v1902_v1  ;;  %v2775_v16 = vadd.f32 %v6367_v33, %v2757_v50  ;;  %v6720_v1 = vld [vmem:[#allocation11 + $0x88] sm:$0xff]  ;;  %v6727_v50 = vld [vmem:[#allocation11 + $0x60] sm:$0xff] }
 0xc05   : > { %v4381_v51 = vpop.f32.mrf.mxu1  ;;  %v2688_v6 = vpop.f32.mrf.mxu0  ;;  %v6723_v42 = vld [vmem:[#allocation11 + $0x68] sm:$0xff] }
 0xc06   : > { %v3607_v52 = vmul.f32 -1.442695, %v2761_v57  ;;  %v2768_v10 = vadd.f32 %v2688_v6, %v1904_v9  ;;  %v6730_v57 = vld [vmem:[#allocation11 + $0x70] sm:$0xff]  ;;  %v6740_v6 = vld [vmem:[#allocation11 + $0x58] sm:$0xff] }
 0xc07   : > { %v6733_v51 = vld [vmem:[#allocation11 + $0x50] sm:$0xff] }
 0xc08   : > { %4719 = vpow2.f32 %v3607_v52  ;;  %v3608_v11 = vmul.f32 -1.442695, %v2768_v10  ;;  %v6737_v52 = vld [vmem:[#allocation11 + $0x48] sm:$0xff]  ;;  %v6747_v9 = vld [vmem:[#allocation11 + $0x30] sm:$0xff]  ;;  %v6750_v10 = vld [vmem:[#allocation11 + $0x40] sm:$0xff] }
 0xc0a   : > { %4721 = vpow2.f32 %v3608_v11  ;;  %v6753_v11 = vld [vmem:[#allocation11 + $0x20] sm:$0xff] }
 0xc15   : > { %v4720_v12 = vpop.eup %4719 }
 0xc16   : > { %v2765_v13 = vadd.f32 1.0, %v4720_v12  ;;  %v6757_v12 = vld [vmem:[#allocation11 + $0x18] sm:$0xff] }
 0xc17   : > { %v4722_v14 = vpop.eup %4721  ;;  %7151 = vst [vmem:[#allocation21_spill] sm:$0xff] %v6757_v12 }
 0xc18   : > { %4723 = vrcp.f32 %v2765_v13  ;;  %v2772_v15 = vadd.f32 1.0, %v4722_v14  ;;  %v6760_v13 = vld [vmem:[#allocation11 + $0x28] sm:$0xff] }
 0xc19   : > { %7152 = vst [vmem:[#allocation47_spill] sm:$0xff] %v6760_v13  ;;  %v6763_v14 = vld [vmem:[#allocation11 + $0x8] sm:$0xff] }
 0xc1a   : > { %4725 = vrcp.f32 %v2772_v15  ;;  %7153 = vst [vmem:[#allocation26_spill] sm:$0xff] %v6763_v14  ;;  %v6767_v15 = vld [vmem:[#allocation11] sm:$0xff] }
 0xc1b   : > { %7154 = vst [vmem:[#allocation31_spill] sm:$0xff] %v6767_v15 }
 0xc25   : > { %v4724_v17 = vpop.eup %4723 }
 0xc26   : > { %v2776_v31 = vmul.f32 %v4724_v17, %v2775_v16  ;;  %v6771_v16 = vld [vmem:[#allocation11 + $0x10] sm:$0xff]  ;;  %v7156_v17 = vld [vmem:[#allocation32_spill] sm:$0xff] }
 0xc27   : > { %v4726_v21 = vpop.eup %4725  ;;  %7155 = vst [vmem:[#allocation19_spill] sm:$0xff] %v6771_v16  ;;  %v1908_v18 = vadd.f32 %v7156_v17, %v7147_v61 }
 0xc28   : > { %v2777_v7 = vadd.f32 %v2776_v31, %v2012_v19  ;;  %v2779_v22 = vsub.f32 1.0, %v4726_v21  ;;  %v2781_v26 = vmul.f32 %v4726_v21, %v6532_v49  ;;  %v6697_v49 = vld [vmem:[#allocation11 + $0xa8] sm:$0xff] }
 0xc2a   : > { %4727 = vtanh.f32 %v2777_v7 }
 0xc37   : > { %v4728_v24 = vpop.eup %4727 }
 0xc38   : > { %v2780_v25 = vmul.f32 %v4728_v24, %v2779_v22 }
 0xc3a   : > { %v6613_v27 = vadd.f32 %v2781_v26, %v2780_v25  ;;  %v7157_v25 = vld [vmem:[#allocation33_spill] sm:$0xff] }
 0xc3b   : > { %v1910_v26 = vadd.f32 %v7157_v25, %v7128_v40 }
 0xc3c   : > { %2852 = vmatmul.mubr.f32.vlgmr.msra.gmra.mxu0 %v6613_v27  ;;  %4415 = vmatmul.mubr.f32.vlgmr.msra.gmra.mxu1 %v6613_v27 }
 0xc3d   : > { %2955 = vmatpush1.msra.mxu0 %v6617_v0  ;;  %4418 = vmatpush3.msra.mxu1 %v6620_v58 }
 0xc3e   : > { %2956 = vmatprep.subr.mxu0 %v6623_v53  ;;  %4419 = vmatprep.subr.mxu1 %v7058_v5 }
 0xc3f   : > { %2957 = vmatpush1.msra.mxu0 %v6627_v54  ;;  %4420 = vmatpush3.msra.mxu1 %v6630_v55 }
 0xc40   : > { %2958 = vmatprep.subr.mxu0 %v6633_v62  ;;  %4421 = vmatprep.subr.mxu1 %v7058_v5 }
 0xc41   : > { %2959 = vmatpush1.msra.mxu0 %v6637_v46  ;;  %4422 = vmatpush3.msra.mxu1 %v6640_v4 }
 0xc42   : > { %2960 = vmatprep.subr.mxu0 %v6643_v44  ;;  %4423 = vmatprep.subr.mxu1 %v7058_v5 }
 0xc43   : > { %2961 = vmatpush1.msra.mxu0 %v6647_v43  ;;  %4424 = vmatpush3.msra.mxu1 %v6650_v36 }
 0xc44   : > { %2962 = vmatprep.subr.mxu0 %v6653_v30  ;;  %4425 = vmatprep.subr.mxu1 %v7058_v5 }
 0xc45   : > { %2963 = vmatpush1.msra.mxu0 %v6657_v38  ;;  %4426 = vmatpush3.msra.mxu1 %v6660_v23 }
 0xc46   : > { %2964 = vmatprep.subr.mxu0 %v6663_v29  ;;  %4427 = vmatprep.subr.mxu1 %v7058_v5 }
 0xc47   : > { %2965 = vmatpush1.msra.mxu0 %v6667_v3  ;;  %4428 = vmatpush3.msra.mxu1 %v6670_v34 }
 0xc48   : > { %2966 = vmatprep.subr.mxu0 %v6673_v37  ;;  %4429 = vmatprep.subr.mxu1 %v7058_v5 }
 0xc49   : > { %2967 = vmatpush1.msra.mxu0 %v6677_v41  ;;  %4430 = vmatpush3.msra.mxu1 %v6680_v39 }
 0xc4a   : > { %2968 = vmatprep.subr.mxu0 %v6683_v20  ;;  %4431 = vmatprep.subr.mxu1 %v7058_v5 }
 0xc4b   : > { %2969 = vmatpush1.msra.mxu0 %v6687_v48  ;;  %4432 = vmatpush3.msra.mxu1 %v6690_v47 }
 0xc4c   : > { %2970 = vmatprep.subr.mxu0 %v6693_v2  ;;  %4433 = vmatprep.subr.mxu1 %v7058_v5 }
 0xc4d   : > { %2971 = vmatpush1.msra.mxu0 %v6697_v49  ;;  %4434 = vmatpush3.msra.mxu1 %v6700_v63 }
 0xc4e   : > { %2972 = vmatprep.subr.mxu0 %v6703_v56  ;;  %4435 = vmatprep.subr.mxu1 %v7058_v5 }
 0xc4f   : > { %2973 = vmatpush1.msra.mxu0 %v6707_v32  ;;  %4436 = vmatpush3.msra.mxu1 %v6710_v28 }
 0xc50   : > { %2974 = vmatprep.subr.mxu0 %v6713_v59  ;;  %4437 = vmatprep.subr.mxu1 %v7058_v5 }
 0xc51   : > { %2975 = vmatpush1.msra.mxu0 %v6717_v45  ;;  %4438 = vmatpush3.msra.mxu1 %v6720_v1 }
 0xc52   : > { %2976 = vmatprep.subr.mxu0 %v6723_v42  ;;  %4439 = vmatprep.subr.mxu1 %v7058_v5 }
 0xc53   : > { %2977 = vmatpush1.msra.mxu0 %v6727_v50  ;;  %4440 = vmatpush3.msra.mxu1 %v6730_v57 }
 0xc54   : > { %2978 = vmatprep.subr.mxu0 %v6733_v51  ;;  %4441 = vmatprep.subr.mxu1 %v7058_v5 }
 0xc55   : > { %2979 = vmatpush1.msra.mxu0 %v6737_v52  ;;  %4442 = vmatpush3.msra.mxu1 %v6740_v6 }
 0xc56   : > { %2980 = vmatprep.subr.mxu0 %v6743_v8  ;;  %4443 = vmatprep.subr.mxu1 %v7058_v5 }
 0xc57   : > { %2981 = vmatpush1.msra.mxu0 %v6747_v9  ;;  %4444 = vmatpush3.msra.mxu1 %v6750_v10 }
 0xc58   : > { %2982 = vmatprep.subr.mxu0 %v6753_v11  ;;  %4445 = vmatprep.subr.mxu1 %v7058_v5 }
 0xc59   : > { %2983 = vmatpush1.msra.mxu0 %v6757_v12  ;;  %4446 = vmatpush3.msra.mxu1 %v6760_v13 }
 0xc5a   : > { %2984 = vmatprep.subr.mxu0 %v6763_v14  ;;  %4447 = vmatprep.subr.mxu1 %v7058_v5 }
 0xc5b   : > { %2985 = vmatpush1.msra.mxu0 %v6767_v15  ;;  %3018 = vmatprep.mubr.f32.mxu0 %v7058_v5 }
 0xc5c   : > { %4448 = vmatpush3.msra.mxu1 %v6771_v16  ;;  %4449 = vmatprep.mubr.msk.f32.mxu1 %vm5053_vm0, %v7058_v5 }
 0xc5d   : > { %3121 = vmatprep.subr.mxu0 %v6601_v60  ;;  %4452 = vmatprep.subr.mxu1 %v7058_v5 }
 0xcfc   : > { %v2853_v19 = vpop.f32.mrf.mxu0  ;;  %v2924_v31 = vpop.f32.mrf.mxu1 }
 0xcfd   : > { %v2928_v7 = vadd.f32 %v2853_v19, %v1908_v18  ;;  %v2942_v17 = vadd.f32 %v6367_v33, %v2924_v31  ;;  %v7158_v18 = vld [vmem:[#allocation40_spill] sm:$0xff] }
 0xcfe   : > { %v4416_v21 = vpop.f32.mrf.mxu1  ;;  %v2855_v24 = vpop.f32.mrf.mxu0  ;;  %v2017_v19 = vadd.f32 %v7158_v18, %v6370_v35  ;;  %v7164_v31 = vld [vmem:[#allocation20_spill] sm:$0xff] }
 0xcff   : > { %v3609_v22 = vmul.f32 -1.442695, %v2928_v7  ;;  %v2935_v16 = vadd.f32 %v2855_v24, %v1910_v26  ;;  %v7165_v26 = vld [vmem:[#allocation42_spill] sm:$0xff] }
 0xd01   : > { %4729 = vpow2.f32 %v3609_v22  ;;  %v3610_v15 = vmul.f32 -1.442695, %v2935_v16 }
 0xd03   : > { %4731 = vpow2.f32 %v3610_v15 }
 0xd0e   : > { %v4730_v14 = vpop.eup %4729 }
 0xd0f   : > { %v2932_v60 = vadd.f32 1.0, %v4730_v14 }
 0xd10   : > { %v4732_v13 = vpop.eup %4731 }
 0xd11   : > { %4733 = vrcp.f32 %v2932_v60  ;;  %v2939_v12 = vadd.f32 1.0, %v4732_v13  ;;  %v7159_v60 = vld [vmem:[#allocation21_spill] sm:$0xff]  ;;  %v7163_v13 = vld [vmem:[#allocation19_spill] sm:$0xff] }
 0xd13   : > { %4735 = vrcp.f32 %v2939_v12  ;;  %v7162_v12 = vld [vmem:[#allocation31_spill] sm:$0xff] }
 0xd1e   : > { %v4734_v61 = vpop.eup %4733 }
 0xd1f   : > { %v2943_v7 = vmul.f32 %v4734_v61, %v2942_v17  ;;  %v7160_v61 = vld [vmem:[#allocation47_spill] sm:$0xff] }
 0xd20   : > { %v4736_v25 = vpop.eup %4735  ;;  %v7166_v17 = vld [vmem:[#allocation35_spill] sm:$0xff] }
 0xd21   : > { %v2944_v21 = vadd.f32 %v2943_v7, %v2017_v19  ;;  %v2946_v22 = vsub.f32 1.0, %v4736_v25  ;;  %v2948_v15 = vmul.f32 %v4736_v25, %v6613_v27  ;;  %v7161_v27 = vld [vmem:[#allocation26_spill] sm:$0xff]  ;;  %v1914_v18 = vadd.f32 %v7166_v17, %v7165_v26 }
 0xd23   : > { %4737 = vtanh.f32 %v2944_v21 }
 0xd30   : > { %v4738_v24 = vpop.eup %4737 }
 0xd31   : > { %v2947_v16 = vmul.f32 %v4738_v24, %v2946_v22 }
 0xd33   : > { %v6786_v14 = vadd.f32 %v2948_v15, %v2947_v16  ;;  %v7167_v16 = vld [vmem:[#allocation37_spill] sm:$0xff] }
 0xd34   : > { %v1916_v15 = vadd.f32 %v7167_v16, %v7128_v40 }
 0xd35   : > { %3019 = vmatmul.mubr.f32.vlgmr.msra.gmra.mxu0 %v6786_v14  ;;  %4450 = vmatmul.mubr.f32.vlgmr.msra.gmra.mxu1 %v6786_v14 }
 0xd36   : > { %3122 = vmatpush1.msra.mxu0 %v6617_v0  ;;  %4453 = vmatpush3.msra.mxu1 %v6620_v58 }
 0xd37   : > { %3123 = vmatprep.subr.mxu0 %v6623_v53  ;;  %4454 = vmatprep.subr.mxu1 %v7058_v5 }
 0xd38   : > { %3124 = vmatpush1.msra.mxu0 %v6627_v54  ;;  %4455 = vmatpush3.msra.mxu1 %v6630_v55 }
 0xd39   : > { %3125 = vmatprep.subr.mxu0 %v6633_v62  ;;  %4456 = vmatprep.subr.mxu1 %v7058_v5 }
 0xd3a   : > { %3126 = vmatpush1.msra.mxu0 %v6637_v46  ;;  %4457 = vmatpush3.msra.mxu1 %v6640_v4 }
 0xd3b   : > { %3127 = vmatprep.subr.mxu0 %v6643_v44  ;;  %4458 = vmatprep.subr.mxu1 %v7058_v5 }
 0xd3c   : > { %3128 = vmatpush1.msra.mxu0 %v6647_v43  ;;  %4459 = vmatpush3.msra.mxu1 %v6650_v36 }
 0xd3d   : > { %3129 = vmatprep.subr.mxu0 %v6653_v30  ;;  %4460 = vmatprep.subr.mxu1 %v7058_v5 }
 0xd3e   : > { %3130 = vmatpush1.msra.mxu0 %v6657_v38  ;;  %4461 = vmatpush3.msra.mxu1 %v6660_v23 }
 0xd3f   : > { %3131 = vmatprep.subr.mxu0 %v6663_v29  ;;  %4462 = vmatprep.subr.mxu1 %v7058_v5 }
 0xd40   : > { %3132 = vmatpush1.msra.mxu0 %v6667_v3  ;;  %4463 = vmatpush3.msra.mxu1 %v6670_v34 }
 0xd41   : > { %3133 = vmatprep.subr.mxu0 %v6673_v37  ;;  %4464 = vmatprep.subr.mxu1 %v7058_v5 }
 0xd42   : > { %3134 = vmatpush1.msra.mxu0 %v6677_v41  ;;  %4465 = vmatpush3.msra.mxu1 %v6680_v39 }
 0xd43   : > { %3135 = vmatprep.subr.mxu0 %v6683_v20  ;;  %4466 = vmatprep.subr.mxu1 %v7058_v5 }
 0xd44   : > { %3136 = vmatpush1.msra.mxu0 %v6687_v48  ;;  %4467 = vmatpush3.msra.mxu1 %v6690_v47 }
 0xd45   : > { %3137 = vmatprep.subr.mxu0 %v6693_v2  ;;  %4468 = vmatprep.subr.mxu1 %v7058_v5 }
 0xd46   : > { %3138 = vmatpush1.msra.mxu0 %v6697_v49  ;;  %4469 = vmatpush3.msra.mxu1 %v6700_v63 }
 0xd47   : > { %3139 = vmatprep.subr.mxu0 %v6703_v56  ;;  %4470 = vmatprep.subr.mxu1 %v7058_v5 }
 0xd48   : > { %3140 = vmatpush1.msra.mxu0 %v6707_v32  ;;  %4471 = vmatpush3.msra.mxu1 %v6710_v28 }
 0xd49   : > { %3141 = vmatprep.subr.mxu0 %v6713_v59  ;;  %4472 = vmatprep.subr.mxu1 %v7058_v5 }
 0xd4a   : > { %3142 = vmatpush1.msra.mxu0 %v6717_v45  ;;  %4473 = vmatpush3.msra.mxu1 %v6720_v1 }
 0xd4b   : > { %3143 = vmatprep.subr.mxu0 %v6723_v42  ;;  %4474 = vmatprep.subr.mxu1 %v7058_v5 }
 0xd4c   : > { %3144 = vmatpush1.msra.mxu0 %v6727_v50  ;;  %4475 = vmatpush3.msra.mxu1 %v6730_v57 }
 0xd4d   : > { %3145 = vmatprep.subr.mxu0 %v6733_v51  ;;  %4476 = vmatprep.subr.mxu1 %v7058_v5 }
 0xd4e   : > { %3146 = vmatpush1.msra.mxu0 %v6737_v52  ;;  %4477 = vmatpush3.msra.mxu1 %v6740_v6 }
 0xd4f   : > { %3147 = vmatprep.subr.mxu0 %v6743_v8  ;;  %4478 = vmatprep.subr.mxu1 %v7058_v5 }
 0xd50   : > { %3148 = vmatpush1.msra.mxu0 %v6747_v9  ;;  %4479 = vmatpush3.msra.mxu1 %v6750_v10 }
 0xd51   : > { %3149 = vmatprep.subr.mxu0 %v6753_v11  ;;  %4480 = vmatprep.subr.mxu1 %v7058_v5 }
 0xd52   : > { %3150 = vmatpush1.msra.mxu0 %v7159_v60  ;;  %4481 = vmatpush3.msra.mxu1 %v7160_v61 }
 0xd53   : > { %3151 = vmatprep.subr.mxu0 %v7161_v27  ;;  %4482 = vmatprep.subr.mxu1 %v7058_v5 }
 0xd54   : > { %3152 = vmatpush1.msra.mxu0 %v7162_v12  ;;  %3185 = vmatprep.mubr.f32.mxu0 %v7058_v5 }
 0xd55   : > { %4483 = vmatpush3.msra.mxu1 %v7163_v13  ;;  %4484 = vmatprep.mubr.msk.f32.mxu1 %vm5053_vm0, %v7058_v5 }
 0xd56   : > { %3288 = vmatprep.subr.mxu0 %v7164_v31  ;;  %4487 = vmatprep.subr.mxu1 %v7058_v5 }
 0xdf5   : > { %v3020_v19 = vpop.f32.mrf.mxu0  ;;  %v3091_v7 = vpop.f32.mrf.mxu1 }
 0xdf6   : > { %v3095_v21 = vadd.f32 %v3020_v19, %v1914_v18  ;;  %v3109_v17 = vadd.f32 %v6367_v33, %v3091_v7  ;;  %v7168_v18 = vld [vmem:[#allocation38_spill] sm:$0xff]  ;;  %v7169_v33 = vld [vmem:[#allocation21_spill] sm:$0xff] }
 0xdf7   : > { %v4451_v25 = vpop.f32.mrf.mxu1  ;;  %v3022_v24 = vpop.f32.mrf.mxu0  ;;  %v2022_v19 = vadd.f32 %v7168_v18, %v6370_v35 }
 0xdf8   : > { %v3611_v22 = vmul.f32 -1.442695, %v3095_v21  ;;  %v3102_v13 = vadd.f32 %v3022_v24, %v1916_v15 }
 0xdfa   : > { %4739 = vpow2.f32 %v3611_v22  ;;  %v3612_v12 = vmul.f32 -1.442695, %v3102_v13 }
 0xdfc   : > { %4741 = vpow2.f32 %v3612_v12 }
 0xe07   : > { %v4740_v27 = vpop.eup %4739 }
 0xe08   : > { %v3099_v31 = vadd.f32 1.0, %v4740_v27 }
 0xe09   : > { %v4742_v61 = vpop.eup %4741 }
 0xe0a   : > { %4743 = vrcp.f32 %v3099_v31  ;;  %v3106_v60 = vadd.f32 1.0, %v4742_v61 }
 0xe0c   : > { %4745 = vrcp.f32 %v3106_v60 }
 0xe17   : > { %v4744_v26 = vpop.eup %4743 }
 0xe18   : > { %v3110_v21 = vmul.f32 %v4744_v26, %v3109_v17 }
 0xe19   : > { %v4746_v16 = vpop.eup %4745 }
 0xe1a   : > { %v3111_v25 = vadd.f32 %v3110_v21, %v2022_v19  ;;  %v3113_v22 = vsub.f32 1.0, %v4746_v16  ;;  %v3115_v12 = vmul.f32 %v4746_v16, %v6786_v14  ;;  %v7180_v19 = vld [vmem:[#allocation44_spill] sm:$0xff] }
 0xe1b   : > { %v2032_v21 = vadd.f32 %v7180_v19, %v6370_v35 }
 0xe1c   : > { %4747 = vtanh.f32 %v3111_v25 }
 0xe29   : > { %v4748_v24 = vpop.eup %4747 }
 0xe2a   : > { %v3114_v13 = vmul.f32 %v4748_v24, %v3113_v22 }
 0xe2c   : > { %v6865_v27 = vadd.f32 %v3115_v12, %v3114_v13 }
 0xe2e   : > { %3186 = vmatmul.mubr.f32.vlgmr.msra.gmra.mxu0 %v6865_v27  ;;  %4485 = vmatmul.mubr.f32.vlgmr.msra.gmra.mxu1 %v6865_v27 }
 0xe2f   : > { %3289 = vmatpush1.msra.mxu0 %v6617_v0  ;;  %4488 = vmatpush3.msra.mxu1 %v6620_v58  ;;  %v7170_v0 = vld [vmem:[#allocation47_spill] sm:$0xff]  ;;  %v7171_v58 = vld [vmem:[#allocation26_spill] sm:$0xff] }
 0xe30   : > { %3290 = vmatprep.subr.mxu0 %v6623_v53  ;;  %4489 = vmatprep.subr.mxu1 %v7058_v5  ;;  %v7172_v53 = vld [vmem:[#allocation31_spill] sm:$0xff] }
 0xe31   : > { %3291 = vmatpush1.msra.mxu0 %v6627_v54  ;;  %4490 = vmatpush3.msra.mxu1 %v6630_v55  ;;  %v7173_v54 = vld [vmem:[#allocation19_spill] sm:$0xff]  ;;  %v7174_v55 = vld [vmem:[#allocation42_spill] sm:$0xff] }
 0xe32   : > { %3292 = vmatprep.subr.mxu0 %v6633_v62  ;;  %4491 = vmatprep.subr.mxu1 %v7058_v5  ;;  %v7175_v62 = vld [vmem:[#allocation39_spill] sm:$0xff] }
 0xe33   : > { %3293 = vmatpush1.msra.mxu0 %v6637_v46  ;;  %4492 = vmatpush3.msra.mxu1 %v6640_v4  ;;  %v1920_v46 = vadd.f32 %v7175_v62, %v7174_v55 }
 0xe34   : > { %3294 = vmatprep.subr.mxu0 %v6643_v44  ;;  %4493 = vmatprep.subr.mxu1 %v7058_v5 }
 0xe35   : > { %3295 = vmatpush1.msra.mxu0 %v6647_v43  ;;  %4494 = vmatpush3.msra.mxu1 %v6650_v36 }
 0xe36   : > { %3296 = vmatprep.subr.mxu0 %v6653_v30  ;;  %4495 = vmatprep.subr.mxu1 %v7058_v5 }
 0xe37   : > { %3297 = vmatpush1.msra.mxu0 %v6657_v38  ;;  %4496 = vmatpush3.msra.mxu1 %v6660_v23  ;;  %v7176_v23 = vld [vmem:[#allocation41_spill] sm:$0xff] }
 0xe38   : > { %3298 = vmatprep.subr.mxu0 %v6663_v29  ;;  %4497 = vmatprep.subr.mxu1 %v7058_v5  ;;  %v1922_v29 = vadd.f32 %v7176_v23, %v7128_v40 }
 0xe39   : > { %3299 = vmatpush1.msra.mxu0 %v6667_v3  ;;  %4498 = vmatpush3.msra.mxu1 %v6670_v34 }
 0xe3a   : > { %3300 = vmatprep.subr.mxu0 %v6673_v37  ;;  %4499 = vmatprep.subr.mxu1 %v7058_v5 }
 0xe3b   : > { %3301 = vmatpush1.msra.mxu0 %v6677_v41  ;;  %4500 = vmatpush3.msra.mxu1 %v6680_v39 }
 0xe3c   : > { %3302 = vmatprep.subr.mxu0 %v6683_v20  ;;  %4501 = vmatprep.subr.mxu1 %v7058_v5  ;;  %v4866_v20 = vld [vmem:[%s6982_s6] ss:$0 sm:$0xff] }
 0xe3d   : > { %3303 = vmatpush1.msra.mxu0 %v6687_v48  ;;  %4502 = vmatpush3.msra.mxu1 %v6690_v47 }
 0xe3e   : > { %3304 = vmatprep.subr.mxu0 %v6693_v2  ;;  %4503 = vmatprep.subr.mxu1 %v7058_v5  ;;  %v7177_v2 = vld [vmem:[#allocation46_spill] sm:$0xff] }
 0xe3f   : > { %3305 = vmatpush1.msra.mxu0 %v6697_v49  ;;  %4504 = vmatpush3.msra.mxu1 %v6700_v63  ;;  %v2027_v49 = vadd.f32 %v7177_v2, %v6370_v35 }
 0xe40   : > { %3306 = vmatprep.subr.mxu0 %v6703_v56  ;;  %4505 = vmatprep.subr.mxu1 %v7058_v5 }
 0xe41   : > { %3307 = vmatpush1.msra.mxu0 %v6707_v32  ;;  %4506 = vmatpush3.msra.mxu1 %v6710_v28 }
 0xe42   : > { %3308 = vmatprep.subr.mxu0 %v6713_v59  ;;  %4507 = vmatprep.subr.mxu1 %v7058_v5 }
 0xe43   : > { %3309 = vmatpush1.msra.mxu0 %v6717_v45  ;;  %4508 = vmatpush3.msra.mxu1 %v6720_v1 }
 0xe44   : > { %3310 = vmatprep.subr.mxu0 %v6723_v42  ;;  %4509 = vmatprep.subr.mxu1 %v7058_v5 }
 0xe45   : > { %3311 = vmatpush1.msra.mxu0 %v6727_v50  ;;  %4510 = vmatpush3.msra.mxu1 %v6730_v57  ;;  %v7178_v50 = vld [vmem:[#allocation43_spill] sm:$0xff] }
 0xe46   : > { %3312 = vmatprep.subr.mxu0 %v6733_v51  ;;  %4511 = vmatprep.subr.mxu1 %v7058_v5  ;;  %v1926_v57 = vadd.f32 %v7178_v50, %v7174_v55 }
 0xe47   : > { %3313 = vmatpush1.msra.mxu0 %v6737_v52  ;;  %4512 = vmatpush3.msra.mxu1 %v6740_v6 }
 0xe48   : > { %3314 = vmatprep.subr.mxu0 %v6743_v8  ;;  %4513 = vmatprep.subr.mxu1 %v7058_v5 }
 0xe49   : > { %3315 = vmatpush1.msra.mxu0 %v6747_v9  ;;  %4514 = vmatpush3.msra.mxu1 %v6750_v10 }
 0xe4a   : > { %3316 = vmatprep.subr.mxu0 %v6753_v11  ;;  %4515 = vmatprep.subr.mxu1 %v7058_v5  ;;  %v7179_v11 = vld [vmem:[#allocation45_spill] sm:$0xff] }
 0xe4b   : > { %3317 = vmatpush1.msra.mxu0 %v7169_v33  ;;  %4516 = vmatpush3.msra.mxu1 %v7170_v0  ;;  %v1928_v14 = vadd.f32 %v7179_v11, %v7128_v40 }
 0xe4c   : > { %3318 = vmatprep.subr.mxu0 %v7171_v58  ;;  %4517 = vmatprep.subr.mxu1 %v7058_v5 }
 0xe4d   : > { %3319 = vmatpush1.msra.mxu0 %v7172_v53  ;;  %3352 = vmatprep.mubr.f32.mxu0 %v7058_v5 }
 0xe4e   : > { %4518 = vmatpush3.msra.mxu1 %v7173_v54  ;;  %4519 = vmatprep.mubr.msk.f32.mxu1 %vm5053_vm0, %v7058_v5 }
 0xeee   : > { %v3187_v4 = vpop.f32.mrf.mxu0  ;;  %v3258_v44 = vpop.f32.mrf.mxu1 }
 0xeef   : > { %v3262_v43 = vadd.f32 %v3187_v4, %v1920_v46  ;;  %v3276_v48 = vadd.f32 %v4866_v20, %v3258_v44 }
 0xef0   : > { %v4486_v36 = vpop.f32.mrf.mxu1  ;;  %v3189_v38 = vpop.f32.mrf.mxu0 }
 0xef1   : > { %v3613_v30 = vmul.f32 -1.442695, %v3262_v43  ;;  %v3269_v3 = vadd.f32 %v3189_v38, %v1922_v29 }
 0xef3   : > { %4749 = vpow2.f32 %v3613_v30  ;;  %v3614_v34 = vmul.f32 -1.442695, %v3269_v3 }
 0xef5   : > { %4751 = vpow2.f32 %v3614_v34 }
 0xf00   : > { %v4750_v37 = vpop.eup %4749 }
 0xf01   : > { %v3266_v41 = vadd.f32 1.0, %v4750_v37 }
 0xf02   : > { %v4752_v5 = vpop.eup %4751 }
 0xf03   : > { %4753 = vrcp.f32 %v3266_v41  ;;  %v3273_v39 = vadd.f32 1.0, %v4752_v5 }
 0xf05   : > { %4755 = vrcp.f32 %v3273_v39 }
 0xf10   : > { %v4754_v47 = vpop.eup %4753 }
 0xf11   : > { %v3277_v63 = vmul.f32 %v4754_v47, %v3276_v48 }
 0xf12   : > { %v4756_v32 = vpop.eup %4755 }
 0xf13   : > { %v3278_v56 = vadd.f32 %v3277_v63, %v2027_v49  ;;  %v3280_v28 = vsub.f32 1.0, %v4756_v32  ;;  %v3282_v1 = vmul.f32 %v4756_v32, %v6865_v27 }
 0xf15   : > { %4757 = vtanh.f32 %v3278_v56 }
 0xf22   : > { %v4758_v59 = vpop.eup %4757 }
 0xf23   : > { %v3281_v45 = vmul.f32 %v4758_v59, %v3280_v28 }
 0xf25   : > { %v3283_v42 = vadd.f32 %v3282_v1, %v3281_v45 }
 0xf27   : > { %3353 = vmatmul.mubr.f32.vlgmr.msra.gmra.mxu0 %v3283_v42  ;;  %4520 = vmatmul.mubr.f32.vlgmr.msra.gmra.mxu1 %v3283_v42 }
 0xfe7   : > { %v3354_v51 = vpop.f32.mrf.mxu0  ;;  %v3425_v52 = vpop.f32.mrf.mxu1 }
 0xfe8   : > { %v3429_v6 = vadd.f32 %v3354_v51, %v1926_v57  ;;  %v3443_v17 = vadd.f32 %v4866_v20, %v3425_v52 }
 0xfe9   : > { %v4521_v8 = vpop.f32.mrf.mxu1  ;;  %v3356_v10 = vpop.f32.mrf.mxu0 }
 0xfea   : > { %v3615_v9 = vmul.f32 -1.442695, %v3429_v6  ;;  %v3436_v60 = vadd.f32 %v3356_v10, %v1928_v14 }
 0xfec   : > { %4759 = vpow2.f32 %v3615_v9  ;;  %v3616_v61 = vmul.f32 -1.442695, %v3436_v60 }
 0xfee   : > { %4761 = vpow2.f32 %v3616_v61 }
 0xff9   : > { %v4760_v26 = vpop.eup %4759 }
 0xffa   : > { %v3433_v7 = vadd.f32 1.0, %v4760_v26 }
 0xffb   : > { %v4762_v15 = vpop.eup %4761 }
 0xffc   : > { %4763 = vrcp.f32 %v3433_v7  ;;  %v3440_v31 = vadd.f32 1.0, %v4762_v15 }
 0xffe   : > { %4765 = vrcp.f32 %v3440_v31 }
0x1009   : > { %v4764_v18 = vpop.eup %4763 }
0x100a   : > { %v3444_v25 = vmul.f32 %v4764_v18, %v3443_v17 }
0x100b   : > { %v4766_v22 = vpop.eup %4765 }
0x100c   : > { %v3445_v16 = vadd.f32 %v3444_v25, %v2032_v21  ;;  %v3447_v40 = vsub.f32 1.0, %v4766_v22  ;;  %v3449_v12 = vmul.f32 %v4766_v22, %v3283_v42 }
0x100e   : > { %4767 = vtanh.f32 %v3445_v16 }
0x101b   : > { %v4768_v24 = vpop.eup %4767 }
0x101c   : > { %v3448_v13 = vmul.f32 %v4768_v24, %v3447_v40  ;;  %3455 = sbr.rel (%p3617_p9) target bundleno = 4137 (0x1029), region = 72 }
0x101e   : > { %v3450_v27 = vadd.f32 %v3449_v12, %v3448_v13 }
0x1020   : > { %3451 = vst [vmem:[#allocation2 + $0x8] sm:$0xff] %v3450_v27 }
0x1021   : > { %v3456_v33 = vld [vmem:[#allocation2] sm:$0xff] }
0x1022   : > { %3458 = vst [vmem:[#allocation13] sm:$0xff] %v3456_v33 }
0x1027   : > { %v3457_v0 = vld [vmem:[#allocation2 + $0x8] sm:$0xff] }
0x1028   : > { %3459 = vst [vmem:[#allocation13 + $0x8] sm:$0xff] %v3457_v0 }
0x1029 PF: > { %p4564_p2 = scmp.eq.s32.totalorder %s5116_s28, 1  ;;  %s5054_s13 = smov [#allocation13]  }
0x102a   : > { %s3466_s15 = sshll.u32 %s5054_s13, 4  ;;  %s3467_s15 = int_to_ptr.vmem [resolvable:$true] %s3466_s15 }
0x102b   : > { %s4973_s20 = scalar_lea.vmem %s3467_s15, 256  ;;  %p4980_p8 = scmp.lt.s32.totalorder %s3467_s15, %s3467_s15 }
0x102c   : > { %p4974_p3 = scmp.ne.s32.totalorder %s3467_s15, %s4973_s20  ;;  %p4981_p13 = scmp.lt.s32.totalorder %s4973_s20, %s4973_s20 }
0x102e   : > { %p4975_p7 = pnand %p4974_p3, %p4564_p2  ;;  %p4982_p4 = por %p4981_p13, %p4980_p8 }
0x1030   : > { %p4976_p10 = pneg %p4975_p7 }
0x1032   : > { %p4983_p1 = pnand %p4982_p4, %p4976_p10 }
0x1034   : > { %4986 = shalt.err (!%p4983_p1)
}
0x1035   : > { %s5055_s22 = smov 128   ;;  %s5056_s27 = smov 8  }
0x1036   : > { %4540 = dma.vmem_to_hbm [thread:$0]  (%p4564_p2), %s3467_s15, 256, %s6983_s7, [#allocation7], %s5055_s22, %s5055_s22, %s5056_s27  }
0x1037   : > { %5026 = dma.done.wait (%p4564_p2), [#allocation7], 256  }
0x1038   : > { %5028 = vsyncadd (%p4564_p2), [#allocation7], 4294967040 }
0x1039 PF: > { %p20_p5 = scmp.ge.s32.totalorder %s5177_s9, 4   ;;  %s7181_s24 = smov %s5035_s25 }
0x103a   : > { %s7182_s25 = smov %s5039_s26  ;;  %s7183_s26 = smov %s5187_s12 }
0x103b   : > { %s7184_s27 = smov %s5177_s9  ;;  %22 = sbr.rel (!%p20_p5) target bundleno = 6 (0x6), region = 127 }
0x1040   :  { %3482 = vsyncpa [#allocation6], 1 }
0x1041   :  { %3484 = vsyncpa [#allocation6 + $0x1], 1 }
0x1042   :  { %3485 = vsyncpa [#allocation9], 1 }
0x1043   :  { %3486 = vsyncpa [#allocation12], 1 }
0x1044   :  { %3487 = vsyncpa [#allocation7], 1 }
0x1045   :  { %3489 = vsyncpa [#allocation7 + $0x1], 1 }

</bundles_post_ra>
